<compile_context>
chip_gen: v6e
topology: v6e:2x2x1
jax: 0.10.0
libtpu: 0.0.40
codegen_flags: <defaults>
</compile_context>

<pallas_src>
import functools

import jax
import jax.numpy as jnp
from jax.experimental import pallas as pl
from jax.experimental.pallas import tpu as pltpu

FACTORS = [1, 1, 1, 1, 1 / 2, 1 / 4, 1 / 8, 1 / 16, 1 / 32]
LEAKY_SLOPE = 0.2
LANE = 128
TILE_M = 256
VMEM_LIMIT = 32 * 1024 * 1024   # sized for v7x's smaller VMEM budget


def _round_up(x, m):
    return ((x + m - 1) // m) * m


def _full_spec(shape):
    # whole array as a single VMEM block (grid = ())
    return pl.BlockSpec(shape, lambda: (0,) * len(shape))


def _leaky(x):
    return jnp.where(x >= 0.0, x, LEAKY_SLOPE * x)


# ---------------------------------------------------------------------------
# Pallas kernels
# ---------------------------------------------------------------------------

def _ws_matmul_kernel(x_ref, w_ref, b_ref, o_ref, *, apply_act):
    """Fused WSConv2d hot path (scale pre-folded into w): patches @ W + b.

    x_ref: (TM, K) bf16   w_ref: (K, Cp) bf16   b_ref: (1, Cp) f32
    o_ref: (TM, Cp) f32   (Cp = Cout padded to a multiple of 128)
    """
    acc = jnp.dot(x_ref[...], w_ref[...], preferred_element_type=jnp.float32)
    acc = acc + b_ref[...]
    if apply_act:
        acc = _leaky(acc)
    o_ref[...] = acc


def _avgpool_kernel(x_ref, o_ref):
    """2x2 stride-2 average pool.

    x_ref: (N, Ho, 2, 2, Wo, C)  (window dims pre-arranged as leading dims)
    o_ref: (N, Ho, Wo, C)
    """
    s = (x_ref[:, :, 0, 0] + x_ref[:, :, 0, 1] +
         x_ref[:, :, 1, 0] + x_ref[:, :, 1, 1])
    o_ref[...] = s * 0.25


def _avgpool_fade_kernel(alpha_ref, x_ref, d_ref, o_ref):
    """Fused avg_pool(2x2) + fade_in: alpha * pool(x) + (1 - alpha) * down."""
    a = alpha_ref[0]
    pooled = (x_ref[:, :, 0, 0] + x_ref[:, :, 0, 1] +
              x_ref[:, :, 1, 0] + x_ref[:, :, 1, 1]) * 0.25
    o_ref[...] = a * pooled + (1.0 - a) * d_ref[...]


def _batch_std_kernel(x_ref, o_ref, *, n):
    """Unbiased std over batch (torch.std default), mean over everything.

    x_ref: (N, H, W, C)   o_ref: (1, 1) scalar stat
    """
    # TODO(synk): source uses `.repet(...)` (typo, would raise in PyTorch);
    # implemented the intended `.repeat(...)` broadcast semantics.
    x = x_ref[...]
    mean = jnp.mean(x, axis=0, keepdims=True)
    var = jnp.sum((x - mean) ** 2, axis=0) / (n - 1)
    stat = jnp.mean(jnp.sqrt(var))
    o_ref[...] = jnp.broadcast_to(stat, (1, 1))


def _final_head_kernel(x_ref, w2_ref, b2_ref, w3_ref, b3_ref, o_ref):
    """Fused final head: 4x4-valid conv (as matmul) + LeakyReLU + 1x1 conv.

    x_ref: (N, 16*C) bf16   w2: (16*C, Cp) bf16   b2: (1, Cp) f32
    w3: (Cp, Op) bf16       b3: (1, Op) f32       o_ref: (N, Op) f32
    """
    h = jnp.dot(x_ref[...], w2_ref[...], preferred_element_type=jnp.float32)
    h = _leaky(h + b2_ref[...])
    y = jnp.dot(h.astype(jnp.bfloat16), w3_ref[...],
                preferred_element_type=jnp.float32)
    o_ref[...] = y + b3_ref[...]


# ---------------------------------------------------------------------------
# Op wrappers (JAX glue + pallas_call)
# ---------------------------------------------------------------------------

def _conv_meta(p, gain=2):
    k, _, cin, cout = p["w"].shape
    pad = 1 if k == 3 else 0          # matches every WSConv2d in this model
    scale = float((gain / (cin * k * k)) ** 0.5)
    return k, pad, cin, cout, scale


def ws_conv2d(x, p, apply_act):
    """WSConv2d forward in NHWC: conv(x * scale) + bias (+ LeakyReLU)."""
    n, h, w_sz, cin = x.shape
    k, pad, _, cout, scale = _conv_meta(p)
    ho = h + 2 * pad - k + 1
    wo = w_sz + 2 * pad - k + 1

    # im2col patches built directly in bf16 (pad/slice/concat/cast fuse in XLA)
    xp = jnp.pad(x, ((0, 0), (pad, pad), (pad, pad), (0, 0))).astype(jnp.bfloat16)
    if k == 1:
        patches = xp.reshape(n * ho * wo, cin)
    else:
        cols = [xp[:, kh:kh + ho, kw:kw + wo, :]
                for kh in range(k) for kw in range(k)]
        patches = jnp.concatenate(cols, axis=-1).reshape(n * ho * wo, k * k * cin)

    kdim = k * k * cin
    cout_p = _round_up(cout, LANE)

    # fold WS scale into the small weight tile; pad Cout to lane-dense width
    wmat = (p["w"].reshape(kdim, cout) * scale).astype(jnp.bfloat16)
    wmat = jnp.pad(wmat, ((0, 0), (0, cout_p - cout)))
    bias = jnp.pad(p["b"], ((0, 0), (0, cout_p - cout)))

    m = patches.shape[0]
    tm = TILE_M if m >= TILE_M else m
    grid = (pl.cdiv(m, tm),)

    out2d = pl.pallas_call(
        functools.partial(_ws_matmul_kernel, apply_act=apply_act),
        out_shape=jax.ShapeDtypeStruct((m, cout_p), jnp.float32),
        grid=grid,
        in_specs=[pl.BlockSpec((tm, kdim), lambda i: (i, 0)),
                  pl.BlockSpec((kdim, cout_p), lambda i: (0, 0)),
                  pl.BlockSpec((1, cout_p), lambda i: (0, 0))],
        out_specs=pl.BlockSpec((tm, cout_p), lambda i: (i, 0)),
        compiler_params=pltpu.CompilerParams(
            dimension_semantics=("parallel",),
            vmem_limit_bytes=VMEM_LIMIT),
    )(patches, wmat, bias)
    return out2d[:, :cout].reshape(n, ho, wo, cout)


def _pool_prep(x):
    n, h, w, c = x.shape
    ho, wo = h // 2, w // 2
    # TODO(synk): transpose keeps the 2x2 window on leading dims (proven
    # lowering); a strided-load kernel would avoid this extra pass.
    xr = x.reshape(n, ho, 2, wo, 2, c).transpose(0, 1, 2, 4, 3, 5)
    return xr, (n, ho, wo, c)


def avg_pool_2x2(x):
    xr, oshape = _pool_prep(x)
    return pl.pallas_call(
        _avgpool_kernel,
        out_shape=jax.ShapeDtypeStruct(oshape, x.dtype),
        in_specs=[_full_spec(xr.shape)],
        out_specs=_full_spec(oshape),
        compiler_params=pltpu.CompilerParams(vmem_limit_bytes=VMEM_LIMIT),
    )(xr)


def avg_pool_fade(alpha, downscaled, x):
    """fade_in(alpha, downscaled, avg_pool(x)) fused in one kernel."""
    xr, oshape = _pool_prep(x)
    a = jnp.reshape(jnp.asarray(alpha, jnp.float32), (1,))
    return pl.pallas_call(
        _avgpool_fade_kernel,
        out_shape=jax.ShapeDtypeStruct(oshape, x.dtype),
        in_specs=[pl.BlockSpec(memory_space=pltpu.MemorySpace.SMEM),
                  _full_spec(xr.shape),
                  _full_spec(downscaled.shape)],
        out_specs=_full_spec(oshape),
        compiler_params=pltpu.CompilerParams(vmem_limit_bytes=VMEM_LIMIT),
    )(a, xr, downscaled)


def minibatch_std(x):
    n, h, w, c = x.shape
    stat = pl.pallas_call(
        functools.partial(_batch_std_kernel, n=n),
        out_shape=jax.ShapeDtypeStruct((1, 1), jnp.float32),
        in_specs=[_full_spec(x.shape)],
        out_specs=_full_spec((1, 1)),
        compiler_params=pltpu.CompilerParams(vmem_limit_bytes=VMEM_LIMIT),
    )(x)
    # concat the constant channel in the wrapper; it fuses into the next
    # conv's patch building (avoids a lane-width-1 store in the kernel).
    extra = jnp.broadcast_to(stat.reshape(1, 1, 1, 1), (n, h, w, 1)).astype(x.dtype)
    return jnp.concatenate([x, extra], axis=-1)


def final_head(x, p2, p3):
    """Fused final 4x4 conv + LeakyReLU + 1x1 conv. x: (N, 4, 4, C)."""
    n, h, w, c = x.shape
    k2, _, _, c2, scale2 = _conv_meta(p2)
    _, _, _, c3, scale3 = _conv_meta(p3)
    assert (h, w) == (k2, k2)
    kdim2 = k2 * k2 * c
    c2_p = _round_up(c2, LANE)
    c3_p = _round_up(c3, LANE)

    xf = x.reshape(n, kdim2).astype(jnp.bfloat16)
    w2 = (p2["w"].reshape(kdim2, c2) * scale2).astype(jnp.bfloat16)
    w2 = jnp.pad(w2, ((0, 0), (0, c2_p - c2)))
    b2 = jnp.pad(p2["b"], ((0, 0), (0, c2_p - c2)))
    w3 = (p3["w"].reshape(c2, c3) * scale3).astype(jnp.bfloat16)
    w3 = jnp.pad(w3, ((0, c2_p - c2), (0, c3_p - c3)))
    b3 = jnp.pad(p3["b"], ((0, 0), (0, c3_p - c3)))

    out = pl.pallas_call(
        _final_head_kernel,
        out_shape=jax.ShapeDtypeStruct((n, c3_p), jnp.float32),
        in_specs=[_full_spec((n, kdim2)),
                  _full_spec((kdim2, c2_p)),
                  _full_spec((1, c2_p)),
                  _full_spec((c2_p, c3_p)),
                  _full_spec((1, c3_p))],
        out_specs=_full_spec((n, c3_p)),
        compiler_params=pltpu.CompilerParams(vmem_limit_bytes=VMEM_LIMIT),
    )(xf, w2, b2, w3, b3)
    return out[:, :c3]


# ---------------------------------------------------------------------------
# Parameter initialization (deterministic, matches module __init__ shapes)
# ---------------------------------------------------------------------------

def init_wsconv(key, cin, cout, k):
    w = jax.random.normal(key, (k, k, cin, cout), jnp.float32)  # nn.init.normal_
    b = jnp.zeros((1, cout), jnp.float32)                       # zero bias
    return {"w": w, "b": b}


def init_discriminator(key, in_channels, img_channels=3):
    keys = iter(jax.random.split(key, 64))
    blocks, rgbs = [], []
    for i in range(len(FACTORS) - 1, 0, -1):
        cin = int(in_channels * FACTORS[i])
        cout = int(in_channels * FACTORS[i - 1])
        blocks.append({
            "conv1": init_wsconv(next(keys), cin, cout, 3),
            "conv2": init_wsconv(next(keys), cout, cout, 3),
        })
        rgbs.append(init_wsconv(next(keys), img_channels, cin, 1))
    rgbs.append(init_wsconv(next(keys), img_channels, in_channels, 1))  # initial_rgb
    final = [
        init_wsconv(next(keys), in_channels + 1, in_channels, 3),
        init_wsconv(next(keys), in_channels, in_channels, 4),
        init_wsconv(next(keys), in_channels, 1, 1),
    ]
    return {"blocks": blocks, "rgb": rgbs, "final": final}


# ---------------------------------------------------------------------------
# Forward pass (mirrors Discriminator.forward)
# ---------------------------------------------------------------------------

def conv_block(x, bp):
    # ConvBlock with use_pixelnorm=False (as used by the Discriminator)
    x = ws_conv2d(x, bp["conv1"], apply_act=True)
    x = ws_conv2d(x, bp["conv2"], apply_act=True)
    return x


def final_block(x, fps):
    x = ws_conv2d(x, fps[0], apply_act=True)      # 3x3, C+1 -> C, LeakyReLU
    return final_head(x, fps[1], fps[2])          # fused 4x4 conv + act + 1x1


def discriminator_forward(params, x_nchw, alpha, steps):
    # NCHW (PyTorch) -> NHWC (kernel layout)
    x = jnp.transpose(x_nchw, (0, 2, 3, 1)).astype(jnp.float32)
    num_blocks = len(params["blocks"])
    curr_step = num_blocks - steps

    out = ws_conv2d(x, params["rgb"][curr_step], apply_act=True)
    if steps == 0:
        out = minibatch_std(out)
        return final_block(out, params["final"])

    downscaled = ws_conv2d(avg_pool_2x2(x), params["rgb"][curr_step + 1],
                           apply_act=True)
    pre_pool = conv_block(out, params["blocks"][curr_step])
    out = avg_pool_fade(alpha, downscaled, pre_pool)     # fused pool + fade_in
    for step in range(curr_step + 1, num_blocks):
        out = avg_pool_2x2(conv_block(out, params["blocks"][step]))
    out = minibatch_std(out)
    return final_block(out, params["final"])


if __name__ == "__main__":
    key = jax.random.PRNGKey(0)
    pkey, xkey = jax.random.split(key)

    in_channels, img_channels = 32, 3
    steps = 2                                   # resolution = 4 * 2**steps = 16
    params = init_discriminator(pkey, in_channels, img_channels)

    x = jax.random.normal(xkey, (2, img_channels, 16, 16), jnp.float32)  # NCHW
    alpha = 0.5

    fwd = jax.jit(discriminator_forward, static_argnums=(3,))
    y = fwd(params, x, alpha, steps)
    jax.block_until_ready(y)
    assert y.shape == (2, 1), y.shape
    assert bool(jnp.all(jnp.isfinite(y)))
    print("KERNEL_OK")
</pallas_src>

<mosaic_0001>
module attributes {stable_mosaic.version = 11 : i64} {
  func.func @_ws_matmul_kernel(%arg0: i32, %arg1: memref<256x3xbf16, #tpu.memory_space<vmem>>, %arg2: memref<3x128xbf16, #tpu.memory_space<vmem>>, %arg3: memref<1x128xf32, #tpu.memory_space<vmem>>, %arg4: memref<256x128xf32, #tpu.memory_space<vmem>>) attributes {dimension_semantics = [#tpu.dimension_semantics<parallel>], iteration_bounds = array<i64: 2>, scalar_prefetch = 0 : i64, scratch_operands = 0 : i64, tpu.core_type = #tpu.core_type<tc>, window_params = [{transform_indices = @transform_0, window_bounds = array<i64: 256, 3>}, {pipeline_mode = #tpu.pipeline_mode<synchronous>, transform_indices = @transform_1, window_bounds = array<i64: 3, 128>}, {pipeline_mode = #tpu.pipeline_mode<synchronous>, transform_indices = @transform_2, window_bounds = array<i64: 1, 128>}, {transform_indices = @transform_3, window_bounds = array<i64: 256, 128>}]} {
    %c0 = arith.constant 0 : index
    %c0_0 = arith.constant 0 : index
    %0 = vector.load %arg1[%c0, %c0_0] : memref<256x3xbf16, #tpu.memory_space<vmem>>, vector<256x3xbf16>
    %c0_1 = arith.constant 0 : index
    %c0_2 = arith.constant 0 : index
    %1 = vector.load %arg2[%c0_1, %c0_2] : memref<3x128xbf16, #tpu.memory_space<vmem>>, vector<3x128xbf16>
    %cst = arith.constant dense<0.000000e+00> : vector<256x128xf32>
    %2 = tpu.matmul %0, %1, %cst {dimension_numbers = #tpu.dot_dimension_numbers<[1], [0], [0], [1], [0, 0, 1, 1], [], []>} : vector<256x3xbf16>, vector<3x128xbf16>, vector<256x128xf32> -> vector<256x128xf32>
    %c0_3 = arith.constant 0 : index
    %c0_4 = arith.constant 0 : index
    %3 = vector.load %arg3[%c0_3, %c0_4] : memref<1x128xf32, #tpu.memory_space<vmem>>, vector<1x128xf32>
    %4 = vector.broadcast %3 : vector<1x128xf32> to vector<256x128xf32>
    %5 = arith.addf %2, %4 : vector<256x128xf32>
    %cst_5 = arith.constant 0.000000e+00 : f32
    %6 = vector.broadcast %cst_5 : f32 to vector<256x128xf32>
    %7 = arith.cmpf oge, %5, %6 : vector<256x128xf32>
    %cst_6 = arith.constant 2.000000e-01 : f32
    %8 = vector.broadcast %cst_6 : f32 to vector<256x128xf32>
    %9 = arith.mulf %8, %5 : vector<256x128xf32>
    %10 = arith.select %7, %5, %9 : vector<256x128xi1>, vector<256x128xf32>
    %c0_7 = arith.constant 0 : index
    %c0_8 = arith.constant 0 : index
    %11 = vector.load %arg4[%c0_7, %c0_8] : memref<256x128xf32, #tpu.memory_space<vmem>>, vector<256x128xf32>
    tpu.vector_store %arg4[%c0_7, %c0_8], %10 {strides = array<i32>} : memref<256x128xf32, #tpu.memory_space<vmem>>, vector<256x128xf32>,
    return
  }
  func.func @transform_0(%arg0: i32) -> (i32, i32) {
    %c0_i32 = arith.constant 0 : i32
    %c0_i32_0 = arith.constant 0 : i32
    return %arg0, %c0_i32 : i32, i32
  }
  func.func @transform_1(%arg0: i32) -> (i32, i32) {
    %c0_i32 = arith.constant 0 : i32
    %c0_i32_0 = arith.constant 0 : i32
    %c0_i32_1 = arith.constant 0 : i32
    return %c0_i32, %c0_i32_0 : i32, i32
  }
  func.func @transform_2(%arg0: i32) -> (i32, i32) {
    %c0_i32 = arith.constant 0 : i32
    %c0_i32_0 = arith.constant 0 : i32
    %c0_i32_1 = arith.constant 0 : i32
    return %c0_i32, %c0_i32_0 : i32, i32
  }
  func.func @transform_3(%arg0: i32) -> (i32, i32) {
    %c0_i32 = arith.constant 0 : i32
    %c0_i32_0 = arith.constant 0 : i32
    return %arg0, %c0_i32 : i32, i32
  }
}

module attributes {stable_mosaic.version = 11 : i64} {
  func.func @_ws_matmul_kernel(%arg0: i32, %arg1: memref<256x288xbf16, #tpu.memory_space<vmem>>, %arg2: memref<288x128xbf16, #tpu.memory_space<vmem>>, %arg3: memref<1x128xf32, #tpu.memory_space<vmem>>, %arg4: memref<256x128xf32, #tpu.memory_space<vmem>>) attributes {dimension_semantics = [#tpu.dimension_semantics<parallel>], iteration_bounds = array<i64: 2>, scalar_prefetch = 0 : i64, scratch_operands = 0 : i64, tpu.core_type = #tpu.core_type<tc>, window_params = [{transform_indices = @transform_0, window_bounds = array<i64: 256, 288>}, {pipeline_mode = #tpu.pipeline_mode<synchronous>, transform_indices = @transform_1, window_bounds = array<i64: 288, 128>}, {pipeline_mode = #tpu.pipeline_mode<synchronous>, transform_indices = @transform_2, window_bounds = array<i64: 1, 128>}, {transform_indices = @transform_3, window_bounds = array<i64: 256, 128>}]} {
    %c0 = arith.constant 0 : index
    %c0_0 = arith.constant 0 : index
    %0 = vector.load %arg1[%c0, %c0_0] : memref<256x288xbf16, #tpu.memory_space<vmem>>, vector<256x288xbf16>
    %c0_1 = arith.constant 0 : index
    %c0_2 = arith.constant 0 : index
    %1 = vector.load %arg2[%c0_1, %c0_2] : memref<288x128xbf16, #tpu.memory_space<vmem>>, vector<288x128xbf16>
    %cst = arith.constant dense<0.000000e+00> : vector<256x128xf32>
    %2 = tpu.matmul %0, %1, %cst {dimension_numbers = #tpu.dot_dimension_numbers<[1], [0], [0], [1], [0, 0, 1, 1], [], []>} : vector<256x288xbf16>, vector<288x128xbf16>, vector<256x128xf32> -> vector<256x128xf32>
    %c0_3 = arith.constant 0 : index
    %c0_4 = arith.constant 0 : index
    %3 = vector.load %arg3[%c0_3, %c0_4] : memref<1x128xf32, #tpu.memory_space<vmem>>, vector<1x128xf32>
    %4 = vector.broadcast %3 : vector<1x128xf32> to vector<256x128xf32>
    %5 = arith.addf %2, %4 : vector<256x128xf32>
    %cst_5 = arith.constant 0.000000e+00 : f32
    %6 = vector.broadcast %cst_5 : f32 to vector<256x128xf32>
    %7 = arith.cmpf oge, %5, %6 : vector<256x128xf32>
    %cst_6 = arith.constant 2.000000e-01 : f32
    %8 = vector.broadcast %cst_6 : f32 to vector<256x128xf32>
    %9 = arith.mulf %8, %5 : vector<256x128xf32>
    %10 = arith.select %7, %5, %9 : vector<256x128xi1>, vector<256x128xf32>
    %c0_7 = arith.constant 0 : index
    %c0_8 = arith.constant 0 : index
    %11 = vector.load %arg4[%c0_7, %c0_8] : memref<256x128xf32, #tpu.memory_space<vmem>>, vector<256x128xf32>
    tpu.vector_store %arg4[%c0_7, %c0_8], %10 {strides = array<i32>} : memref<256x128xf32, #tpu.memory_space<vmem>>, vector<256x128xf32>,
    return
  }
  func.func @transform_0(%arg0: i32) -> (i32, i32) {
    %c0_i32 = arith.constant 0 : i32
    %c0_i32_0 = arith.constant 0 : i32
    return %arg0, %c0_i32 : i32, i32
  }
  func.func @transform_1(%arg0: i32) -> (i32, i32) {
    %c0_i32 = arith.constant 0 : i32
    %c0_i32_0 = arith.constant 0 : i32
    %c0_i32_1 = arith.constant 0 : i32
    return %c0_i32, %c0_i32_0 : i32, i32
  }
  func.func @transform_2(%arg0: i32) -> (i32, i32) {
    %c0_i32 = arith.constant 0 : i32
    %c0_i32_0 = arith.constant 0 : i32
    %c0_i32_1 = arith.constant 0 : i32
    return %c0_i32, %c0_i32_0 : i32, i32
  }
  func.func @transform_3(%arg0: i32) -> (i32, i32) {
    %c0_i32 = arith.constant 0 : i32
    %c0_i32_0 = arith.constant 0 : i32
    return %arg0, %c0_i32 : i32, i32
  }
}

module attributes {stable_mosaic.version = 11 : i64} {
  func.func @_avgpool_kernel(%arg0: memref<2x8x2x2x8x3xf32, #tpu.memory_space<vmem>>, %arg1: memref<2x8x8x3xf32, #tpu.memory_space<vmem>>) attributes {dimension_semantics = [], scalar_prefetch = 0 : i64, scratch_operands = 0 : i64, tpu.core_type = #tpu.core_type<tc>} {
    %c0 = arith.constant 0 : index
    %c0_0 = arith.constant 0 : index
    %c0_1 = arith.constant 0 : index
    %c0_2 = arith.constant 0 : index
    %c0_3 = arith.constant 0 : index
    %c0_4 = arith.constant 0 : index
    %0 = vector.load %arg0[%c0, %c0_0, %c0_1, %c0_2, %c0_3, %c0_4] : memref<2x8x2x2x8x3xf32, #tpu.memory_space<vmem>>, vector<2x8x1x1x8x3xf32>
    %1 = vector.shape_cast %0 : vector<2x8x1x1x8x3xf32> to vector<2x8x8x3xf32>
    %c0_5 = arith.constant 0 : index
    %c0_6 = arith.constant 0 : index
    %c0_7 = arith.constant 0 : index
    %c1 = arith.constant 1 : index
    %c0_8 = arith.constant 0 : index
    %c0_9 = arith.constant 0 : index
    %2 = vector.load %arg0[%c0_5, %c0_6, %c0_7, %c1, %c0_8, %c0_9] : memref<2x8x2x2x8x3xf32, #tpu.memory_space<vmem>>, vector<2x8x1x1x8x3xf32>
    %3 = vector.shape_cast %2 : vector<2x8x1x1x8x3xf32> to vector<2x8x8x3xf32>
    %4 = arith.addf %1, %3 : vector<2x8x8x3xf32>
    %c0_10 = arith.constant 0 : index
    %c0_11 = arith.constant 0 : index
    %c1_12 = arith.constant 1 : index
    %c0_13 = arith.constant 0 : index
    %c0_14 = arith.constant 0 : index
    %c0_15 = arith.constant 0 : index
    %5 = vector.load %arg0[%c0_10, %c0_11, %c1_12, %c0_13, %c0_14, %c0_15] : memref<2x8x2x2x8x3xf32, #tpu.memory_space<vmem>>, vector<2x8x1x1x8x3xf32>
    %6 = vector.shape_cast %5 : vector<2x8x1x1x8x3xf32> to vector<2x8x8x3xf32>
    %7 = arith.addf %4, %6 : vector<2x8x8x3xf32>
    %c0_16 = arith.constant 0 : index
    %c0_17 = arith.constant 0 : index
    %c1_18 = arith.constant 1 : index
    %c1_19 = arith.constant 1 : index
    %c0_20 = arith.constant 0 : index
    %c0_21 = arith.constant 0 : index
    %8 = vector.load %arg0[%c0_16, %c0_17, %c1_18, %c1_19, %c0_20, %c0_21] : memref<2x8x2x2x8x3xf32, #tpu.memory_space<vmem>>, vector<2x8x1x1x8x3xf32>
    %9 = vector.shape_cast %8 : vector<2x8x1x1x8x3xf32> to vector<2x8x8x3xf32>
    %10 = arith.addf %7, %9 : vector<2x8x8x3xf32>
    %cst = arith.constant 2.500000e-01 : f32
    %11 = vector.broadcast %cst : f32 to vector<2x8x8x3xf32>
    %12 = arith.mulf %10, %11 : vector<2x8x8x3xf32>
    %c0_22 = arith.constant 0 : index
    %c0_23 = arith.constant 0 : index
    %c0_24 = arith.constant 0 : index
    %c0_25 = arith.constant 0 : index
    %13 = vector.load %arg1[%c0_22, %c0_23, %c0_24, %c0_25] : memref<2x8x8x3xf32, #tpu.memory_space<vmem>>, vector<2x8x8x3xf32>
    tpu.vector_store %arg1[%c0_22, %c0_23, %c0_24, %c0_25], %12 {strides = array<i32>} : memref<2x8x8x3xf32, #tpu.memory_space<vmem>>, vector<2x8x8x3xf32>,
    return
  }
}

module attributes {stable_mosaic.version = 11 : i64} {
  func.func @_avgpool_fade_kernel(%arg0: memref<1xf32, #tpu.memory_space<smem>>, %arg1: memref<2x8x2x2x8x32xf32, #tpu.memory_space<vmem>>, %arg2: memref<2x8x8x32xf32, #tpu.memory_space<vmem>>, %arg3: memref<2x8x8x32xf32, #tpu.memory_space<vmem>>) attributes {dimension_semantics = [], scalar_prefetch = 0 : i64, scratch_operands = 0 : i64, tpu.core_type = #tpu.core_type<tc>} {
    %c0 = arith.constant 0 : index
    %0 = memref.load %arg0[%c0] : memref<1xf32, #tpu.memory_space<smem>>
    %c0_0 = arith.constant 0 : index
    %c0_1 = arith.constant 0 : index
    %c0_2 = arith.constant 0 : index
    %c0_3 = arith.constant 0 : index
    %c0_4 = arith.constant 0 : index
    %c0_5 = arith.constant 0 : index
    %1 = vector.load %arg1[%c0_0, %c0_1, %c0_2, %c0_3, %c0_4, %c0_5] : memref<2x8x2x2x8x32xf32, #tpu.memory_space<vmem>>, vector<2x8x1x1x8x32xf32>
    %2 = vector.shape_cast %1 : vector<2x8x1x1x8x32xf32> to vector<2x8x8x32xf32>
    %c0_6 = arith.constant 0 : index
    %c0_7 = arith.constant 0 : index
    %c0_8 = arith.constant 0 : index
    %c1 = arith.constant 1 : index
    %c0_9 = arith.constant 0 : index
    %c0_10 = arith.constant 0 : index
    %3 = vector.load %arg1[%c0_6, %c0_7, %c0_8, %c1, %c0_9, %c0_10] : memref<2x8x2x2x8x32xf32, #tpu.memory_space<vmem>>, vector<2x8x1x1x8x32xf32>
    %4 = vector.shape_cast %3 : vector<2x8x1x1x8x32xf32> to vector<2x8x8x32xf32>
    %5 = arith.addf %2, %4 : vector<2x8x8x32xf32>
    %c0_11 = arith.constant 0 : index
    %c0_12 = arith.constant 0 : index
    %c1_13 = arith.constant 1 : index
    %c0_14 = arith.constant 0 : index
    %c0_15 = arith.constant 0 : index
    %c0_16 = arith.constant 0 : index
    %6 = vector.load %arg1[%c0_11, %c0_12, %c1_13, %c0_14, %c0_15, %c0_16] : memref<2x8x2x2x8x32xf32, #tpu.memory_space<vmem>>, vector<2x8x1x1x8x32xf32>
    %7 = vector.shape_cast %6 : vector<2x8x1x1x8x32xf32> to vector<2x8x8x32xf32>
    %8 = arith.addf %5, %7 : vector<2x8x8x32xf32>
    %c0_17 = arith.constant 0 : index
    %c0_18 = arith.constant 0 : index
    %c1_19 = arith.constant 1 : index
    %c1_20 = arith.constant 1 : index
    %c0_21 = arith.constant 0 : index
    %c0_22 = arith.constant 0 : index
    %9 = vector.load %arg1[%c0_17, %c0_18, %c1_19, %c1_20, %c0_21, %c0_22] : memref<2x8x2x2x8x32xf32, #tpu.memory_space<vmem>>, vector<2x8x1x1x8x32xf32>
    %10 = vector.shape_cast %9 : vector<2x8x1x1x8x32xf32> to vector<2x8x8x32xf32>
    %11 = arith.addf %8, %10 : vector<2x8x8x32xf32>
    %cst = arith.constant 2.500000e-01 : f32
    %12 = vector.broadcast %cst : f32 to vector<2x8x8x32xf32>
    %13 = arith.mulf %11, %12 : vector<2x8x8x32xf32>
    %14 = vector.broadcast %0 : f32 to vector<2x8x8x32xf32>
    %15 = arith.mulf %14, %13 : vector<2x8x8x32xf32>
    %cst_23 = arith.constant 1.000000e+00 : f32
    %16 = arith.subf %cst_23, %0 : f32
    %c0_24 = arith.constant 0 : index
    %c0_25 = arith.constant 0 : index
    %c0_26 = arith.constant 0 : index
    %c0_27 = arith.constant 0 : index
    %17 = vector.load %arg2[%c0_24, %c0_25, %c0_26, %c0_27] : memref<2x8x8x32xf32, #tpu.memory_space<vmem>>, vector<2x8x8x32xf32>
    %18 = vector.broadcast %16 : f32 to vector<2x8x8x32xf32>
    %19 = arith.mulf %18, %17 : vector<2x8x8x32xf32>
    %20 = arith.addf %15, %19 : vector<2x8x8x32xf32>
    %c0_28 = arith.constant 0 : index
    %c0_29 = arith.constant 0 : index
    %c0_30 = arith.constant 0 : index
    %c0_31 = arith.constant 0 : index
    %21 = vector.load %arg3[%c0_28, %c0_29, %c0_30, %c0_31] : memref<2x8x8x32xf32, #tpu.memory_space<vmem>>, vector<2x8x8x32xf32>
    tpu.vector_store %arg3[%c0_28, %c0_29, %c0_30, %c0_31], %20 {strides = array<i32>} : memref<2x8x8x32xf32, #tpu.memory_space<vmem>>, vector<2x8x8x32xf32>,
    return
  }
}

module attributes {stable_mosaic.version = 11 : i64} {
  func.func @_ws_matmul_kernel(%arg0: i32, %arg1: memref<128x3xbf16, #tpu.memory_space<vmem>>, %arg2: memref<3x128xbf16, #tpu.memory_space<vmem>>, %arg3: memref<1x128xf32, #tpu.memory_space<vmem>>, %arg4: memref<128x128xf32, #tpu.memory_space<vmem>>) attributes {dimension_semantics = [#tpu.dimension_semantics<parallel>], iteration_bounds = array<i64: 1>, scalar_prefetch = 0 : i64, scratch_operands = 0 : i64, tpu.core_type = #tpu.core_type<tc>, window_params = [{transform_indices = @transform_0, window_bounds = array<i64: 128, 3>}, {pipeline_mode = #tpu.pipeline_mode<synchronous>, transform_indices = @transform_1, window_bounds = array<i64: 3, 128>}, {pipeline_mode = #tpu.pipeline_mode<synchronous>, transform_indices = @transform_2, window_bounds = array<i64: 1, 128>}, {transform_indices = @transform_3, window_bounds = array<i64: 128, 128>}]} {
    %c0 = arith.constant 0 : index
    %c0_0 = arith.constant 0 : index
    %0 = vector.load %arg1[%c0, %c0_0] : memref<128x3xbf16, #tpu.memory_space<vmem>>, vector<128x3xbf16>
    %c0_1 = arith.constant 0 : index
    %c0_2 = arith.constant 0 : index
    %1 = vector.load %arg2[%c0_1, %c0_2] : memref<3x128xbf16, #tpu.memory_space<vmem>>, vector<3x128xbf16>
    %cst = arith.constant dense<0.000000e+00> : vector<128x128xf32>
    %2 = tpu.matmul %0, %1, %cst {dimension_numbers = #tpu.dot_dimension_numbers<[1], [0], [0], [1], [0, 0, 1, 1], [], []>} : vector<128x3xbf16>, vector<3x128xbf16>, vector<128x128xf32> -> vector<128x128xf32>
    %c0_3 = arith.constant 0 : index
    %c0_4 = arith.constant 0 : index
    %3 = vector.load %arg3[%c0_3, %c0_4] : memref<1x128xf32, #tpu.memory_space<vmem>>, vector<1x128xf32>
    %4 = vector.broadcast %3 : vector<1x128xf32> to vector<128x128xf32>
    %5 = arith.addf %2, %4 : vector<128x128xf32>
    %cst_5 = arith.constant 0.000000e+00 : f32
    %6 = vector.broadcast %cst_5 : f32 to vector<128x128xf32>
    %7 = arith.cmpf oge, %5, %6 : vector<128x128xf32>
    %cst_6 = arith.constant 2.000000e-01 : f32
    %8 = vector.broadcast %cst_6 : f32 to vector<128x128xf32>
    %9 = arith.mulf %8, %5 : vector<128x128xf32>
    %10 = arith.select %7, %5, %9 : vector<128x128xi1>, vector<128x128xf32>
    %c0_7 = arith.constant 0 : index
    %c0_8 = arith.constant 0 : index
    %11 = vector.load %arg4[%c0_7, %c0_8] : memref<128x128xf32, #tpu.memory_space<vmem>>, vector<128x128xf32>
    tpu.vector_store %arg4[%c0_7, %c0_8], %10 {strides = array<i32>} : memref<128x128xf32, #tpu.memory_space<vmem>>, vector<128x128xf32>,
    return
  }
  func.func @transform_0(%arg0: i32) -> (i32, i32) {
    %c0_i32 = arith.constant 0 : i32
    %c0_i32_0 = arith.constant 0 : i32
    return %arg0, %c0_i32 : i32, i32
  }
  func.func @transform_1(%arg0: i32) -> (i32, i32) {
    %c0_i32 = arith.constant 0 : i32
    %c0_i32_0 = arith.constant 0 : i32
    %c0_i32_1 = arith.constant 0 : i32
    return %c0_i32, %c0_i32_0 : i32, i32
  }
  func.func @transform_2(%arg0: i32) -> (i32, i32) {
    %c0_i32 = arith.constant 0 : i32
    %c0_i32_0 = arith.constant 0 : i32
    %c0_i32_1 = arith.constant 0 : i32
    return %c0_i32, %c0_i32_0 : i32, i32
  }
  func.func @transform_3(%arg0: i32) -> (i32, i32) {
    %c0_i32 = arith.constant 0 : i32
    %c0_i32_0 = arith.constant 0 : i32
    return %arg0, %c0_i32 : i32, i32
  }
}

module attributes {stable_mosaic.version = 11 : i64} {
  func.func @_ws_matmul_kernel(%arg0: i32, %arg1: memref<128x288xbf16, #tpu.memory_space<vmem>>, %arg2: memref<288x128xbf16, #tpu.memory_space<vmem>>, %arg3: memref<1x128xf32, #tpu.memory_space<vmem>>, %arg4: memref<128x128xf32, #tpu.memory_space<vmem>>) attributes {dimension_semantics = [#tpu.dimension_semantics<parallel>], iteration_bounds = array<i64: 1>, scalar_prefetch = 0 : i64, scratch_operands = 0 : i64, tpu.core_type = #tpu.core_type<tc>, window_params = [{transform_indices = @transform_0, window_bounds = array<i64: 128, 288>}, {pipeline_mode = #tpu.pipeline_mode<synchronous>, transform_indices = @transform_1, window_bounds = array<i64: 288, 128>}, {pipeline_mode = #tpu.pipeline_mode<synchronous>, transform_indices = @transform_2, window_bounds = array<i64: 1, 128>}, {transform_indices = @transform_3, window_bounds = array<i64: 128, 128>}]} {
    %c0 = arith.constant 0 : index
    %c0_0 = arith.constant 0 : index
    %0 = vector.load %arg1[%c0, %c0_0] : memref<128x288xbf16, #tpu.memory_space<vmem>>, vector<128x288xbf16>
    %c0_1 = arith.constant 0 : index
    %c0_2 = arith.constant 0 : index
    %1 = vector.load %arg2[%c0_1, %c0_2] : memref<288x128xbf16, #tpu.memory_space<vmem>>, vector<288x128xbf16>
    %cst = arith.constant dense<0.000000e+00> : vector<128x128xf32>
    %2 = tpu.matmul %0, %1, %cst {dimension_numbers = #tpu.dot_dimension_numbers<[1], [0], [0], [1], [0, 0, 1, 1], [], []>} : vector<128x288xbf16>, vector<288x128xbf16>, vector<128x128xf32> -> vector<128x128xf32>
    %c0_3 = arith.constant 0 : index
    %c0_4 = arith.constant 0 : index
    %3 = vector.load %arg3[%c0_3, %c0_4] : memref<1x128xf32, #tpu.memory_space<vmem>>, vector<1x128xf32>
    %4 = vector.broadcast %3 : vector<1x128xf32> to vector<128x128xf32>
    %5 = arith.addf %2, %4 : vector<128x128xf32>
    %cst_5 = arith.constant 0.000000e+00 : f32
    %6 = vector.broadcast %cst_5 : f32 to vector<128x128xf32>
    %7 = arith.cmpf oge, %5, %6 : vector<128x128xf32>
    %cst_6 = arith.constant 2.000000e-01 : f32
    %8 = vector.broadcast %cst_6 : f32 to vector<128x128xf32>
    %9 = arith.mulf %8, %5 : vector<128x128xf32>
    %10 = arith.select %7, %5, %9 : vector<128x128xi1>, vector<128x128xf32>
    %c0_7 = arith.constant 0 : index
    %c0_8 = arith.constant 0 : index
    %11 = vector.load %arg4[%c0_7, %c0_8] : memref<128x128xf32, #tpu.memory_space<vmem>>, vector<128x128xf32>
    tpu.vector_store %arg4[%c0_7, %c0_8], %10 {strides = array<i32>} : memref<128x128xf32, #tpu.memory_space<vmem>>, vector<128x128xf32>,
    return
  }
  func.func @transform_0(%arg0: i32) -> (i32, i32) {
    %c0_i32 = arith.constant 0 : i32
    %c0_i32_0 = arith.constant 0 : i32
    return %arg0, %c0_i32 : i32, i32
  }
  func.func @transform_1(%arg0: i32) -> (i32, i32) {
    %c0_i32 = arith.constant 0 : i32
    %c0_i32_0 = arith.constant 0 : i32
    %c0_i32_1 = arith.constant 0 : i32
    return %c0_i32, %c0_i32_0 : i32, i32
  }
  func.func @transform_2(%arg0: i32) -> (i32, i32) {
    %c0_i32 = arith.constant 0 : i32
    %c0_i32_0 = arith.constant 0 : i32
    %c0_i32_1 = arith.constant 0 : i32
    return %c0_i32, %c0_i32_0 : i32, i32
  }
  func.func @transform_3(%arg0: i32) -> (i32, i32) {
    %c0_i32 = arith.constant 0 : i32
    %c0_i32_0 = arith.constant 0 : i32
    return %arg0, %c0_i32 : i32, i32
  }
}

module attributes {stable_mosaic.version = 11 : i64} {
  func.func @_avgpool_kernel(%arg0: memref<2x4x2x2x4x32xf32, #tpu.memory_space<vmem>>, %arg1: memref<2x4x4x32xf32, #tpu.memory_space<vmem>>) attributes {dimension_semantics = [], scalar_prefetch = 0 : i64, scratch_operands = 0 : i64, tpu.core_type = #tpu.core_type<tc>} {
    %c0 = arith.constant 0 : index
    %c0_0 = arith.constant 0 : index
    %c0_1 = arith.constant 0 : index
    %c0_2 = arith.constant 0 : index
    %c0_3 = arith.constant 0 : index
    %c0_4 = arith.constant 0 : index
    %0 = vector.load %arg0[%c0, %c0_0, %c0_1, %c0_2, %c0_3, %c0_4] : memref<2x4x2x2x4x32xf32, #tpu.memory_space<vmem>>, vector<2x4x1x1x4x32xf32>
    %1 = vector.shape_cast %0 : vector<2x4x1x1x4x32xf32> to vector<2x4x4x32xf32>
    %c0_5 = arith.constant 0 : index
    %c0_6 = arith.constant 0 : index
    %c0_7 = arith.constant 0 : index
    %c1 = arith.constant 1 : index
    %c0_8 = arith.constant 0 : index
    %c0_9 = arith.constant 0 : index
    %2 = vector.load %arg0[%c0_5, %c0_6, %c0_7, %c1, %c0_8, %c0_9] : memref<2x4x2x2x4x32xf32, #tpu.memory_space<vmem>>, vector<2x4x1x1x4x32xf32>
    %3 = vector.shape_cast %2 : vector<2x4x1x1x4x32xf32> to vector<2x4x4x32xf32>
    %4 = arith.addf %1, %3 : vector<2x4x4x32xf32>
    %c0_10 = arith.constant 0 : index
    %c0_11 = arith.constant 0 : index
    %c1_12 = arith.constant 1 : index
    %c0_13 = arith.constant 0 : index
    %c0_14 = arith.constant 0 : index
    %c0_15 = arith.constant 0 : index
    %5 = vector.load %arg0[%c0_10, %c0_11, %c1_12, %c0_13, %c0_14, %c0_15] : memref<2x4x2x2x4x32xf32, #tpu.memory_space<vmem>>, vector<2x4x1x1x4x32xf32>
    %6 = vector.shape_cast %5 : vector<2x4x1x1x4x32xf32> to vector<2x4x4x32xf32>
    %7 = arith.addf %4, %6 : vector<2x4x4x32xf32>
    %c0_16 = arith.constant 0 : index
    %c0_17 = arith.constant 0 : index
    %c1_18 = arith.constant 1 : index
    %c1_19 = arith.constant 1 : index
    %c0_20 = arith.constant 0 : index
    %c0_21 = arith.constant 0 : index
    %8 = vector.load %arg0[%c0_16, %c0_17, %c1_18, %c1_19, %c0_20, %c0_21] : memref<2x4x2x2x4x32xf32, #tpu.memory_space<vmem>>, vector<2x4x1x1x4x32xf32>
    %9 = vector.shape_cast %8 : vector<2x4x1x1x4x32xf32> to vector<2x4x4x32xf32>
    %10 = arith.addf %7, %9 : vector<2x4x4x32xf32>
    %cst = arith.constant 2.500000e-01 : f32
    %11 = vector.broadcast %cst : f32 to vector<2x4x4x32xf32>
    %12 = arith.mulf %10, %11 : vector<2x4x4x32xf32>
    %c0_22 = arith.constant 0 : index
    %c0_23 = arith.constant 0 : index
    %c0_24 = arith.constant 0 : index
    %c0_25 = arith.constant 0 : index
    %13 = vector.load %arg1[%c0_22, %c0_23, %c0_24, %c0_25] : memref<2x4x4x32xf32, #tpu.memory_space<vmem>>, vector<2x4x4x32xf32>
    tpu.vector_store %arg1[%c0_22, %c0_23, %c0_24, %c0_25], %12 {strides = array<i32>} : memref<2x4x4x32xf32, #tpu.memory_space<vmem>>, vector<2x4x4x32xf32>,
    return
  }
}

module attributes {stable_mosaic.version = 11 : i64} {
  func.func @_batch_std_kernel(%arg0: memref<2x4x4x32xf32, #tpu.memory_space<vmem>>, %arg1: memref<1x1xf32, #tpu.memory_space<vmem>>) attributes {dimension_semantics = [], scalar_prefetch = 0 : i64, scratch_operands = 0 : i64, tpu.core_type = #tpu.core_type<tc>} {
    %c0 = arith.constant 0 : index
    %c0_0 = arith.constant 0 : index
    %c0_1 = arith.constant 0 : index
    %c0_2 = arith.constant 0 : index
    %0 = vector.load %arg0[%c0, %c0_0, %c0_1, %c0_2] : memref<2x4x4x32xf32, #tpu.memory_space<vmem>>, vector<2x4x4x32xf32>
    %cst = arith.constant dense<0.000000e+00> : vector<4x4x32xf32>
    %1 = vector.multi_reduction <add>, %0, %cst [0] : vector<2x4x4x32xf32> to vector<4x4x32xf32>
    %2 = vector.shape_cast %1 : vector<4x4x32xf32> to vector<1x4x4x32xf32>
    %cst_3 = arith.constant 2.000000e+00 : f32
    %3 = vector.broadcast %cst_3 : f32 to vector<1x4x4x32xf32>
    %4 = arith.divf %2, %3 : vector<1x4x4x32xf32>
    %5 = vector.broadcast %4 : vector<1x4x4x32xf32> to vector<2x4x4x32xf32>
    %6 = arith.subf %0, %5 : vector<2x4x4x32xf32>
    %7 = arith.mulf %6, %6 : vector<2x4x4x32xf32>
    %cst_4 = arith.constant dense<0.000000e+00> : vector<4x4x32xf32>
    %8 = vector.multi_reduction <add>, %7, %cst_4 [0] : vector<2x4x4x32xf32> to vector<4x4x32xf32>
    %cst_5 = arith.constant 1.000000e+00 : f32
    %9 = vector.broadcast %cst_5 : f32 to vector<4x4x32xf32>
    %10 = arith.divf %8, %9 : vector<4x4x32xf32>
    %11 = math.sqrt %10 : vector<4x4x32xf32>
    %12 = vector.shape_cast %11 : vector<4x4x32xf32> to vector<1x4x4x32xf32>
    %cst_6 = arith.constant dense<0.000000e+00> : vector<1xf32>
    %13 = vector.multi_reduction <add>, %12, %cst_6 [1, 2, 3] : vector<1x4x4x32xf32> to vector<1xf32>
    %14 = vector.shape_cast %13 : vector<1xf32> to vector<1x1x1x1xf32>
    %15 = vector.extract %14[0, 0, 0, 0] : f32 from vector<1x1x1x1xf32>
    %cst_7 = arith.constant 5.120000e+02 : f32
    %16 = arith.divf %15, %cst_7 : f32
    %17 = vector.broadcast %16 : f32 to vector<1x1xf32>
    %c0_8 = arith.constant 0 : index
    %c0_9 = arith.constant 0 : index
    %18 = vector.load %arg1[%c0_8, %c0_9] : memref<1x1xf32, #tpu.memory_space<vmem>>, vector<1x1xf32>
    tpu.vector_store %arg1[%c0_8, %c0_9], %17 {strides = array<i32>} : memref<1x1xf32, #tpu.memory_space<vmem>>, vector<1x1xf32>,
    return
  }
}

module attributes {stable_mosaic.version = 11 : i64} {
  func.func @_ws_matmul_kernel(%arg0: i32, %arg1: memref<32x297xbf16, #tpu.memory_space<vmem>>, %arg2: memref<297x128xbf16, #tpu.memory_space<vmem>>, %arg3: memref<1x128xf32, #tpu.memory_space<vmem>>, %arg4: memref<32x128xf32, #tpu.memory_space<vmem>>) attributes {dimension_semantics = [#tpu.dimension_semantics<parallel>], iteration_bounds = array<i64: 1>, scalar_prefetch = 0 : i64, scratch_operands = 0 : i64, tpu.core_type = #tpu.core_type<tc>, window_params = [{transform_indices = @transform_0, window_bounds = array<i64: 32, 297>}, {pipeline_mode = #tpu.pipeline_mode<synchronous>, transform_indices = @transform_1, window_bounds = array<i64: 297, 128>}, {pipeline_mode = #tpu.pipeline_mode<synchronous>, transform_indices = @transform_2, window_bounds = array<i64: 1, 128>}, {transform_indices = @transform_3, window_bounds = array<i64: 32, 128>}]} {
    %c0 = arith.constant 0 : index
    %c0_0 = arith.constant 0 : index
    %0 = vector.load %arg1[%c0, %c0_0] : memref<32x297xbf16, #tpu.memory_space<vmem>>, vector<32x297xbf16>
    %c0_1 = arith.constant 0 : index
    %c0_2 = arith.constant 0 : index
    %1 = vector.load %arg2[%c0_1, %c0_2] : memref<297x128xbf16, #tpu.memory_space<vmem>>, vector<297x128xbf16>
    %cst = arith.constant dense<0.000000e+00> : vector<32x128xf32>
    %2 = tpu.matmul %0, %1, %cst {dimension_numbers = #tpu.dot_dimension_numbers<[1], [0], [0], [1], [0, 0, 1, 1], [], []>} : vector<32x297xbf16>, vector<297x128xbf16>, vector<32x128xf32> -> vector<32x128xf32>
    %c0_3 = arith.constant 0 : index
    %c0_4 = arith.constant 0 : index
    %3 = vector.load %arg3[%c0_3, %c0_4] : memref<1x128xf32, #tpu.memory_space<vmem>>, vector<1x128xf32>
    %4 = vector.broadcast %3 : vector<1x128xf32> to vector<32x128xf32>
    %5 = arith.addf %2, %4 : vector<32x128xf32>
    %cst_5 = arith.constant 0.000000e+00 : f32
    %6 = vector.broadcast %cst_5 : f32 to vector<32x128xf32>
    %7 = arith.cmpf oge, %5, %6 : vector<32x128xf32>
    %cst_6 = arith.constant 2.000000e-01 : f32
    %8 = vector.broadcast %cst_6 : f32 to vector<32x128xf32>
    %9 = arith.mulf %8, %5 : vector<32x128xf32>
    %10 = arith.select %7, %5, %9 : vector<32x128xi1>, vector<32x128xf32>
    %c0_7 = arith.constant 0 : index
    %c0_8 = arith.constant 0 : index
    %11 = vector.load %arg4[%c0_7, %c0_8] : memref<32x128xf32, #tpu.memory_space<vmem>>, vector<32x128xf32>
    tpu.vector_store %arg4[%c0_7, %c0_8], %10 {strides = array<i32>} : memref<32x128xf32, #tpu.memory_space<vmem>>, vector<32x128xf32>,
    return
  }
  func.func @transform_0(%arg0: i32) -> (i32, i32) {
    %c0_i32 = arith.constant 0 : i32
    %c0_i32_0 = arith.constant 0 : i32
    return %arg0, %c0_i32 : i32, i32
  }
  func.func @transform_1(%arg0: i32) -> (i32, i32) {
    %c0_i32 = arith.constant 0 : i32
    %c0_i32_0 = arith.constant 0 : i32
    %c0_i32_1 = arith.constant 0 : i32
    return %c0_i32, %c0_i32_0 : i32, i32
  }
  func.func @transform_2(%arg0: i32) -> (i32, i32) {
    %c0_i32 = arith.constant 0 : i32
    %c0_i32_0 = arith.constant 0 : i32
    %c0_i32_1 = arith.constant 0 : i32
    return %c0_i32, %c0_i32_0 : i32, i32
  }
  func.func @transform_3(%arg0: i32) -> (i32, i32) {
    %c0_i32 = arith.constant 0 : i32
    %c0_i32_0 = arith.constant 0 : i32
    return %arg0, %c0_i32 : i32, i32
  }
}

module attributes {stable_mosaic.version = 11 : i64} {
  func.func @_final_head_kernel(%arg0: memref<2x512xbf16, #tpu.memory_space<vmem>>, %arg1: memref<512x128xbf16, #tpu.memory_space<vmem>>, %arg2: memref<1x128xf32, #tpu.memory_space<vmem>>, %arg3: memref<128x128xbf16, #tpu.memory_space<vmem>>, %arg4: memref<1x128xf32, #tpu.memory_space<vmem>>, %arg5: memref<2x128xf32, #tpu.memory_space<vmem>>) attributes {dimension_semantics = [], scalar_prefetch = 0 : i64, scratch_operands = 0 : i64, tpu.core_type = #tpu.core_type<tc>} {
    %c0 = arith.constant 0 : index
    %c0_0 = arith.constant 0 : index
    %0 = vector.load %arg0[%c0, %c0_0] : memref<2x512xbf16, #tpu.memory_space<vmem>>, vector<2x512xbf16>
    %c0_1 = arith.constant 0 : index
    %c0_2 = arith.constant 0 : index
    %1 = vector.load %arg1[%c0_1, %c0_2] : memref<512x128xbf16, #tpu.memory_space<vmem>>, vector<512x128xbf16>
    %cst = arith.constant dense<0.000000e+00> : vector<2x128xf32>
    %2 = tpu.matmul %0, %1, %cst {dimension_numbers = #tpu.dot_dimension_numbers<[1], [0], [0], [1], [0, 0, 1, 1], [], []>} : vector<2x512xbf16>, vector<512x128xbf16>, vector<2x128xf32> -> vector<2x128xf32>
    %c0_3 = arith.constant 0 : index
    %c0_4 = arith.constant 0 : index
    %3 = vector.load %arg2[%c0_3, %c0_4] : memref<1x128xf32, #tpu.memory_space<vmem>>, vector<1x128xf32>
    %4 = vector.broadcast %3 : vector<1x128xf32> to vector<2x128xf32>
    %5 = arith.addf %2, %4 : vector<2x128xf32>
    %cst_5 = arith.constant 0.000000e+00 : f32
    %6 = vector.broadcast %cst_5 : f32 to vector<2x128xf32>
    %7 = arith.cmpf oge, %5, %6 : vector<2x128xf32>
    %cst_6 = arith.constant 2.000000e-01 : f32
    %8 = vector.broadcast %cst_6 : f32 to vector<2x128xf32>
    %9 = arith.mulf %8, %5 : vector<2x128xf32>
    %10 = arith.select %7, %5, %9 : vector<2x128xi1>, vector<2x128xf32>
    %11 = arith.truncf %10 : vector<2x128xf32> to vector<2x128xbf16>
    %c0_7 = arith.constant 0 : index
    %c0_8 = arith.constant 0 : index
    %12 = vector.load %arg3[%c0_7, %c0_8] : memref<128x128xbf16, #tpu.memory_space<vmem>>, vector<128x128xbf16>
    %cst_9 = arith.constant dense<0.000000e+00> : vector<2x128xf32>
    %13 = tpu.matmul %11, %12, %cst_9 {dimension_numbers = #tpu.dot_dimension_numbers<[1], [0], [0], [1], [0, 0, 1, 1], [], []>} : vector<2x128xbf16>, vector<128x128xbf16>, vector<2x128xf32> -> vector<2x128xf32>
    %c0_10 = arith.constant 0 : index
    %c0_11 = arith.constant 0 : index
    %14 = vector.load %arg4[%c0_10, %c0_11] : memref<1x128xf32, #tpu.memory_space<vmem>>, vector<1x128xf32>
    %15 = vector.broadcast %14 : vector<1x128xf32> to vector<2x128xf32>
    %16 = arith.addf %13, %15 : vector<2x128xf32>
    %c0_12 = arith.constant 0 : index
    %c0_13 = arith.constant 0 : index
    %17 = vector.load %arg5[%c0_12, %c0_13] : memref<2x128xf32, #tpu.memory_space<vmem>>, vector<2x128xf32>
    tpu.vector_store %arg5[%c0_12, %c0_13], %16 {strides = array<i32>} : memref<2x128xf32, #tpu.memory_space<vmem>>, vector<2x128xf32>,
    return
  }
}

</mosaic_0001>

<bundles_post_ra>
// kernel: discriminator_forward.12
= control target key start
LH: loop header
LB: loop body
LE: loop exit
PB: predicated region body
PF: predicated region fallthrough
CT: control target
= control target key end

     0   :  { %s847_s12 = smov 0   ;;  %s976_s0 = inlined_call_operand.vmem [shape: bf16[512,3], index: 0, kind: input, shape index: {}]   ;;  %s977_s1 = inlined_call_operand.vmem [shape: bf16[3,128], index: 1, kind: input, shape index: {}]   ;;  %s978_s2 = inlined_call_operand.vmem [shape: f32[1,128], index: 2, kind: input, shape index: {}]   ;;  %s979_s3 = inlined_call_operand.vmem [shape: f32[512,128], index: 3, kind: output, shape index: {}]  }
   0x1 LB: > { %s696_s13 = sadd.s32 4294967295, %s824_s12   ;;  %p700_p0 = scmp.ge.s32.totalorder %s824_s12, 1  ;;  %s824_s12 = sphi %s847_s12, %s13_s12  }
   0x2   : > { %p138_p1 = scmp.lt.s32.totalorder %s824_s12, 3 }
   0x4   : > { %p139_p2 = pnand %p700_p0, %p138_p1 }
   0x5   : > { %s701_s16 = sshll.u32 (!%p139_p2), %s696_s13, 5 }
   0x6   : > { %142 = sbr.rel (%p139_p2) target bundleno = 250 (0xfa), region = 32  ;;  %p163_p3 = scmp.lt.s32.totalorder (!%p139_p2), %s701_s16, 63 }
   0xb   : > { %v207_v0 = vld [vmem:[%s977_s1] sm:$0x3]  ;;  %vm344_vm0 = vcmask 1040384   ;;  %vm345_vm1 = vcmask 1041408   ;;  %v826_v1 = vmov 65535   ;;  %s981_s16 = smov (!%p163_p3, %s701_s16), 63 }
   0xc   : > { %v346_v2 = vsel %vm344_vm0, 4294967295, %v826_v1  ;;  %s702_s17 = sshll.u32 %s981_s16, 2  ;;  %vm295_vm2 = vcmask 23552   ;;  %v901_v21 = vld [vmem:[%s978_s2] ss:$0 sm:$0xff]  ;;  %s704_s23 = sshll.u32 %s981_s16, 3 }
   0xd   : > { %v347_v3 = vsel %vm345_vm1, %v346_v2, 0  ;;  %s864_s20 = scalar_lea.vmem %s976_s0, %s702_s17  ;;  %s909_s26 = scalar_lea.vmem %s979_s3, %s704_s23 }
   0xe   : > { %v349_v4 = vand.u32 %v347_v3, %v207_v0  ;;  %v802_v5 = vld [vmem:[%s864_s20] sm:$0xff]   ;;  %v804_v7 = vld [vmem:[%s864_s20 + $0x8] sm:$0xff]   ;;  %v806_v9 = vld [vmem:[%s864_s20 + $0x10] sm:$0xff]  }
   0xf   : > { %v803_v6 = vld [vmem:[%s864_s20 + $0x40] sm:$0xff]   ;;  %759 = vmatprep.mubr.msk.bf16.mxu0 %vm295_vm2, %v802_v5  ;;  %v805_v8 = vld [vmem:[%s864_s20 + $0x48] sm:$0xff]   ;;  %v807_v10 = vld [vmem:[%s864_s20 + $0x50] sm:$0xff]  }
  0x10   : > { %757 = vmatprep.subr.bf16.mxu0 %v349_v4  ;;  %791 = vmatprep.subr.bf16.mxu1 %v349_v4  ;;  %v808_v11 = vld [vmem:[%s864_s20 + $0x18] sm:$0xff]   ;;  %v810_v13 = vld [vmem:[%s864_s20 + $0x20] sm:$0xff]   ;;  %v812_v15 = vld [vmem:[%s864_s20 + $0x28] sm:$0xff]  }
  0x11   : > { %758 = vmatpush3.bf16.msra.mxu0 %v349_v4  ;;  %792 = vmatpush3.bf16.msra.mxu1 %v349_v4  ;;  %v809_v12 = vld [vmem:[%s864_s20 + $0x58] sm:$0xff]   ;;  %v811_v14 = vld [vmem:[%s864_s20 + $0x60] sm:$0xff]   ;;  %v813_v16 = vld [vmem:[%s864_s20 + $0x68] sm:$0xff]  }
  0x12   : > { %775 = vmatprep.mubr.msk.bf16.mxu1 %vm295_vm2, %v803_v6  ;;  %v814_v17 = vld [vmem:[%s864_s20 + $0x30] sm:$0xff]   ;;  %v816_v19 = vld [vmem:[%s864_s20 + $0x38] sm:$0xff]  }
  0x13   : > { %v815_v18 = vld [vmem:[%s864_s20 + $0x70] sm:$0xff]   ;;  %v817_v20 = vld [vmem:[%s864_s20 + $0x78] sm:$0xff]  }
  0x14   : > { %760 = vmatmul.mubr.msk.bf16.vlgmr.msra.gmra.mxu0 %vm295_vm2, %v804_v7  ;;  %776 = vmatmul.mubr.msk.bf16.vlgmr.msra.gmra.mxu1 %vm295_vm2, %v805_v8 }
  0x15   : > { %763 = vmatprep.mubr.msk.bf16.mxu0 %vm295_vm2, %v806_v9  ;;  %779 = vmatprep.mubr.msk.bf16.mxu1 %vm295_vm2, %v807_v10 }
  0x1c   : > { %764 = vmatmul.mubr.msk.bf16.gmra.mxu0 %vm295_vm2, %v808_v11  ;;  %780 = vmatmul.mubr.msk.bf16.gmra.mxu1 %vm295_vm2, %v809_v12 }
  0x1d   : > { %767 = vmatprep.mubr.msk.bf16.mxu0 %vm295_vm2, %v810_v13  ;;  %783 = vmatprep.mubr.msk.bf16.mxu1 %vm295_vm2, %v811_v14 }
  0x24   : > { %768 = vmatmul.mubr.msk.bf16.gmra.mxu0 %vm295_vm2, %v812_v15  ;;  %784 = vmatmul.mubr.msk.bf16.gmra.mxu1 %vm295_vm2, %v813_v16 }
  0x25   : > { %771 = vmatprep.mubr.msk.bf16.mxu0 %vm295_vm2, %v814_v17  ;;  %787 = vmatprep.mubr.msk.bf16.mxu1 %vm295_vm2, %v815_v18 }
  0x2c   : > { %772 = vmatmul.mubr.msk.bf16.gmra.mxu0 %vm295_vm2, %v816_v19  ;;  %788 = vmatmul.mubr.msk.bf16.gmra.mxu1 %vm295_vm2, %v817_v20 }
  0xd4   : > { %v761_v22 = vpop.f32.mrf.mxu0  ;;  %v777_v24 = vpop.f32.mrf.mxu1 }
  0xd5   : > { %v394_v23 = vadd.f32 %v761_v22, %v901_v21  ;;  %v458_v25 = vadd.f32 %v777_v24, %v901_v21 }
  0xd6   : > { %v385_v26 = vpop.f32.mrf.mxu0  ;;  %v449_v29 = vpop.f32.mrf.mxu1 }
  0xd7   : > { %vm514_vm3 = vcmp.ge.f32.partialorder %v394_v23, 0.0  ;;  %v546_v27 = vmul.f32 0.2, %v394_v23  ;;  %v386_v28 = vadd.f32 %v901_v21, %v385_v26  ;;  %vm530_vm4 = vcmp.ge.f32.partialorder %v458_v25, 0.0 }
  0xd8   : > { %v562_v30 = vmul.f32 0.2, %v458_v25  ;;  %v450_v31 = vadd.f32 %v901_v21, %v449_v29  ;;  %v762_v32 = vpop.f32.mrf.mxu0  ;;  %v778_v36 = vpop.f32.mrf.mxu1 }
  0xd9   : > { %v578_v33 = vsel %vm514_vm3, %v394_v23, %v546_v27  ;;  %vm512_vm5 = vcmp.ge.f32.partialorder %v386_v28, 0.0  ;;  %v544_v34 = vmul.f32 0.2, %v386_v28  ;;  %v397_v35 = vadd.f32 %v762_v32, %v901_v21 }
  0xda   : > { %610 = vst [vmem:[%s909_s26 + $0x10] sm:$0xff] %v578_v33  ;;  %v594_v37 = vsel %vm530_vm4, %v458_v25, %v562_v30  ;;  %vm528_vm6 = vcmp.ge.f32.partialorder %v450_v31, 0.0  ;;  %v560_v38 = vmul.f32 0.2, %v450_v31  ;;  %v461_v39 = vadd.f32 %v778_v36, %v901_v21  ;;  %v388_v40 = vpop.f32.mrf.mxu0  ;;  %v452_v44 = vpop.f32.mrf.mxu1 }
  0xdb   : > { %626 = vst [vmem:[%s909_s26 + $0x90] sm:$0xff] %v594_v37  ;;  %v576_v41 = vsel %vm512_vm5, %v386_v28, %v544_v34  ;;  %vm515_vm7 = vcmp.ge.f32.partialorder %v397_v35, 0.0  ;;  %v547_v42 = vmul.f32 0.2, %v397_v35  ;;  %v389_v43 = vadd.f32 %v901_v21, %v388_v40 }
  0xdc   : > { %608 = vst [vmem:[%s909_s26] sm:$0xff] %v576_v41  ;;  %v592_v45 = vsel %vm528_vm6, %v450_v31, %v560_v38  ;;  %vm531_vm8 = vcmp.ge.f32.partialorder %v461_v39, 0.0  ;;  %v563_v46 = vmul.f32 0.2, %v461_v39  ;;  %v453_v47 = vadd.f32 %v901_v21, %v452_v44  ;;  %v765_v48 = vpop.f32.mrf.mxu0  ;;  %v781_v52 = vpop.f32.mrf.mxu1 }
  0xdd   : > { %624 = vst [vmem:[%s909_s26 + $0x80] sm:$0xff] %v592_v45  ;;  %v579_v49 = vsel %vm515_vm7, %v397_v35, %v547_v42  ;;  %vm513_vm9 = vcmp.ge.f32.partialorder %v389_v43, 0.0  ;;  %v545_v50 = vmul.f32 0.2, %v389_v43  ;;  %v410_v51 = vadd.f32 %v765_v48, %v901_v21 }
  0xde   : > { %611 = vst [vmem:[%s909_s26 + $0x18] sm:$0xff] %v579_v49  ;;  %v595_v53 = vsel %vm531_vm8, %v461_v39, %v563_v46  ;;  %vm529_vm10 = vcmp.ge.f32.partialorder %v453_v47, 0.0  ;;  %v561_v54 = vmul.f32 0.2, %v453_v47  ;;  %v474_v55 = vadd.f32 %v781_v52, %v901_v21  ;;  %v401_v56 = vpop.f32.mrf.mxu0  ;;  %v465_v60 = vpop.f32.mrf.mxu1 }
  0xdf   : > { %627 = vst [vmem:[%s909_s26 + $0x98] sm:$0xff] %v595_v53  ;;  %v577_v57 = vsel %vm513_vm9, %v389_v43, %v545_v50  ;;  %vm518_vm11 = vcmp.ge.f32.partialorder %v410_v51, 0.0  ;;  %v550_v58 = vmul.f32 0.2, %v410_v51  ;;  %v402_v59 = vadd.f32 %v901_v21, %v401_v56 }
  0xe0   : > { %609 = vst [vmem:[%s909_s26 + $0x8] sm:$0xff] %v577_v57  ;;  %v593_v61 = vsel %vm529_vm10, %v453_v47, %v561_v54  ;;  %vm534_vm12 = vcmp.ge.f32.partialorder %v474_v55, 0.0  ;;  %v566_v62 = vmul.f32 0.2, %v474_v55  ;;  %v466_v63 = vadd.f32 %v901_v21, %v465_v60  ;;  %v766_v0 = vpop.f32.mrf.mxu0  ;;  %v782_v4 = vpop.f32.mrf.mxu1 }
  0xe1   : > { %625 = vst [vmem:[%s909_s26 + $0x88] sm:$0xff] %v593_v61  ;;  %v582_v1 = vsel %vm518_vm11, %v410_v51, %v550_v58  ;;  %vm516_vm13 = vcmp.ge.f32.partialorder %v402_v59, 0.0  ;;  %v548_v2 = vmul.f32 0.2, %v402_v59  ;;  %v413_v3 = vadd.f32 %v766_v0, %v901_v21 }
  0xe2   : > { %614 = vst [vmem:[%s909_s26 + $0x30] sm:$0xff] %v582_v1  ;;  %v598_v5 = vsel %vm534_vm12, %v474_v55, %v566_v62  ;;  %vm532_vm14 = vcmp.ge.f32.partialorder %v466_v63, 0.0  ;;  %v564_v6 = vmul.f32 0.2, %v466_v63  ;;  %v477_v7 = vadd.f32 %v782_v4, %v901_v21  ;;  %v404_v8 = vpop.f32.mrf.mxu0  ;;  %v468_v12 = vpop.f32.mrf.mxu1 }
  0xe3   : > { %630 = vst [vmem:[%s909_s26 + $0xb0] sm:$0xff] %v598_v5  ;;  %v580_v9 = vsel %vm516_vm13, %v402_v59, %v548_v2  ;;  %vm519_vm15 = vcmp.ge.f32.partialorder %v413_v3, 0.0  ;;  %v551_v10 = vmul.f32 0.2, %v413_v3  ;;  %v405_v11 = vadd.f32 %v901_v21, %v404_v8 }
  0xe4   : > { %612 = vst [vmem:[%s909_s26 + $0x20] sm:$0xff] %v580_v9  ;;  %v596_v13 = vsel %vm532_vm14, %v466_v63, %v564_v6  ;;  %vm535_vm0 = vcmp.ge.f32.partialorder %v477_v7, 0.0  ;;  %v567_v14 = vmul.f32 0.2, %v477_v7  ;;  %v469_v15 = vadd.f32 %v901_v21, %v468_v12  ;;  %v769_v16 = vpop.f32.mrf.mxu0  ;;  %v785_v20 = vpop.f32.mrf.mxu1 }
  0xe5   : > { %628 = vst [vmem:[%s909_s26 + $0xa0] sm:$0xff] %v596_v13  ;;  %v583_v17 = vsel %vm519_vm15, %v413_v3, %v551_v10  ;;  %vm517_vm1 = vcmp.ge.f32.partialorder %v405_v11, 0.0  ;;  %v549_v18 = vmul.f32 0.2, %v405_v11  ;;  %v426_v19 = vadd.f32 %v769_v16, %v901_v21 }
  0xe6   : > { %615 = vst [vmem:[%s909_s26 + $0x38] sm:$0xff] %v583_v17  ;;  %v599_v22 = vsel %vm535_vm0, %v477_v7, %v567_v14  ;;  %vm533_vm2 = vcmp.ge.f32.partialorder %v469_v15, 0.0  ;;  %v565_v23 = vmul.f32 0.2, %v469_v15  ;;  %v490_v24 = vadd.f32 %v785_v20, %v901_v21  ;;  %v417_v25 = vpop.f32.mrf.mxu0  ;;  %v481_v29 = vpop.f32.mrf.mxu1 }
  0xe7   : > { %631 = vst [vmem:[%s909_s26 + $0xb8] sm:$0xff] %v599_v22  ;;  %v581_v26 = vsel %vm517_vm1, %v405_v11, %v549_v18  ;;  %vm522_vm3 = vcmp.ge.f32.partialorder %v426_v19, 0.0  ;;  %v554_v27 = vmul.f32 0.2, %v426_v19  ;;  %v418_v28 = vadd.f32 %v901_v21, %v417_v25 }
  0xe8   : > { %613 = vst [vmem:[%s909_s26 + $0x28] sm:$0xff] %v581_v26  ;;  %v597_v30 = vsel %vm533_vm2, %v469_v15, %v565_v23  ;;  %vm538_vm4 = vcmp.ge.f32.partialorder %v490_v24, 0.0  ;;  %v570_v31 = vmul.f32 0.2, %v490_v24  ;;  %v482_v32 = vadd.f32 %v901_v21, %v481_v29  ;;  %v770_v33 = vpop.f32.mrf.mxu0  ;;  %v786_v37 = vpop.f32.mrf.mxu1 }
  0xe9   : > { %629 = vst [vmem:[%s909_s26 + $0xa8] sm:$0xff] %v597_v30  ;;  %v586_v34 = vsel %vm522_vm3, %v426_v19, %v554_v27  ;;  %vm520_vm5 = vcmp.ge.f32.partialorder %v418_v28, 0.0  ;;  %v552_v35 = vmul.f32 0.2, %v418_v28  ;;  %v429_v36 = vadd.f32 %v770_v33, %v901_v21 }
  0xea   : > { %618 = vst [vmem:[%s909_s26 + $0x50] sm:$0xff] %v586_v34  ;;  %v602_v38 = vsel %vm538_vm4, %v490_v24, %v570_v31  ;;  %vm536_vm6 = vcmp.ge.f32.partialorder %v482_v32, 0.0  ;;  %v568_v39 = vmul.f32 0.2, %v482_v32  ;;  %v493_v40 = vadd.f32 %v786_v37, %v901_v21  ;;  %v420_v41 = vpop.f32.mrf.mxu0  ;;  %v484_v45 = vpop.f32.mrf.mxu1 }
  0xeb   : > { %634 = vst [vmem:[%s909_s26 + $0xd0] sm:$0xff] %v602_v38  ;;  %v584_v42 = vsel %vm520_vm5, %v418_v28, %v552_v35  ;;  %vm523_vm7 = vcmp.ge.f32.partialorder %v429_v36, 0.0  ;;  %v555_v43 = vmul.f32 0.2, %v429_v36  ;;  %v421_v44 = vadd.f32 %v901_v21, %v420_v41 }
  0xec   : > { %616 = vst [vmem:[%s909_s26 + $0x40] sm:$0xff] %v584_v42  ;;  %v600_v46 = vsel %vm536_vm6, %v482_v32, %v568_v39  ;;  %vm539_vm8 = vcmp.ge.f32.partialorder %v493_v40, 0.0  ;;  %v571_v47 = vmul.f32 0.2, %v493_v40  ;;  %v485_v48 = vadd.f32 %v901_v21, %v484_v45  ;;  %v773_v49 = vpop.f32.mrf.mxu0  ;;  %v789_v53 = vpop.f32.mrf.mxu1 }
  0xed   : > { %632 = vst [vmem:[%s909_s26 + $0xc0] sm:$0xff] %v600_v46  ;;  %v587_v50 = vsel %vm523_vm7, %v429_v36, %v555_v43  ;;  %vm521_vm9 = vcmp.ge.f32.partialorder %v421_v44, 0.0  ;;  %v553_v51 = vmul.f32 0.2, %v421_v44  ;;  %v442_v52 = vadd.f32 %v773_v49, %v901_v21 }
  0xee   : > { %619 = vst [vmem:[%s909_s26 + $0x58] sm:$0xff] %v587_v50  ;;  %v603_v54 = vsel %vm539_vm8, %v493_v40, %v571_v47  ;;  %vm537_vm10 = vcmp.ge.f32.partialorder %v485_v48, 0.0  ;;  %v569_v55 = vmul.f32 0.2, %v485_v48  ;;  %v506_v56 = vadd.f32 %v789_v53, %v901_v21  ;;  %v433_v57 = vpop.f32.mrf.mxu0  ;;  %v497_v61 = vpop.f32.mrf.mxu1 }
  0xef   : > { %635 = vst [vmem:[%s909_s26 + $0xd8] sm:$0xff] %v603_v54  ;;  %v585_v58 = vsel %vm521_vm9, %v421_v44, %v553_v51  ;;  %vm526_vm11 = vcmp.ge.f32.partialorder %v442_v52, 0.0  ;;  %v558_v59 = vmul.f32 0.2, %v442_v52  ;;  %v434_v60 = vadd.f32 %v901_v21, %v433_v57 }
  0xf0   : > { %617 = vst [vmem:[%s909_s26 + $0x48] sm:$0xff] %v585_v58  ;;  %v601_v62 = vsel %vm537_vm10, %v485_v48, %v569_v55  ;;  %vm542_vm12 = vcmp.ge.f32.partialorder %v506_v56, 0.0  ;;  %v574_v63 = vmul.f32 0.2, %v506_v56  ;;  %v498_v0 = vadd.f32 %v901_v21, %v497_v61  ;;  %v774_v1 = vpop.f32.mrf.mxu0  ;;  %v790_v5 = vpop.f32.mrf.mxu1 }
  0xf1   : > { %633 = vst [vmem:[%s909_s26 + $0xc8] sm:$0xff] %v601_v62  ;;  %v590_v2 = vsel %vm526_vm11, %v442_v52, %v558_v59  ;;  %vm524_vm13 = vcmp.ge.f32.partialorder %v434_v60, 0.0  ;;  %v556_v3 = vmul.f32 0.2, %v434_v60  ;;  %v445_v4 = vadd.f32 %v774_v1, %v901_v21 }
  0xf2   : > { %622 = vst [vmem:[%s909_s26 + $0x70] sm:$0xff] %v590_v2  ;;  %v606_v6 = vsel %vm542_vm12, %v506_v56, %v574_v63  ;;  %vm540_vm14 = vcmp.ge.f32.partialorder %v498_v0, 0.0  ;;  %v572_v7 = vmul.f32 0.2, %v498_v0  ;;  %v509_v8 = vadd.f32 %v790_v5, %v901_v21  ;;  %v436_v9 = vpop.f32.mrf.mxu0  ;;  %v500_v13 = vpop.f32.mrf.mxu1 }
  0xf3   : > { %638 = vst [vmem:[%s909_s26 + $0xf0] sm:$0xff] %v606_v6  ;;  %v588_v10 = vsel %vm524_vm13, %v434_v60, %v556_v3  ;;  %vm527_vm15 = vcmp.ge.f32.partialorder %v445_v4, 0.0  ;;  %v559_v11 = vmul.f32 0.2, %v445_v4  ;;  %v437_v12 = vadd.f32 %v901_v21, %v436_v9 }
  0xf4   : > { %620 = vst [vmem:[%s909_s26 + $0x60] sm:$0xff] %v588_v10  ;;  %v604_v14 = vsel %vm540_vm14, %v498_v0, %v572_v7  ;;  %vm543_vm0 = vcmp.ge.f32.partialorder %v509_v8, 0.0  ;;  %v575_v15 = vmul.f32 0.2, %v509_v8  ;;  %v501_v16 = vadd.f32 %v901_v21, %v500_v13 }
  0xf5   : > { %636 = vst [vmem:[%s909_s26 + $0xe0] sm:$0xff] %v604_v14  ;;  %v591_v17 = vsel %vm527_vm15, %v445_v4, %v559_v11  ;;  %vm525_vm1 = vcmp.ge.f32.partialorder %v437_v12, 0.0  ;;  %v557_v18 = vmul.f32 0.2, %v437_v12 }
  0xf6   : > { %623 = vst [vmem:[%s909_s26 + $0x78] sm:$0xff] %v591_v17  ;;  %v607_v19 = vsel %vm543_vm0, %v509_v8, %v575_v15  ;;  %vm541_vm2 = vcmp.ge.f32.partialorder %v501_v16, 0.0  ;;  %v573_v20 = vmul.f32 0.2, %v501_v16 }
  0xf7   : > { %639 = vst [vmem:[%s909_s26 + $0xf8] sm:$0xff] %v607_v19  ;;  %v589_v22 = vsel %vm525_vm1, %v437_v12, %v557_v18 }
  0xf8   : > { %621 = vst [vmem:[%s909_s26 + $0x68] sm:$0xff] %v589_v22  ;;  %v605_v23 = vsel %vm541_vm2, %v501_v16, %v573_v20 }
  0xf9   : > { %637 = vst [vmem:[%s909_s26 + $0xe8] sm:$0xff] %v605_v23 }
  0xfa PF: > { %s13_s12 = sadd.s32 1, %s824_s12  }
  0xfb   : > { %p10_p4 = scmp.ge.s32.totalorder %s13_s12, 4  }
  0xfd   :  { %12 = sbr.rel (!%p10_p4) target bundleno = 1 (0x1), region = 62 }

// kernel: discriminator_forward.15
= control target key start
LH: loop header
LB: loop body
LE: loop exit
PB: predicated region body
PF: predicated region fallthrough
CT: control target
= control target key end

     0   :  { %s1583_s12 = smov 0   ;;  %s1831_s0 = inlined_call_operand.vmem [shape: bf16[512,288], index: 0, kind: input, shape index: {}]   ;;  %s1832_s1 = inlined_call_operand.vmem [shape: bf16[288,128], index: 1, kind: input, shape index: {}]   ;;  %s1833_s2 = inlined_call_operand.vmem [shape: f32[1,128], index: 2, kind: input, shape index: {}]   ;;  %s1834_s3 = inlined_call_operand.vmem [shape: f32[512,128], index: 3, kind: output, shape index: {}]  }
   0x1 LB: > { %s1188_s13 = sadd.s32 4294967295, %s1561_s12   ;;  %p1192_p0 = scmp.ge.s32.totalorder %s1561_s12, 1  ;;  %s1561_s12 = sphi %s1583_s12, %s13_s12  }
   0x2   : > { %p139_p1 = scmp.lt.s32.totalorder %s1561_s12, 3 }
   0x4   : > { %p140_p2 = pnand %p1192_p0, %p139_p1 }
   0x5   : > { %s1193_s16 = sshll.u32 (!%p140_p2), %s1188_s13, 5 }
   0x6   : > { %143 = sbr.rel (%p140_p2) target bundleno = 341 (0x155), region = 32  ;;  %p165_p3 = scmp.lt.s32.totalorder (!%p140_p2), %s1193_s16, 63 }
   0xb   : > { %v1473_v0 = vld [vmem:[%s1832_s1 + $0x78] sm:$0xff]   ;;  %v1475_v2 = vld [vmem:[%s1832_s1 + $0x70] sm:$0xff]   ;;  %v1477_v4 = vld [vmem:[%s1832_s1 + $0x68] sm:$0xff]   ;;  %s1836_s16 = smov (!%p165_p3, %s1193_s16), 63  ;;  %vm633_vm0 = vcmask 261120  }
   0xc   : > { %v1474_v1 = vld [vmem:[%s1832_s1 + $0x38] sm:$0xff]   ;;  %1282 = vmatprep.subr.bf16.mxu0 %v1473_v0  ;;  %1448 = vmatprep.subr.bf16.mxu1 %v1473_v0  ;;  %v1476_v3 = vld [vmem:[%s1832_s1 + $0x30] sm:$0xff]   ;;  %v1478_v5 = vld [vmem:[%s1832_s1 + $0x28] sm:$0xff]   ;;  %s1464_s29 = smul.u32 12, %s1836_s16  ;;  %s1196_s5 = sshll.u32 %s1836_s16, 3 }
   0xd   : > { %1283 = vmatpush3.bf16.msra.mxu0 %v1474_v1  ;;  %1456 = vmatpush3.bf16.msra.mxu1 %v1474_v1  ;;  %v1479_v6 = vld [vmem:[%s1832_s1 + $0x60] sm:$0xff]   ;;  %v1481_v8 = vld [vmem:[%s1832_s1 + $0x58] sm:$0xff]   ;;  %v1483_v10 = vld [vmem:[%s1832_s1 + $0x50] sm:$0xff]   ;;  %s1749_s8 = scalar_lea.vmem %s1834_s3, %s1196_s5 }
   0xe   : > { %1284 = vmatprep.subr.bf16.mxu0 %v1475_v2  ;;  %1449 = vmatprep.subr.bf16.mxu1 %v1475_v2  ;;  %v1480_v7 = vld [vmem:[%s1832_s1 + $0x20] sm:$0xff]   ;;  %s1624_s9 = scalar_lea.vmem %s1831_s0, %s1464_s29  ;;  %v1482_v9 = vld [vmem:[%s1832_s1 + $0x18] sm:$0xff]   ;;  %v1484_v13 = vld [vmem:[%s1832_s1 + $0x10] sm:$0xff]  }
   0xf   : > { %v1491_v11 = vld [vmem:[%s1624_s9 + $0x4] ss:$12 sps:$4 sm:$0xff]   ;;  %v1485_v14 = vld [vmem:[%s1832_s1 + $0x48] sm:$0xff]   ;;  %v1502_v26 = vld [vmem:[%s1624_s9 + $0x34] ss:$12 sps:$4 sm:$0xff]  }
  0x10   : > { %v1494_v12 = vld [vmem:[%s1624_s9 + $0x124] ss:$12 sps:$4 sm:$0xff]   ;;  %714 = vmatprep.mubr.bf16.mxu0 %v1491_v11  ;;  %v1486_v15 = vld [vmem:[%s1832_s1 + $0x8] sm:$0xff]   ;;  %v1504_v27 = vld [vmem:[%s1624_s9 + $0x154] ss:$12 sps:$4 sm:$0xff]  }
  0x11   : > { %1285 = vmatpush3.bf16.msra.mxu0 %v1476_v3  ;;  %1457 = vmatpush3.bf16.msra.mxu1 %v1476_v3  ;;  %v1487_v16 = vld [vmem:[%s1832_s1 + $0x40] sm:$0xff]   ;;  %v1495_v18 = vld [vmem:[%s1832_s1 + $0x88] sm:$0xff]   ;;  %v1506_v28 = vld [vmem:[%s1624_s9 + $0x30] ss:$12 sps:$4 sm:$0xff]  }
  0x12   : > { %1286 = vmatprep.subr.bf16.mxu0 %v1477_v4  ;;  %1450 = vmatprep.subr.bf16.mxu1 %v1477_v4  ;;  %v1488_v17 = vld [vmem:[%s1832_s1] sm:$0xff]   ;;  %v1496_v21 = vld [vmem:[%s1624_s9 + $0x1c] ss:$12 sps:$4 sm:$0xff]   ;;  %v1509_v30 = vld [vmem:[%s1624_s9 + $0x4c] ss:$12 sps:$4 sm:$0xff]  }
  0x13   : > { %810 = vmatprep.mubr.bf16.mxu1 %v1494_v12  ;;  %v1489_v19 = vld [vmem:[%s1624_s9] ss:$12 sps:$4 sm:$0xff]   ;;  %v1498_v22 = vld [vmem:[%s1624_s9 + $0x13c] ss:$12 sps:$4 sm:$0xff]   ;;  %v1500_v24 = vld [vmem:[%s1624_s9 + $0x18] ss:$12 sps:$4 sm:$0xff]  }
  0x14   : > { %v1492_v20 = vld [vmem:[%s1624_s9 + $0x120] ss:$12 sps:$4 sm:$0xff]   ;;  %v1501_v25 = vld [vmem:[%s1624_s9 + $0x138] ss:$12 sps:$4 sm:$0xff]   ;;  %v1507_v29 = vld [vmem:[%s1624_s9 + $0x150] ss:$12 sps:$4 sm:$0xff]  }
  0x15   : > { %1287 = vmatpush3.bf16.msra.mxu0 %v1478_v5  ;;  %1458 = vmatpush3.bf16.msra.mxu1 %v1478_v5  ;;  %v1508_v23 = vld [vmem:[%s1832_s1 + $0x80] sm:$0xff]   ;;  %v1511_v31 = vld [vmem:[%s1624_s9 + $0x16c] ss:$12 sps:$4 sm:$0xff]   ;;  %v1513_v32 = vld [vmem:[%s1624_s9 + $0x48] ss:$12 sps:$4 sm:$0xff]  }
  0x16   : > { %1288 = vmatprep.subr.bf16.mxu0 %v1479_v6  ;;  %1451 = vmatprep.subr.bf16.mxu1 %v1479_v6  ;;  %v1514_v33 = vld [vmem:[%s1624_s9 + $0x168] ss:$12 sps:$4 sm:$0xff]   ;;  %v1515_v34 = vld [vmem:[%s1624_s9 + $0x64] ss:$12 sps:$4 sm:$0xff]   ;;  %v1518_v36 = vld [vmem:[%s1624_s9 + $0x60] ss:$12 sps:$4 sm:$0xff]  }
  0x17   : > { %v1517_v35 = vld [vmem:[%s1624_s9 + $0x8] ss:$12 sps:$4 sm:$0xff]   ;;  %v1519_v37 = vld [vmem:[%s1624_s9 + $0x20] ss:$12 sps:$4 sm:$0xff]   ;;  %v1522_v39 = vld [vmem:[%s1624_s9 + $0x38] ss:$12 sps:$4 sm:$0xff]  }
  0x18   : > { %v1520_v38 = vld [vmem:[%s1624_s9 + $0x7c] ss:$12 sps:$4 sm:$0xff]   ;;  %v1523_v40 = vld [vmem:[%s1624_s9 + $0x78] ss:$12 sps:$4 sm:$0xff]   ;;  %v1525_v42 = vld [vmem:[%s1624_s9 + $0x94] ss:$12 sps:$4 sm:$0xff]  }
  0x19   : > { %1289 = vmatpush3.bf16.msra.mxu0 %v1480_v7  ;;  %1459 = vmatpush3.bf16.msra.mxu1 %v1480_v7  ;;  %v1524_v41 = vld [vmem:[%s1624_s9 + $0x50] ss:$12 sps:$4 sm:$0xff]   ;;  %v1527_v43 = vld [vmem:[%s1624_s9 + $0x68] ss:$12 sps:$4 sm:$0xff]   ;;  %v1529_v45 = vld [vmem:[%s1624_s9 + $0x80] ss:$12 sps:$4 sm:$0xff]  }
  0x1a   : > { %1290 = vmatprep.subr.bf16.mxu0 %v1481_v8  ;;  %1452 = vmatprep.subr.bf16.mxu1 %v1481_v8  ;;  %v1528_v44 = vld [vmem:[%s1624_s9 + $0x90] ss:$12 sps:$4 sm:$0xff]   ;;  %v1530_v46 = vld [vmem:[%s1624_s9 + $0xac] ss:$12 sps:$4 sm:$0xff]   ;;  %v1533_v48 = vld [vmem:[%s1624_s9 + $0xa8] ss:$12 sps:$4 sm:$0xff]  }
  0x1b   : > { %v1532_v47 = vld [vmem:[%s1624_s9 + $0x98] ss:$12 sps:$4 sm:$0xff]   ;;  %v1534_v49 = vld [vmem:[%s1624_s9 + $0xb0] ss:$12 sps:$4 sm:$0xff]   ;;  %v1537_v51 = vld [vmem:[%s1624_s9 + $0xc8] ss:$12 sps:$4 sm:$0xff]  }
  0x1c   : > { %v1535_v50 = vld [vmem:[%s1624_s9 + $0xc4] ss:$12 sps:$4 sm:$0xff]   ;;  %v1538_v52 = vld [vmem:[%s1624_s9 + $0xc0] ss:$12 sps:$4 sm:$0xff]   ;;  %v1540_v54 = vld [vmem:[%s1624_s9 + $0xdc] ss:$12 sps:$4 sm:$0xff]  }
  0x1d   : > { %1291 = vmatpush3.bf16.msra.mxu0 %v1482_v9  ;;  %1460 = vmatpush3.bf16.msra.mxu1 %v1482_v9  ;;  %v1539_v53 = vld [vmem:[%s1624_s9 + $0xe0] ss:$12 sps:$4 sm:$0xff]   ;;  %v1542_v55 = vld [vmem:[%s1624_s9 + $0xf8] ss:$12 sps:$4 sm:$0xff]   ;;  %v1544_v57 = vld [vmem:[%s1624_s9 + $0x110] ss:$12 sps:$4 sm:$0xff]  }
  0x1e   : > { %1292 = vmatprep.subr.bf16.mxu0 %v1483_v10  ;;  %1453 = vmatprep.subr.bf16.mxu1 %v1483_v10  ;;  %v1543_v56 = vld [vmem:[%s1624_s9 + $0xd8] ss:$12 sps:$4 sm:$0xff]   ;;  %v1545_v58 = vld [vmem:[%s1624_s9 + $0xf4] ss:$12 sps:$4 sm:$0xff]   ;;  %v1548_v60 = vld [vmem:[%s1624_s9 + $0xf0] ss:$12 sps:$4 sm:$0xff]  }
  0x1f   : > { %v1547_v59 = vld [vmem:[%s1624_s9 + $0x128] ss:$12 sps:$4 sm:$0xff]   ;;  %v1549_v61 = vld [vmem:[%s1624_s9 + $0x140] ss:$12 sps:$4 sm:$0xff]   ;;  %v1552_v63 = vld [vmem:[%s1624_s9 + $0x158] ss:$12 sps:$4 sm:$0xff]  }
  0x20   : > { %v1550_v62 = vld [vmem:[%s1624_s9 + $0x10c] ss:$12 sps:$4 sm:$0xff]   ;;  %v1553_v0 = vld [vmem:[%s1624_s9 + $0x108] ss:$12 sps:$4 sm:$0xff]   ;;  %v1554_v1 = vld [vmem:[%s1624_s9 + $0x170] ss:$12 sps:$4 sm:$0xff]  }
  0x21   : > { %1293 = vmatpush3.bf16.msra.mxu0 %v1484_v13  ;;  %1461 = vmatpush3.bf16.msra.mxu1 %v1484_v13 }
  0x22   : > { %1294 = vmatprep.subr.bf16.mxu0 %v1485_v14  ;;  %1454 = vmatprep.subr.bf16.mxu1 %v1485_v14 }
  0x25   : > { %1295 = vmatpush3.bf16.msra.mxu0 %v1486_v15  ;;  %1462 = vmatpush3.bf16.msra.mxu1 %v1486_v15 }
  0x26   : > { %1296 = vmatprep.subr.bf16.mxu0 %v1487_v16  ;;  %1455 = vmatprep.subr.bf16.mxu1 %v1487_v16 }
  0x29   : > { %1297 = vmatpush3.bf16.msra.mxu0 %v1488_v17  ;;  %1463 = vmatpush3.bf16.msra.mxu1 %v1488_v17 }
  0x2a   : > { %1412 = vmatprep.subr.bf16.mxu1 %v1495_v18 }
  0x2c   : > { %715 = vmatmul.mubr.bf16.vlgmr.msra.gmra.mxu0 %v1489_v19  ;;  %811 = vmatmul.mubr.bf16.vlgmr.msra.gmra.mxu1 %v1492_v20 }
  0x2d   : > { %1413 = vmatpush3.bf16.msra.mxu1 %v1495_v18  ;;  %722 = vmatprep.mubr.bf16.mxu0 %v1496_v21 }
  0x2e   : > { %818 = vmatprep.mubr.bf16.mxu1 %v1498_v22  ;;  %1414 = vmatprep.subr.bf16.mxu1 %v1508_v23 }
  0x31   : > { %1415 = vmatpush3.bf16.msra.mxu1 %v1508_v23 }
  0x34   : > { %723 = vmatmul.mubr.bf16.gmra.mxu0 %v1500_v24  ;;  %819 = vmatmul.mubr.bf16.gmra.mxu1 %v1501_v25 }
  0x35   : > { %730 = vmatprep.mubr.bf16.mxu0 %v1502_v26  ;;  %826 = vmatprep.mubr.bf16.mxu1 %v1504_v27 }
  0x3c   : > { %731 = vmatmul.mubr.bf16.gmra.mxu0 %v1506_v28  ;;  %827 = vmatmul.mubr.bf16.gmra.mxu1 %v1507_v29 }
  0x3d   : > { %738 = vmatprep.mubr.bf16.mxu0 %v1509_v30  ;;  %834 = vmatprep.mubr.bf16.mxu1 %v1511_v31 }
  0x44   : > { %739 = vmatmul.mubr.bf16.gmra.mxu0 %v1513_v32  ;;  %835 = vmatmul.mubr.bf16.gmra.mxu1 %v1514_v33 }
  0x45   : > { %746 = vmatprep.mubr.bf16.mxu0 %v1515_v34  ;;  %1416 = vmatprep.mubr.msk.bf16.mxu1 %vm633_vm0, %v1517_v35 }
  0x4c   : > { %747 = vmatmul.mubr.bf16.gmra.mxu0 %v1518_v36  ;;  %1417 = vmatmul.mubr.msk.bf16.vlgmr.msra.gmra.mxu1 %vm633_vm0, %v1519_v37 }
  0x4d   : > { %754 = vmatprep.mubr.bf16.mxu0 %v1520_v38  ;;  %1420 = vmatprep.mubr.msk.bf16.mxu1 %vm633_vm0, %v1522_v39 }
  0x54   : > { %755 = vmatmul.mubr.bf16.gmra.mxu0 %v1523_v40  ;;  %1421 = vmatmul.mubr.msk.bf16.gmra.mxu1 %vm633_vm0, %v1524_v41 }
  0x55   : > { %762 = vmatprep.mubr.bf16.mxu0 %v1525_v42  ;;  %1424 = vmatprep.mubr.msk.bf16.mxu1 %vm633_vm0, %v1527_v43  ;;  %v1740_v43 = vld [vmem:[%s1833_s2] ss:$0 sm:$0xff] }
  0x5c   : > { %763 = vmatmul.mubr.bf16.gmra.mxu0 %v1528_v44  ;;  %1425 = vmatmul.mubr.msk.bf16.gmra.mxu1 %vm633_vm0, %v1529_v45 }
  0x5d   : > { %770 = vmatprep.mubr.bf16.mxu0 %v1530_v46  ;;  %1428 = vmatprep.mubr.msk.bf16.mxu1 %vm633_vm0, %v1532_v47 }
  0x64   : > { %771 = vmatmul.mubr.bf16.gmra.mxu0 %v1533_v48  ;;  %1429 = vmatmul.mubr.msk.bf16.gmra.mxu1 %vm633_vm0, %v1534_v49 }
  0x65   : > { %778 = vmatprep.mubr.bf16.mxu0 %v1535_v50  ;;  %1432 = vmatprep.mubr.msk.bf16.mxu1 %vm633_vm0, %v1537_v51 }
  0x6c   : > { %779 = vmatmul.mubr.bf16.gmra.mxu0 %v1538_v52  ;;  %1433 = vmatmul.mubr.msk.bf16.gmra.mxu1 %vm633_vm0, %v1539_v53 }
  0x6d   : > { %786 = vmatprep.mubr.bf16.mxu0 %v1540_v54  ;;  %1436 = vmatprep.mubr.msk.bf16.mxu1 %vm633_vm0, %v1542_v55 }
  0x74   : > { %787 = vmatmul.mubr.bf16.gmra.mxu0 %v1543_v56  ;;  %1437 = vmatmul.mubr.msk.bf16.gmra.mxu1 %vm633_vm0, %v1544_v57 }
  0x75   : > { %794 = vmatprep.mubr.bf16.mxu0 %v1545_v58  ;;  %1440 = vmatprep.mubr.msk.bf16.mxu1 %vm633_vm0, %v1547_v59 }
  0x7c   : > { %795 = vmatmul.mubr.bf16.gmra.mxu0 %v1548_v60  ;;  %1441 = vmatmul.mubr.msk.bf16.gmra.mxu1 %vm633_vm0, %v1549_v61 }
  0x7d   : > { %802 = vmatprep.mubr.bf16.mxu0 %v1550_v62  ;;  %1444 = vmatprep.mubr.msk.bf16.mxu1 %vm633_vm0, %v1552_v63 }
  0x84   : > { %803 = vmatmul.mubr.bf16.gmra.mxu0 %v1553_v0  ;;  %1445 = vmatmul.mubr.msk.bf16.gmra.mxu1 %vm633_vm0, %v1554_v1 }
  0xec   : > { %v1298_v2 = vpop.f32.mrf.mxu0  ;;  %v1370_v3 = vpop.f32.mrf.mxu1 }
  0xee   : > { %v1299_v4 = vpop.f32.mrf.mxu0  ;;  %v1371_v5 = vpop.f32.mrf.mxu1 }
  0xef   : > { %v1717_v6 = vadd.f32 %v1371_v5, %v1370_v3  ;;  %v1300_v39 = vadd.f32 %v1299_v4, %v1298_v2 }
  0xf0   : > { %v1301_v7 = vpop.f32.mrf.mxu0  ;;  %v1373_v8 = vpop.f32.mrf.mxu1 }
  0xf1   : > { %v717_v48 = vadd.f32 %v1300_v39, %v1740_v43 }
  0xf2   : > { %v1302_v9 = vpop.f32.mrf.mxu0  ;;  %v1374_v10 = vpop.f32.mrf.mxu1 }
  0xf3   : > { %v1719_v11 = vadd.f32 %v1374_v10, %v1373_v8  ;;  %v1303_v49 = vadd.f32 %v1302_v9, %v1301_v7 }
  0xf4   : > { %v1304_v12 = vpop.f32.mrf.mxu0  ;;  %v1376_v13 = vpop.f32.mrf.mxu1 }
  0xf5   : > { %v720_v0 = vadd.f32 %v1303_v49, %v1740_v43 }
  0xf6   : > { %v1305_v14 = vpop.f32.mrf.mxu0  ;;  %v1377_v15 = vpop.f32.mrf.mxu1 }
  0xf7   : > { %v1721_v16 = vadd.f32 %v1377_v15, %v1376_v13  ;;  %v1306_v36 = vadd.f32 %v1305_v14, %v1304_v12 }
  0xf8   : > { %v1307_v17 = vpop.f32.mrf.mxu0  ;;  %v1379_v18 = vpop.f32.mrf.mxu1 }
  0xf9   : > { %v725_v44 = vadd.f32 %v1306_v36, %v1740_v43 }
  0xfa   : > { %v1308_v19 = vpop.f32.mrf.mxu0  ;;  %v1380_v20 = vpop.f32.mrf.mxu1 }
  0xfb   : > { %v1723_v21 = vadd.f32 %v1380_v20, %v1379_v18  ;;  %v1309_v40 = vadd.f32 %v1308_v19, %v1307_v17 }
  0xfc   : > { %v1310_v22 = vpop.f32.mrf.mxu0  ;;  %v1382_v23 = vpop.f32.mrf.mxu1 }
  0xfd   : > { %v728_v52 = vadd.f32 %v1309_v40, %v1740_v43 }
  0xfe   : > { %v1311_v24 = vpop.f32.mrf.mxu0  ;;  %v1383_v25 = vpop.f32.mrf.mxu1 }
  0xff   : > { %v1725_v26 = vadd.f32 %v1383_v25, %v1382_v23  ;;  %v1312_v56 = vadd.f32 %v1311_v24, %v1310_v22 }
 0x100   : > { %v1313_v27 = vpop.f32.mrf.mxu0  ;;  %v1385_v28 = vpop.f32.mrf.mxu1 }
 0x101   : > { %v733_v12 = vadd.f32 %v1312_v56, %v1740_v43 }
 0x102   : > { %v1314_v29 = vpop.f32.mrf.mxu0  ;;  %v1386_v30 = vpop.f32.mrf.mxu1 }
 0x103   : > { %v1727_v31 = vadd.f32 %v1386_v30, %v1385_v28  ;;  %v1315_v13 = vadd.f32 %v1314_v29, %v1313_v27 }
 0x104   : > { %v1316_v32 = vpop.f32.mrf.mxu0  ;;  %v1729_v33 = vpop.f32.mrf.mxu1 }
 0x106   : > { %v1317_v34 = vpop.f32.mrf.mxu0  ;;  %v1731_v35 = vpop.f32.mrf.mxu1 }
 0x107   : > { %v1318_v53 = vadd.f32 %v1317_v34, %v1316_v32  ;;  %v736_v34 = vadd.f32 %v1315_v13, %v1740_v43 }
 0x108   : > { %v1319_v37 = vpop.f32.mrf.mxu0  ;;  %v1733_v38 = vpop.f32.mrf.mxu1 }
 0x109   : > { %v741_v4 = vadd.f32 %v1318_v53, %v1740_v43 }
 0x10a   : > { %v1320_v41 = vpop.f32.mrf.mxu0  ;;  %v1735_v42 = vpop.f32.mrf.mxu1 }
 0x10b   : > { %v1321_v62 = vadd.f32 %v1320_v41, %v1319_v37 }
 0x10c   : > { %v1322_v45 = vpop.f32.mrf.mxu0  ;;  %v1418_v46 = vpop.f32.mrf.mxu1 }
 0x10d   : > { %v886_v47 = vadd.f32 %v1418_v46, %v725_v44  ;;  %v744_v18 = vadd.f32 %v1321_v62, %v1740_v43 }
 0x10e   : > { %v1323_v50 = vpop.f32.mrf.mxu0  ;;  %v877_v51 = vpop.f32.mrf.mxu1 }
 0x10f   : > { %vm1006_vm1 = vcmp.ge.f32.partialorder %v886_v47, 0.0  ;;  %v1038_v54 = vmul.f32 0.2, %v886_v47  ;;  %v878_v55 = vadd.f32 %v877_v51, %v717_v48  ;;  %v1324_v23 = vadd.f32 %v1323_v50, %v1322_v45 }
 0x110   : > { %v1325_v57 = vpop.f32.mrf.mxu0  ;;  %v1419_v58 = vpop.f32.mrf.mxu1 }
 0x111   : > { %v1070_v59 = vsel %vm1006_vm1, %v886_v47, %v1038_v54  ;;  %vm1004_vm2 = vcmp.ge.f32.partialorder %v878_v55, 0.0  ;;  %v1036_v60 = vmul.f32 0.2, %v878_v55  ;;  %v889_v61 = vadd.f32 %v1419_v58, %v728_v52 }
 0x112   : > { %1102 = vst [vmem:[%s1749_s8 + $0x10] sm:$0xff] %v1070_v59  ;;  %v1326_v63 = vpop.f32.mrf.mxu0  ;;  %v880_v1 = vpop.f32.mrf.mxu1  ;;  %v749_v49 = vadd.f32 %v1324_v23, %v1740_v43 }
 0x113   : > { %v1068_v2 = vsel %vm1004_vm2, %v878_v55, %v1036_v60  ;;  %vm1007_vm3 = vcmp.ge.f32.partialorder %v889_v61, 0.0  ;;  %v1039_v3 = vmul.f32 0.2, %v889_v61  ;;  %v881_v5 = vadd.f32 %v880_v1, %v720_v0 }
 0x114   : > { %1100 = vst [vmem:[%s1749_s8] sm:$0xff] %v1068_v2  ;;  %v1328_v7 = vpop.f32.mrf.mxu0  ;;  %v1422_v8 = vpop.f32.mrf.mxu1  ;;  %v1327_v50 = vadd.f32 %v1326_v63, %v1325_v57 }
 0x115   : > { %v1071_v9 = vsel %vm1007_vm3, %v889_v61, %v1039_v3  ;;  %v902_v10 = vadd.f32 %v1422_v8, %v741_v4  ;;  %vm1005_vm4 = vcmp.ge.f32.partialorder %v881_v5, 0.0  ;;  %v1037_v14 = vmul.f32 0.2, %v881_v5 }
 0x116   : > { %1103 = vst [vmem:[%s1749_s8 + $0x18] sm:$0xff] %v1071_v9  ;;  %v1329_v15 = vpop.f32.mrf.mxu0  ;;  %v893_v17 = vpop.f32.mrf.mxu1  ;;  %v752_v1 = vadd.f32 %v1327_v50, %v1740_v43 }
 0x117   : > { %vm1010_vm5 = vcmp.ge.f32.partialorder %v902_v10, 0.0  ;;  %v1042_v19 = vmul.f32 0.2, %v902_v10  ;;  %v1330_v20 = vadd.f32 %v1329_v15, %v1328_v7  ;;  %v894_v22 = vadd.f32 %v893_v17, %v733_v12 }
 0x118   : > { %v1069_v24 = vsel %vm1005_vm4, %v881_v5, %v1037_v14  ;;  %v1331_v25 = vpop.f32.mrf.mxu0  ;;  %v1423_v28 = vpop.f32.mrf.mxu1 }
 0x119   : > { %1101 = vst [vmem:[%s1749_s8 + $0x8] sm:$0xff] %v1069_v24  ;;  %v1074_v30 = vsel %vm1010_vm5, %v902_v10, %v1042_v19  ;;  %vm1008_vm6 = vcmp.ge.f32.partialorder %v894_v22, 0.0  ;;  %v1040_v27 = vmul.f32 0.2, %v894_v22  ;;  %v905_v29 = vadd.f32 %v1423_v28, %v744_v18 }
 0x11a   : > { %1106 = vst [vmem:[%s1749_s8 + $0x30] sm:$0xff] %v1074_v30  ;;  %v1332_v32 = vpop.f32.mrf.mxu0  ;;  %v896_v36 = vpop.f32.mrf.mxu1  ;;  %v757_v37 = vadd.f32 %v1330_v20, %v1740_v43 }
 0x11b   : > { %v1072_v39 = vsel %vm1008_vm6, %v894_v22, %v1040_v27  ;;  %vm1011_vm7 = vcmp.ge.f32.partialorder %v905_v29, 0.0  ;;  %v1043_v40 = vmul.f32 0.2, %v905_v29  ;;  %v1333_v41 = vadd.f32 %v1332_v32, %v1331_v25 }
 0x11c   : > { %1104 = vst [vmem:[%s1749_s8 + $0x20] sm:$0xff] %v1072_v39  ;;  %v897_v44 = vadd.f32 %v896_v36, %v736_v34  ;;  %v1334_v45 = vpop.f32.mrf.mxu0  ;;  %v1426_v46 = vpop.f32.mrf.mxu1 }
 0x11d   : > { %v1075_v47 = vsel %vm1011_vm7, %v905_v29, %v1043_v40  ;;  %v918_v48 = vadd.f32 %v1426_v46, %v757_v37  ;;  %v760_v56 = vadd.f32 %v1333_v41, %v1740_v43 }
 0x11e   : > { %1107 = vst [vmem:[%s1749_s8 + $0x38] sm:$0xff] %v1075_v47  ;;  %vm1009_vm8 = vcmp.ge.f32.partialorder %v897_v44, 0.0  ;;  %v1041_v51 = vmul.f32 0.2, %v897_v44  ;;  %v1335_v52 = vpop.f32.mrf.mxu0  ;;  %v909_v53 = vpop.f32.mrf.mxu1 }
 0x11f   : > { %vm1014_vm9 = vcmp.ge.f32.partialorder %v918_v48, 0.0  ;;  %v1046_v54 = vmul.f32 0.2, %v918_v48  ;;  %v910_v55 = vadd.f32 %v909_v53, %v749_v49  ;;  %v1336_v59 = vadd.f32 %v1335_v52, %v1334_v45 }
 0x120   : > { %v1073_v58 = vsel %vm1009_vm8, %v897_v44, %v1041_v51  ;;  %v1337_v60 = vpop.f32.mrf.mxu0  ;;  %v1427_v61 = vpop.f32.mrf.mxu1 }
 0x121   : > { %1105 = vst [vmem:[%s1749_s8 + $0x28] sm:$0xff] %v1073_v58  ;;  %v1078_v62 = vsel %vm1014_vm9, %v918_v48, %v1046_v54  ;;  %vm1012_vm10 = vcmp.ge.f32.partialorder %v910_v55, 0.0  ;;  %v1044_v57 = vmul.f32 0.2, %v910_v55  ;;  %v921_v63 = vadd.f32 %v1427_v61, %v760_v56 }
 0x122   : > { %1110 = vst [vmem:[%s1749_s8 + $0x50] sm:$0xff] %v1078_v62  ;;  %v1338_v0 = vpop.f32.mrf.mxu0  ;;  %v912_v2 = vpop.f32.mrf.mxu1  ;;  %v765_v12 = vadd.f32 %v1336_v59, %v1740_v43 }
 0x123   : > { %v1076_v3 = vsel %vm1012_vm10, %v910_v55, %v1044_v57  ;;  %vm1015_vm11 = vcmp.ge.f32.partialorder %v921_v63, 0.0  ;;  %v1047_v4 = vmul.f32 0.2, %v921_v63  ;;  %v913_v5 = vadd.f32 %v912_v2, %v752_v1 }
 0x124   : > { %1108 = vst [vmem:[%s1749_s8 + $0x40] sm:$0xff] %v1076_v3  ;;  %v1340_v7 = vpop.f32.mrf.mxu0  ;;  %v1430_v8 = vpop.f32.mrf.mxu1  ;;  %v1339_v10 = vadd.f32 %v1338_v0, %v1337_v60 }
 0x125   : > { %v1079_v9 = vsel %vm1015_vm11, %v921_v63, %v1047_v4  ;;  %vm1013_vm12 = vcmp.ge.f32.partialorder %v913_v5, 0.0  ;;  %v1045_v13 = vmul.f32 0.2, %v913_v5 }
 0x126   : > { %1111 = vst [vmem:[%s1749_s8 + $0x58] sm:$0xff] %v1079_v9  ;;  %v1341_v14 = vpop.f32.mrf.mxu0  ;;  %v925_v15 = vpop.f32.mrf.mxu1  ;;  %v768_v25 = vadd.f32 %v1339_v10, %v1740_v43 }
 0x127   : > { %v1342_v17 = vadd.f32 %v1341_v14, %v1340_v7  ;;  %v926_v18 = vadd.f32 %v925_v15, %v765_v12  ;;  %v1077_v19 = vsel %vm1013_vm12, %v913_v5, %v1045_v13  ;;  %v821_v15 = vadd.f32 %v1721_v16, %v1740_v43 }
 0x128   : > { %v1343_v20 = vpop.f32.mrf.mxu0  ;;  %v1431_v22 = vpop.f32.mrf.mxu1  ;;  %1109 = vst [vmem:[%s1749_s8 + $0x48] sm:$0xff] %v1077_v19  ;;  %v824_v16 = vadd.f32 %v1723_v21, %v1740_v43 }
 0x129   : > { %v773_v23 = vadd.f32 %v1342_v17, %v1740_v43  ;;  %vm1016_vm13 = vcmp.ge.f32.partialorder %v926_v18, 0.0  ;;  %v1048_v24 = vmul.f32 0.2, %v926_v18 }
 0x12a   : > { %v1344_v28 = vpop.f32.mrf.mxu0  ;;  %v928_v30 = vpop.f32.mrf.mxu1 }
 0x12b   : > { %v934_v27 = vadd.f32 %v1430_v8, %v773_v23  ;;  %v1080_v29 = vsel %vm1016_vm13, %v926_v18, %v1048_v24  ;;  %v1345_v32 = vadd.f32 %v1344_v28, %v1343_v20  ;;  %v929_v34 = vadd.f32 %v928_v30, %v768_v25 }
 0x12c   : > { %1112 = vst [vmem:[%s1749_s8 + $0x60] sm:$0xff] %v1080_v29  ;;  %v1346_v36 = vpop.f32.mrf.mxu0  ;;  %v1434_v37 = vpop.f32.mrf.mxu1  ;;  %v1390_v23 = vadd.f32 %v1731_v35, %v1729_v33  ;;  %v813_v25 = vadd.f32 %v1717_v6, %v1740_v43  ;;  %v816_v33 = vadd.f32 %v1719_v11, %v1740_v43  ;;  %v829_v6 = vadd.f32 %v1725_v26, %v1740_v43 }
 0x12d   : > { %vm1018_vm14 = vcmp.ge.f32.partialorder %v934_v27, 0.0  ;;  %v1050_v39 = vmul.f32 0.2, %v934_v27  ;;  %v776_v40 = vadd.f32 %v1345_v32, %v1740_v43  ;;  %vm1017_vm15 = vcmp.ge.f32.partialorder %v929_v34, 0.0 }
 0x12e   : > { %v1049_v41 = vmul.f32 0.2, %v929_v34  ;;  %v1347_v44 = vpop.f32.mrf.mxu0  ;;  %v941_v45 = vpop.f32.mrf.mxu1 }
 0x12f   : > { %v1082_v46 = vsel %vm1018_vm14, %v934_v27, %v1050_v39  ;;  %v937_v47 = vadd.f32 %v1431_v22, %v776_v40  ;;  %v1348_v48 = vadd.f32 %v1347_v44, %v1346_v36 }
 0x130   : > { %1114 = vst [vmem:[%s1749_s8 + $0x70] sm:$0xff] %v1082_v46  ;;  %v1081_v49 = vsel %vm1017_vm15, %v929_v34, %v1049_v41  ;;  %v1349_v50 = vpop.f32.mrf.mxu0  ;;  %v1435_v51 = vpop.f32.mrf.mxu1  ;;  %v837_v46 = vadd.f32 %v1390_v23, %v1740_v43 }
 0x131   : > { %vm1019_vm0 = vcmp.ge.f32.partialorder %v937_v47, 0.0  ;;  %v1051_v52 = vmul.f32 0.2, %v937_v47  ;;  %1113 = vst [vmem:[%s1749_s8 + $0x68] sm:$0xff] %v1081_v49  ;;  %v781_v53 = vadd.f32 %v1348_v48, %v1740_v43  ;;  %v1393_v48 = vadd.f32 %v1735_v42, %v1733_v38 }
 0x132   : > { %v1350_v54 = vpop.f32.mrf.mxu0  ;;  %v944_v55 = vpop.f32.mrf.mxu1 }
 0x133   : > { %v1083_v56 = vsel %vm1019_vm0, %v937_v47, %v1051_v52  ;;  %v942_v58 = vadd.f32 %v941_v45, %v781_v53  ;;  %v1351_v59 = vadd.f32 %v1350_v54, %v1349_v50 }
 0x134   : > { %1115 = vst [vmem:[%s1749_s8 + $0x78] sm:$0xff] %v1083_v56  ;;  %v1352_v60 = vpop.f32.mrf.mxu0  ;;  %v1781_v61 = vpop.f32.mrf.mxu1 }
 0x135   : > { %vm1020_vm1 = vcmp.ge.f32.partialorder %v942_v58, 0.0  ;;  %v1052_v62 = vmul.f32 0.2, %v942_v58  ;;  %v784_v57 = vadd.f32 %v1351_v59, %v1740_v43 }
 0x136   : > { %v1353_v63 = vpop.f32.mrf.mxu0  ;;  %v957_v0 = vpop.f32.mrf.mxu1 }
 0x137   : > { %v1084_v1 = vsel %vm1020_vm1, %v942_v58, %v1052_v62  ;;  %v945_v2 = vadd.f32 %v944_v55, %v784_v57  ;;  %v1354_v3 = vadd.f32 %v1353_v63, %v1352_v60  ;;  %v832_v58 = vadd.f32 %v1727_v31, %v1740_v43 }
 0x138   : > { %1116 = vst [vmem:[%s1749_s8 + $0x80] sm:$0xff] %v1084_v1  ;;  %v1355_v4 = vpop.f32.mrf.mxu0  ;;  %v1785_v5 = vpop.f32.mrf.mxu1  ;;  %v840_v31 = vadd.f32 %v1393_v48, %v1740_v43 }
 0x139   : > { %vm1021_vm2 = vcmp.ge.f32.partialorder %v945_v2, 0.0  ;;  %v1053_v7 = vmul.f32 0.2, %v945_v2  ;;  %v789_v8 = vadd.f32 %v1354_v3, %v1740_v43 }
 0x13a   : > { %v1356_v9 = vpop.f32.mrf.mxu0  ;;  %v960_v10 = vpop.f32.mrf.mxu1 }
 0x13b   : > { %v1085_v12 = vsel %vm1021_vm2, %v945_v2, %v1053_v7  ;;  %v950_v13 = vadd.f32 %v1434_v37, %v789_v8  ;;  %v1357_v14 = vadd.f32 %v1356_v9, %v1355_v4 }
 0x13c   : > { %1117 = vst [vmem:[%s1749_s8 + $0x88] sm:$0xff] %v1085_v12  ;;  %v1358_v17 = vpop.f32.mrf.mxu0  ;;  %v1442_v18 = vpop.f32.mrf.mxu1 }
 0x13d   : > { %vm1022_vm3 = vcmp.ge.f32.partialorder %v950_v13, 0.0  ;;  %v1054_v19 = vmul.f32 0.2, %v950_v13  ;;  %v792_v20 = vadd.f32 %v1357_v14, %v1740_v43  ;;  %v982_v22 = vadd.f32 %v1442_v18, %v821_v15 }
 0x13e   : > { %v1359_v24 = vpop.f32.mrf.mxu0  ;;  %v973_v28 = vpop.f32.mrf.mxu1 }
 0x13f   : > { %v1086_v30 = vsel %vm1022_vm3, %v950_v13, %v1054_v19  ;;  %v953_v27 = vadd.f32 %v1435_v51, %v792_v20  ;;  %vm1030_vm4 = vcmp.ge.f32.partialorder %v982_v22, 0.0  ;;  %v1062_v29 = vmul.f32 0.2, %v982_v22 }
 0x140   : > { %1118 = vst [vmem:[%s1749_s8 + $0x90] sm:$0xff] %v1086_v30  ;;  %v1360_v32 = vadd.f32 %v1359_v24, %v1358_v17  ;;  %v974_v34 = vadd.f32 %v973_v28, %v813_v25  ;;  %v1361_v36 = vpop.f32.mrf.mxu0  ;;  %v1443_v37 = vpop.f32.mrf.mxu1 }
 0x141   : > { %vm1023_vm5 = vcmp.ge.f32.partialorder %v953_v27, 0.0  ;;  %v1055_v35 = vmul.f32 0.2, %v953_v27  ;;  %v1094_v21 = vsel %vm1030_vm4, %v982_v22, %v1062_v29  ;;  %v985_v39 = vadd.f32 %v1443_v37, %v824_v16 }
 0x142   : > { %1126 = vst [vmem:[%s1749_s8 + $0xd0] sm:$0xff] %v1094_v21  ;;  %v797_v40 = vadd.f32 %v1360_v32, %v1740_v43  ;;  %vm1028_vm6 = vcmp.ge.f32.partialorder %v974_v34, 0.0  ;;  %v1060_v41 = vmul.f32 0.2, %v974_v34  ;;  %v1362_v44 = vpop.f32.mrf.mxu0  ;;  %v976_v45 = vpop.f32.mrf.mxu1 }
 0x143   : > { %v1087_v47 = vsel %vm1023_vm5, %v953_v27, %v1055_v35  ;;  %vm1031_vm7 = vcmp.ge.f32.partialorder %v985_v39, 0.0  ;;  %v1063_v11 = vmul.f32 0.2, %v985_v39  ;;  %v1363_v26 = vadd.f32 %v1362_v44, %v1361_v36 }
 0x144   : > { %1119 = vst [vmem:[%s1749_s8 + $0x98] sm:$0xff] %v1087_v47  ;;  %v958_v49 = vadd.f32 %v957_v0, %v797_v40  ;;  %v1092_v50 = vsel %vm1028_vm6, %v974_v34, %v1060_v41  ;;  %v977_v51 = vadd.f32 %v976_v45, %v816_v33  ;;  %v1364_v52 = vpop.f32.mrf.mxu0  ;;  %v1446_v53 = vpop.f32.mrf.mxu1 }
 0x145   : > { %1124 = vst [vmem:[%s1749_s8 + $0xc0] sm:$0xff] %v1092_v50  ;;  %v1095_v54 = vsel %vm1031_vm7, %v985_v39, %v1063_v11  ;;  %v800_v55 = vadd.f32 %v1363_v26, %v1740_v43  ;;  %v998_v56 = vadd.f32 %v1446_v53, %v837_v46 }
 0x146   : > { %vm1024_vm8 = vcmp.ge.f32.partialorder %v958_v49, 0.0  ;;  %v1056_v59 = vmul.f32 0.2, %v958_v49  ;;  %1127 = vst [vmem:[%s1749_s8 + $0xd8] sm:$0xff] %v1095_v54  ;;  %vm1029_vm9 = vcmp.ge.f32.partialorder %v977_v51, 0.0  ;;  %v1365_v42 = vpop.f32.mrf.mxu0  ;;  %v989_v60 = vpop.f32.mrf.mxu1 }
 0x147   : > { %v1061_v38 = vmul.f32 0.2, %v977_v51  ;;  %v961_v62 = vadd.f32 %v960_v10, %v800_v55  ;;  %vm1034_vm10 = vcmp.ge.f32.partialorder %v998_v56, 0.0  ;;  %v1066_v57 = vmul.f32 0.2, %v998_v56 }
 0x148   : > { %v1366_v63 = vadd.f32 %v1365_v42, %v1364_v52  ;;  %v1088_v0 = vsel %vm1024_vm8, %v958_v49, %v1056_v59  ;;  %v990_v2 = vadd.f32 %v989_v60, %v829_v6  ;;  %v1367_v3 = vpop.f32.mrf.mxu0  ;;  %v1447_v4 = vpop.f32.mrf.mxu1 }
 0x149   : > { %v1093_v1 = vsel %vm1029_vm9, %v977_v51, %v1061_v38  ;;  %1120 = vst [vmem:[%s1749_s8 + $0xa0] sm:$0xff] %v1088_v0  ;;  %vm1025_vm11 = vcmp.ge.f32.partialorder %v961_v62, 0.0  ;;  %v1057_v7 = vmul.f32 0.2, %v961_v62  ;;  %v1098_v8 = vsel %vm1034_vm10, %v998_v56, %v1066_v57 }
 0x14a   : > { %1125 = vst [vmem:[%s1749_s8 + $0xc8] sm:$0xff] %v1093_v1  ;;  %v805_v9 = vadd.f32 %v1366_v63, %v1740_v43  ;;  %1130 = vst [vmem:[%s1749_s8 + $0xf0] sm:$0xff] %v1098_v8  ;;  %vm1032_vm12 = vcmp.ge.f32.partialorder %v990_v2, 0.0  ;;  %v1064_v10 = vmul.f32 0.2, %v990_v2  ;;  %v1001_v12 = vadd.f32 %v1447_v4, %v840_v31  ;;  %v1368_v13 = vpop.f32.mrf.mxu0  ;;  %v992_v14 = vpop.f32.mrf.mxu1 }
 0x14b   : > { %v1089_v15 = vsel %vm1025_vm11, %v961_v62, %v1057_v7  ;;  %v1369_v18 = vadd.f32 %v1368_v13, %v1367_v3  ;;  %v993_v19 = vadd.f32 %v992_v14, %v832_v58 }
 0x14c   : > { %v966_v17 = vadd.f32 %v1781_v61, %v805_v9  ;;  %1121 = vst [vmem:[%s1749_s8 + $0xa8] sm:$0xff] %v1089_v15  ;;  %v1096_v20 = vsel %vm1032_vm12, %v990_v2, %v1064_v10  ;;  %vm1035_vm13 = vcmp.ge.f32.partialorder %v1001_v12, 0.0  ;;  %v1067_v22 = vmul.f32 0.2, %v1001_v12 }
 0x14d   : > { %1128 = vst [vmem:[%s1749_s8 + $0xe0] sm:$0xff] %v1096_v20  ;;  %v808_v24 = vadd.f32 %v1369_v18, %v1740_v43  ;;  %vm1033_vm15 = vcmp.ge.f32.partialorder %v993_v19, 0.0  ;;  %v1065_v28 = vmul.f32 0.2, %v993_v19 }
 0x14e   : > { %vm1026_vm14 = vcmp.ge.f32.partialorder %v966_v17, 0.0  ;;  %v1058_v23 = vmul.f32 0.2, %v966_v17  ;;  %v1099_v25 = vsel %vm1035_vm13, %v1001_v12, %v1067_v22 }
 0x14f   : > { %1131 = vst [vmem:[%s1749_s8 + $0xf8] sm:$0xff] %v1099_v25  ;;  %v969_v61 = vadd.f32 %v1785_v5, %v808_v24  ;;  %v1097_v30 = vsel %vm1033_vm15, %v993_v19, %v1065_v28 }
 0x150   : > { %v1090_v16 = vsel %vm1026_vm14, %v966_v17, %v1058_v23  ;;  %1129 = vst [vmem:[%s1749_s8 + $0xe8] sm:$0xff] %v1097_v30 }
 0x151   : > { %1122 = vst [vmem:[%s1749_s8 + $0xb0] sm:$0xff] %v1090_v16  ;;  %vm1027_vm0 = vcmp.ge.f32.partialorder %v969_v61, 0.0  ;;  %v1059_v27 = vmul.f32 0.2, %v969_v61 }
 0x153   : > { %v1091_v29 = vsel %vm1027_vm0, %v969_v61, %v1059_v27 }
 0x154   : > { %1123 = vst [vmem:[%s1749_s8 + $0xb8] sm:$0xff] %v1091_v29 }
 0x155 PF: > { %s13_s12 = sadd.s32 1, %s1561_s12  }
 0x156   : > { %p10_p4 = scmp.ge.s32.totalorder %s13_s12, 4  }
 0x158   :  { %12 = sbr.rel (!%p10_p4) target bundleno = 1 (0x1), region = 62 }

// kernel: discriminator_forward.13
= control target key start
LH: loop header
LB: loop body
LE: loop exit
PB: predicated region body
PF: predicated region fallthrough
CT: control target
= control target key end

     0   :  { %vm139_vm0 = vcmask 23552   ;;  %s474_s0 = inlined_call_operand.vmem [shape: f32[2,8,2,2,8,3], index: 0, kind: input, shape index: {}]   ;;  %s475_s1 = inlined_call_operand.vmem [shape: f32[2,8,8,3], index: 1, kind: output, shape index: {}]  }
   0x1   :  { %v8_v0 = vld [vmem:[%s474_s0] sm:$0xff]  ;;  %v160_v1 = vld [vmem:[%s474_s0 + $0x8] sm:$0xff]  ;;  %v176_v2 = vld [vmem:[%s474_s0 + $0x10] sm:$0xff] }
   0x2   :  { %v41_v3 = vadd.f32 %v160_v1, %v8_v0  ;;  %v9_v4 = vld [vmem:[%s474_s0 + $0x20] sm:$0xff]  ;;  %v161_v5 = vld [vmem:[%s474_s0 + $0x28] sm:$0xff]  ;;  %v192_v6 = vld [vmem:[%s474_s0 + $0x18] sm:$0xff] }
   0x3   :  { %v42_v7 = vadd.f32 %v161_v5, %v9_v4  ;;  %v177_v8 = vld [vmem:[%s474_s0 + $0x30] sm:$0xff]  ;;  %v10_v9 = vld [vmem:[%s474_s0 + $0x40] sm:$0xff]  ;;  %v193_v11 = vld [vmem:[%s474_s0 + $0x38] sm:$0xff] }
   0x4   :  { %v74_v10 = vadd.f32 %v176_v2, %v41_v3  ;;  %v162_v12 = vld [vmem:[%s474_s0 + $0x48] sm:$0xff]  ;;  %v178_v13 = vld [vmem:[%s474_s0 + $0x50] sm:$0xff]  ;;  %v11_v16 = vld [vmem:[%s474_s0 + $0x60] sm:$0xff] }
   0x5   :  { %v75_v14 = vadd.f32 %v177_v8, %v42_v7  ;;  %v43_v15 = vadd.f32 %v162_v12, %v10_v9  ;;  %v163_v17 = vld [vmem:[%s474_s0 + $0x68] sm:$0xff]  ;;  %v179_v18 = vld [vmem:[%s474_s0 + $0x70] sm:$0xff]  ;;  %v194_v20 = vld [vmem:[%s474_s0 + $0x58] sm:$0xff] }
   0x6   :  { %v107_v19 = vadd.f32 %v192_v6, %v74_v10  ;;  %v44_v21 = vadd.f32 %v163_v17, %v11_v16  ;;  %v12_v22 = vld [vmem:[%s474_s0 + $0x80] sm:$0xff]  ;;  %v164_v23 = vld [vmem:[%s474_s0 + $0x88] sm:$0xff]  ;;  %v195_v26 = vld [vmem:[%s474_s0 + $0x78] sm:$0xff] }
   0x7   :  { %v108_v24 = vadd.f32 %v193_v11, %v75_v14  ;;  %v76_v25 = vadd.f32 %v178_v13, %v43_v15  ;;  %v45_v27 = vadd.f32 %v164_v23, %v12_v22  ;;  %v180_v28 = vld [vmem:[%s474_s0 + $0x90] sm:$0xff]  ;;  %v13_v29 = vld [vmem:[%s474_s0 + $0xa0] sm:$0xff]  ;;  %v196_v32 = vld [vmem:[%s474_s0 + $0x98] sm:$0xff] }
   0x8   :  { %v123_v30 = vmul.f32 0.25, %v107_v19  ;;  %v77_v31 = vadd.f32 %v179_v18, %v44_v21  ;;  %v165_v33 = vld [vmem:[%s474_s0 + $0xa8] sm:$0xff]  ;;  %v181_v34 = vld [vmem:[%s474_s0 + $0xb0] sm:$0xff]  ;;  %v14_v39 = vld [vmem:[%s474_s0 + $0xc0] sm:$0xff] }
   0x9   :  { %v124_v35 = vmul.f32 0.25, %v108_v24  ;;  %v109_v36 = vadd.f32 %v194_v20, %v76_v25  ;;  %v78_v37 = vadd.f32 %v180_v28, %v45_v27  ;;  %v46_v38 = vadd.f32 %v165_v33, %v13_v29  ;;  %v166_v40 = vld [vmem:[%s474_s0 + $0xc8] sm:$0xff]  ;;  %v182_v41 = vld [vmem:[%s474_s0 + $0xd0] sm:$0xff]  ;;  %v197_v43 = vld [vmem:[%s474_s0 + $0xb8] sm:$0xff] }
   0xa   :  { %140 = vst.msk [vmem:[%s475_s1] sm:$0xff] %vm139_vm0, %v123_v30  ;;  %v110_v42 = vadd.f32 %v195_v26, %v77_v31  ;;  %v47_v44 = vadd.f32 %v166_v40, %v14_v39  ;;  %v15_v45 = vld [vmem:[%s474_s0 + $0xe0] sm:$0xff]  ;;  %v167_v46 = vld [vmem:[%s474_s0 + $0xe8] sm:$0xff]  ;;  %v198_v50 = vld [vmem:[%s474_s0 + $0xd8] sm:$0xff] }
   0xb   :  { %141 = vst.msk [vmem:[%s475_s1 + $0x8] sm:$0xff] %vm139_vm0, %v124_v35  ;;  %v125_v47 = vmul.f32 0.25, %v109_v36  ;;  %v111_v48 = vadd.f32 %v196_v32, %v78_v37  ;;  %v79_v49 = vadd.f32 %v181_v34, %v46_v38  ;;  %v48_v51 = vadd.f32 %v167_v46, %v15_v45  ;;  %v183_v52 = vld [vmem:[%s474_s0 + $0xf0] sm:$0xff]  ;;  %v16_v53 = vld [vmem:[%s474_s0 + $0x100] sm:$0xff]  ;;  %v199_v56 = vld [vmem:[%s474_s0 + $0xf8] sm:$0xff] }
   0xc   :  { %v126_v54 = vmul.f32 0.25, %v110_v42  ;;  %v80_v55 = vadd.f32 %v182_v41, %v47_v44  ;;  %v168_v57 = vld [vmem:[%s474_s0 + $0x108] sm:$0xff]  ;;  %v184_v58 = vld [vmem:[%s474_s0 + $0x110] sm:$0xff]  ;;  %v17_v63 = vld [vmem:[%s474_s0 + $0x120] sm:$0xff] }
   0xd   :  { %142 = vst.msk [vmem:[%s475_s1 + $0x10] sm:$0xff] %vm139_vm0, %v125_v47  ;;  %v127_v59 = vmul.f32 0.25, %v111_v48  ;;  %v112_v60 = vadd.f32 %v197_v43, %v79_v49  ;;  %v81_v61 = vadd.f32 %v183_v52, %v48_v51  ;;  %v49_v62 = vadd.f32 %v168_v57, %v16_v53  ;;  %v169_v0 = vld [vmem:[%s474_s0 + $0x128] sm:$0xff]  ;;  %v185_v1 = vld [vmem:[%s474_s0 + $0x130] sm:$0xff]  ;;  %v200_v3 = vld [vmem:[%s474_s0 + $0x118] sm:$0xff] }
   0xe   :  { %143 = vst.msk [vmem:[%s475_s1 + $0x18] sm:$0xff] %vm139_vm0, %v126_v54  ;;  %v113_v2 = vadd.f32 %v198_v50, %v80_v55  ;;  %v50_v4 = vadd.f32 %v169_v0, %v17_v63  ;;  %v18_v5 = vld [vmem:[%s474_s0 + $0x140] sm:$0xff]  ;;  %v170_v6 = vld [vmem:[%s474_s0 + $0x148] sm:$0xff]  ;;  %v201_v10 = vld [vmem:[%s474_s0 + $0x138] sm:$0xff] }
   0xf   :  { %144 = vst.msk [vmem:[%s475_s1 + $0x20] sm:$0xff] %vm139_vm0, %v127_v59  ;;  %v128_v7 = vmul.f32 0.25, %v112_v60  ;;  %v114_v8 = vadd.f32 %v199_v56, %v81_v61  ;;  %v82_v9 = vadd.f32 %v184_v58, %v49_v62  ;;  %v51_v11 = vadd.f32 %v170_v6, %v18_v5  ;;  %v186_v12 = vld [vmem:[%s474_s0 + $0x150] sm:$0xff]  ;;  %v19_v13 = vld [vmem:[%s474_s0 + $0x160] sm:$0xff]  ;;  %v202_v16 = vld [vmem:[%s474_s0 + $0x158] sm:$0xff] }
  0x10   :  { %v129_v14 = vmul.f32 0.25, %v113_v2  ;;  %v83_v15 = vadd.f32 %v185_v1, %v50_v4  ;;  %v171_v17 = vld [vmem:[%s474_s0 + $0x168] sm:$0xff]  ;;  %v187_v18 = vld [vmem:[%s474_s0 + $0x170] sm:$0xff]  ;;  %v20_v23 = vld [vmem:[%s474_s0 + $0x180] sm:$0xff] }
  0x11   :  { %145 = vst.msk [vmem:[%s475_s1 + $0x28] sm:$0xff] %vm139_vm0, %v128_v7  ;;  %v130_v19 = vmul.f32 0.25, %v114_v8  ;;  %v115_v20 = vadd.f32 %v200_v3, %v82_v9  ;;  %v84_v21 = vadd.f32 %v186_v12, %v51_v11  ;;  %v52_v22 = vadd.f32 %v171_v17, %v19_v13  ;;  %v172_v24 = vld [vmem:[%s474_s0 + $0x188] sm:$0xff]  ;;  %v188_v25 = vld [vmem:[%s474_s0 + $0x190] sm:$0xff]  ;;  %v203_v27 = vld [vmem:[%s474_s0 + $0x178] sm:$0xff] }
  0x12   :  { %146 = vst.msk [vmem:[%s475_s1 + $0x30] sm:$0xff] %vm139_vm0, %v129_v14  ;;  %v116_v26 = vadd.f32 %v201_v10, %v83_v15  ;;  %v53_v28 = vadd.f32 %v172_v24, %v20_v23  ;;  %v21_v29 = vld [vmem:[%s474_s0 + $0x1a0] sm:$0xff]  ;;  %v173_v30 = vld [vmem:[%s474_s0 + $0x1a8] sm:$0xff]  ;;  %v204_v34 = vld [vmem:[%s474_s0 + $0x198] sm:$0xff] }
  0x13   :  { %147 = vst.msk [vmem:[%s475_s1 + $0x38] sm:$0xff] %vm139_vm0, %v130_v19  ;;  %v131_v31 = vmul.f32 0.25, %v115_v20  ;;  %v117_v32 = vadd.f32 %v202_v16, %v84_v21  ;;  %v85_v33 = vadd.f32 %v187_v18, %v52_v22  ;;  %v54_v35 = vadd.f32 %v173_v30, %v21_v29  ;;  %v189_v36 = vld [vmem:[%s474_s0 + $0x1b0] sm:$0xff]  ;;  %v22_v37 = vld [vmem:[%s474_s0 + $0x1c0] sm:$0xff]  ;;  %v205_v40 = vld [vmem:[%s474_s0 + $0x1b8] sm:$0xff] }
  0x14   :  { %v132_v38 = vmul.f32 0.25, %v116_v26  ;;  %v86_v39 = vadd.f32 %v188_v25, %v53_v28  ;;  %v174_v41 = vld [vmem:[%s474_s0 + $0x1c8] sm:$0xff]  ;;  %v190_v42 = vld [vmem:[%s474_s0 + $0x1d0] sm:$0xff]  ;;  %v23_v47 = vld [vmem:[%s474_s0 + $0x1e0] sm:$0xff] }
  0x15   :  { %148 = vst.msk [vmem:[%s475_s1 + $0x40] sm:$0xff] %vm139_vm0, %v131_v31  ;;  %v133_v43 = vmul.f32 0.25, %v117_v32  ;;  %v118_v44 = vadd.f32 %v203_v27, %v85_v33  ;;  %v87_v45 = vadd.f32 %v189_v36, %v54_v35  ;;  %v55_v46 = vadd.f32 %v174_v41, %v22_v37  ;;  %v175_v48 = vld [vmem:[%s474_s0 + $0x1e8] sm:$0xff]  ;;  %v191_v49 = vld [vmem:[%s474_s0 + $0x1f0] sm:$0xff]  ;;  %v206_v51 = vld [vmem:[%s474_s0 + $0x1d8] sm:$0xff] }
  0x16   :  { %149 = vst.msk [vmem:[%s475_s1 + $0x48] sm:$0xff] %vm139_vm0, %v132_v38  ;;  %v119_v50 = vadd.f32 %v204_v34, %v86_v39  ;;  %v56_v52 = vadd.f32 %v175_v48, %v23_v47  ;;  %v207_v56 = vld [vmem:[%s474_s0 + $0x1f8] sm:$0xff] }
  0x17   :  { %150 = vst.msk [vmem:[%s475_s1 + $0x50] sm:$0xff] %vm139_vm0, %v133_v43  ;;  %v134_v53 = vmul.f32 0.25, %v118_v44  ;;  %v120_v54 = vadd.f32 %v205_v40, %v87_v45  ;;  %v88_v55 = vadd.f32 %v190_v42, %v55_v46 }
  0x18   :  { %v135_v57 = vmul.f32 0.25, %v119_v50  ;;  %v89_v58 = vadd.f32 %v191_v49, %v56_v52 }
  0x19   :  { %151 = vst.msk [vmem:[%s475_s1 + $0x58] sm:$0xff] %vm139_vm0, %v134_v53  ;;  %v136_v59 = vmul.f32 0.25, %v120_v54  ;;  %v121_v60 = vadd.f32 %v206_v51, %v88_v55 }
  0x1a   :  { %152 = vst.msk [vmem:[%s475_s1 + $0x60] sm:$0xff] %vm139_vm0, %v135_v57  ;;  %v122_v61 = vadd.f32 %v207_v56, %v89_v58 }
  0x1b   :  { %153 = vst.msk [vmem:[%s475_s1 + $0x68] sm:$0xff] %vm139_vm0, %v136_v59  ;;  %v137_v62 = vmul.f32 0.25, %v121_v60 }
  0x1c   :  { %v138_v63 = vmul.f32 0.25, %v122_v61 }
  0x1d   :  { %154 = vst.msk [vmem:[%s475_s1 + $0x70] sm:$0xff] %vm139_vm0, %v137_v62 }
  0x1e   :  { %155 = vst.msk [vmem:[%s475_s1 + $0x78] sm:$0xff] %vm139_vm0, %v138_v63 }

// kernel: discriminator_forward.14
= control target key start
LH: loop header
LB: loop body
LE: loop exit
PB: predicated region body
PF: predicated region fallthrough
CT: control target
= control target key end

     0   :  { %vm104_vm0 = vcmask 1040384   ;;  %vm105_vm1 = vcmask 1041408   ;;  %vm79_vm2 = vcmask 23552   ;;  %v331_v1 = vmov 65535   ;;  %s456_s1 = inlined_call_operand.vmem [shape: bf16[3,128], index: 1, kind: input, shape index: {}]   ;;  %s457_s0 = inlined_call_operand.vmem [shape: bf16[128,3], index: 0, kind: input, shape index: {}]   ;;  %s458_s2 = inlined_call_operand.vmem [shape: f32[1,128], index: 2, kind: input, shape index: {}]   ;;  %s459_s3 = inlined_call_operand.vmem [shape: f32[128,128], index: 3, kind: output, shape index: {}]  }
   0x1   :  { %v31_v0 = vld [vmem:[%s456_s1] sm:$0x3]  ;;  %v106_v2 = vsel %vm104_vm0, 4294967295, %v331_v1  ;;  %v325_v7 = vld [vmem:[%s457_s0 + $0x8] sm:$0xff]   ;;  %v327_v9 = vld [vmem:[%s457_s0 + $0x10] sm:$0xff]  }
   0x2   :  { %v323_v3 = vld [vmem:[%s457_s0] sm:$0xff]   ;;  %v107_v4 = vsel %vm105_vm1, %v106_v2, 0  ;;  %v326_v8 = vld [vmem:[%s457_s0 + $0x28] sm:$0xff]   ;;  %v328_v10 = vld [vmem:[%s457_s0 + $0x30] sm:$0xff]  }
   0x3   :  { %v324_v5 = vld [vmem:[%s457_s0 + $0x20] sm:$0xff]   ;;  %v109_v6 = vand.u32 %v107_v4, %v31_v0  ;;  %304 = vmatprep.mubr.msk.bf16.mxu0 %vm79_vm2, %v323_v3  ;;  %v329_v11 = vld [vmem:[%s457_s0 + $0x18] sm:$0xff]  }
   0x4   :  { %312 = vmatprep.mubr.msk.bf16.mxu1 %vm79_vm2, %v324_v5  ;;  %v330_v12 = vld [vmem:[%s457_s0 + $0x38] sm:$0xff]   ;;  %v390_v13 = vld [vmem:[%s458_s2] ss:$0 sm:$0xff] }
   0x5   :  { %302 = vmatprep.subr.bf16.mxu0 %v109_v6  ;;  %320 = vmatprep.subr.bf16.mxu1 %v109_v6 }
   0x6   :  { %303 = vmatpush3.bf16.msra.mxu0 %v109_v6  ;;  %321 = vmatpush3.bf16.msra.mxu1 %v109_v6 }
   0x9   :  { %305 = vmatmul.mubr.msk.bf16.vlgmr.msra.gmra.mxu0 %vm79_vm2, %v325_v7  ;;  %313 = vmatmul.mubr.msk.bf16.vlgmr.msra.gmra.mxu1 %vm79_vm2, %v326_v8 }
   0xa   :  { %308 = vmatprep.mubr.msk.bf16.mxu0 %vm79_vm2, %v327_v9  ;;  %316 = vmatprep.mubr.msk.bf16.mxu1 %vm79_vm2, %v328_v10 }
  0x11   :  { %309 = vmatmul.mubr.msk.bf16.gmra.mxu0 %vm79_vm2, %v329_v11  ;;  %317 = vmatmul.mubr.msk.bf16.gmra.mxu1 %vm79_vm2, %v330_v12 }
  0xc9   :  { %v306_v14 = vpop.f32.mrf.mxu0  ;;  %v314_v15 = vpop.f32.mrf.mxu1 }
  0xca   :  { %v154_v16 = vadd.f32 %v306_v14, %v390_v13  ;;  %v186_v17 = vadd.f32 %v314_v15, %v390_v13 }
  0xcb   :  { %v145_v18 = vpop.f32.mrf.mxu0  ;;  %v177_v19 = vpop.f32.mrf.mxu1 }
  0xcc   :  { %vm210_vm3 = vcmp.ge.f32.partialorder %v154_v16, 0.0  ;;  %v226_v20 = vmul.f32 0.2, %v154_v16  ;;  %vm218_vm4 = vcmp.ge.f32.partialorder %v186_v17, 0.0  ;;  %v234_v21 = vmul.f32 0.2, %v186_v17 }
  0xcd   :  { %v146_v22 = vadd.f32 %v390_v13, %v145_v18  ;;  %v178_v23 = vadd.f32 %v390_v13, %v177_v19  ;;  %v307_v24 = vpop.f32.mrf.mxu0  ;;  %v315_v25 = vpop.f32.mrf.mxu1 }
  0xce   :  { %v242_v26 = vsel %vm210_vm3, %v154_v16, %v226_v20  ;;  %v250_v27 = vsel %vm218_vm4, %v186_v17, %v234_v21  ;;  %v157_v28 = vadd.f32 %v307_v24, %v390_v13  ;;  %v189_v29 = vadd.f32 %v315_v25, %v390_v13 }
  0xcf   :  { %258 = vst [vmem:[%s459_s3 + $0x10] sm:$0xff] %v242_v26  ;;  %266 = vst [vmem:[%s459_s3 + $0x50] sm:$0xff] %v250_v27  ;;  %vm208_vm5 = vcmp.ge.f32.partialorder %v146_v22, 0.0  ;;  %v224_v30 = vmul.f32 0.2, %v146_v22  ;;  %vm216_vm6 = vcmp.ge.f32.partialorder %v178_v23, 0.0  ;;  %v148_v32 = vpop.f32.mrf.mxu0  ;;  %v180_v33 = vpop.f32.mrf.mxu1 }
  0xd0   :  { %v232_v31 = vmul.f32 0.2, %v178_v23  ;;  %vm211_vm7 = vcmp.ge.f32.partialorder %v157_v28, 0.0  ;;  %v227_v34 = vmul.f32 0.2, %v157_v28  ;;  %vm219_vm8 = vcmp.ge.f32.partialorder %v189_v29, 0.0 }
  0xd1   :  { %v235_v35 = vmul.f32 0.2, %v189_v29  ;;  %v240_v36 = vsel %vm208_vm5, %v146_v22, %v224_v30  ;;  %v149_v38 = vadd.f32 %v390_v13, %v148_v32  ;;  %v181_v39 = vadd.f32 %v390_v13, %v180_v33  ;;  %v310_v40 = vpop.f32.mrf.mxu0  ;;  %v318_v41 = vpop.f32.mrf.mxu1 }
  0xd2   :  { %v248_v37 = vsel %vm216_vm6, %v178_v23, %v232_v31  ;;  %256 = vst [vmem:[%s459_s3] sm:$0xff] %v240_v36  ;;  %v243_v42 = vsel %vm211_vm7, %v157_v28, %v227_v34  ;;  %v170_v44 = vadd.f32 %v310_v40, %v390_v13  ;;  %v202_v45 = vadd.f32 %v318_v41, %v390_v13 }
  0xd3   :  { %264 = vst [vmem:[%s459_s3 + $0x40] sm:$0xff] %v248_v37  ;;  %v251_v43 = vsel %vm219_vm8, %v189_v29, %v235_v35  ;;  %259 = vst [vmem:[%s459_s3 + $0x18] sm:$0xff] %v243_v42  ;;  %vm209_vm9 = vcmp.ge.f32.partialorder %v149_v38, 0.0  ;;  %v225_v46 = vmul.f32 0.2, %v149_v38  ;;  %vm217_vm10 = vcmp.ge.f32.partialorder %v181_v39, 0.0  ;;  %v161_v48 = vpop.f32.mrf.mxu0  ;;  %v193_v49 = vpop.f32.mrf.mxu1 }
  0xd4   :  { %267 = vst [vmem:[%s459_s3 + $0x58] sm:$0xff] %v251_v43  ;;  %v233_v47 = vmul.f32 0.2, %v181_v39  ;;  %vm214_vm11 = vcmp.ge.f32.partialorder %v170_v44, 0.0  ;;  %v230_v50 = vmul.f32 0.2, %v170_v44  ;;  %v162_v54 = vadd.f32 %v390_v13, %v161_v48 }
  0xd5   :  { %vm222_vm12 = vcmp.ge.f32.partialorder %v202_v45, 0.0  ;;  %v238_v51 = vmul.f32 0.2, %v202_v45  ;;  %v241_v52 = vsel %vm209_vm9, %v149_v38, %v225_v46  ;;  %v194_v55 = vadd.f32 %v390_v13, %v193_v49  ;;  %v311_v56 = vpop.f32.mrf.mxu0  ;;  %v319_v57 = vpop.f32.mrf.mxu1 }
  0xd6   :  { %v249_v53 = vsel %vm217_vm10, %v181_v39, %v233_v47  ;;  %257 = vst [vmem:[%s459_s3 + $0x8] sm:$0xff] %v241_v52  ;;  %v246_v58 = vsel %vm214_vm11, %v170_v44, %v230_v50  ;;  %v173_v60 = vadd.f32 %v311_v56, %v390_v13  ;;  %v205_v61 = vadd.f32 %v319_v57, %v390_v13 }
  0xd7   :  { %265 = vst [vmem:[%s459_s3 + $0x48] sm:$0xff] %v249_v53  ;;  %v254_v59 = vsel %vm222_vm12, %v202_v45, %v238_v51  ;;  %262 = vst [vmem:[%s459_s3 + $0x30] sm:$0xff] %v246_v58  ;;  %vm212_vm13 = vcmp.ge.f32.partialorder %v162_v54, 0.0  ;;  %v228_v62 = vmul.f32 0.2, %v162_v54  ;;  %vm220_vm14 = vcmp.ge.f32.partialorder %v194_v55, 0.0  ;;  %v164_v0 = vpop.f32.mrf.mxu0  ;;  %v196_v1 = vpop.f32.mrf.mxu1 }
  0xd8   :  { %270 = vst [vmem:[%s459_s3 + $0x70] sm:$0xff] %v254_v59  ;;  %v236_v63 = vmul.f32 0.2, %v194_v55  ;;  %vm215_vm15 = vcmp.ge.f32.partialorder %v173_v60, 0.0  ;;  %v231_v2 = vmul.f32 0.2, %v173_v60  ;;  %v165_v6 = vadd.f32 %v390_v13, %v164_v0 }
  0xd9   :  { %vm223_vm0 = vcmp.ge.f32.partialorder %v205_v61, 0.0  ;;  %v239_v3 = vmul.f32 0.2, %v205_v61  ;;  %v244_v4 = vsel %vm212_vm13, %v162_v54, %v228_v62  ;;  %v197_v7 = vadd.f32 %v390_v13, %v196_v1 }
  0xda   :  { %v252_v5 = vsel %vm220_vm14, %v194_v55, %v236_v63  ;;  %260 = vst [vmem:[%s459_s3 + $0x20] sm:$0xff] %v244_v4  ;;  %v247_v8 = vsel %vm215_vm15, %v173_v60, %v231_v2  ;;  %vm213_vm1 = vcmp.ge.f32.partialorder %v165_v6, 0.0  ;;  %v229_v10 = vmul.f32 0.2, %v165_v6 }
  0xdb   :  { %268 = vst [vmem:[%s459_s3 + $0x60] sm:$0xff] %v252_v5  ;;  %v255_v9 = vsel %vm223_vm0, %v205_v61, %v239_v3  ;;  %263 = vst [vmem:[%s459_s3 + $0x38] sm:$0xff] %v247_v8  ;;  %vm221_vm2 = vcmp.ge.f32.partialorder %v197_v7, 0.0  ;;  %v237_v11 = vmul.f32 0.2, %v197_v7 }
  0xdc   :  { %271 = vst [vmem:[%s459_s3 + $0x78] sm:$0xff] %v255_v9  ;;  %v245_v12 = vsel %vm213_vm1, %v165_v6, %v229_v10 }
  0xdd   :  { %v253_v13 = vsel %vm221_vm2, %v197_v7, %v237_v11  ;;  %261 = vst [vmem:[%s459_s3 + $0x28] sm:$0xff] %v245_v12 }
  0xde   :  { %269 = vst [vmem:[%s459_s3 + $0x68] sm:$0xff] %v253_v13 }

// kernel: discriminator_forward.17
= control target key start
LH: loop header
LB: loop body
LE: loop exit
PB: predicated region body
PF: predicated region fallthrough
CT: control target
= control target key end

     0   :  { %vm214_vm0 = vcmask 261120   ;;  %s649_s0 = inlined_call_operand.<no memory space> [shape: f32[1], index: 0, kind: input, shape index: {}]   ;;  %s650_s1 = inlined_call_operand.vmem [shape: f32[2,8,2,2,8,32], index: 1, kind: input, shape index: {}]   ;;  %s651_s2 = inlined_call_operand.vmem [shape: f32[2,8,8,32], index: 2, kind: input, shape index: {}]   ;;  %s652_s3 = inlined_call_operand.vmem [shape: f32[2,8,8,32], index: 3, kind: output, shape index: {}]  }
   0x1   :  { %v16_v0 = vld [vmem:[%s650_s1] sm:$0xff]  ;;  %v235_v1 = vld [vmem:[%s650_s1 + $0x8] sm:$0xff]  ;;  %v251_v2 = vld [vmem:[%s650_s1 + $0x10] sm:$0xff]  ;;  %s164_s20 = ssub.f32 1.0, %s649_s0  ;;  %v362_v24 = vstv %s649_s0 }
   0x2   :  { %v49_v3 = vadd.f32 %v235_v1, %v16_v0  ;;  %v267_v4 = vld [vmem:[%s650_s1 + $0x18] sm:$0xff]  ;;  %v17_v5 = vld [vmem:[%s650_s1 + $0x20] sm:$0xff]  ;;  %v236_v7 = vld [vmem:[%s650_s1 + $0x28] sm:$0xff] }
   0x3   :  { %v165_v6 = vld [vmem:[%s651_s2] sm:$0xff]  ;;  %v252_v8 = vld [vmem:[%s650_s1 + $0x30] sm:$0xff]  ;;  %v50_v10 = vadd.f32 %v236_v7, %v17_v5  ;;  %v268_v11 = vld [vmem:[%s650_s1 + $0x38] sm:$0xff]  ;;  %v339_v14 = vstv %s164_s20 }
   0x4   :  { %v82_v9 = vadd.f32 %v251_v2, %v49_v3  ;;  %v18_v12 = vld [vmem:[%s650_s1 + $0x40] sm:$0xff]  ;;  %v237_v13 = vld [vmem:[%s650_s1 + $0x48] sm:$0xff]  ;;  %v253_v17 = vld [vmem:[%s650_s1 + $0x50] sm:$0xff]  ;;  %v182_v31 = vmul.f32 %v339_v14, %v165_v6 }
   0x5   :  { %v166_v15 = vld [vmem:[%s651_s2 + $0x8] sm:$0xff]  ;;  %v51_v16 = vadd.f32 %v237_v13, %v18_v12  ;;  %v269_v18 = vld [vmem:[%s650_s1 + $0x58] sm:$0xff]  ;;  %v83_v20 = vadd.f32 %v252_v8, %v50_v10  ;;  %v19_v21 = vld [vmem:[%s650_s1 + $0x60] sm:$0xff] }
   0x6   :  { %v115_v19 = vadd.f32 %v267_v4, %v82_v9  ;;  %v238_v22 = vld [vmem:[%s650_s1 + $0x68] sm:$0xff]  ;;  %v254_v23 = vld [vmem:[%s650_s1 + $0x70] sm:$0xff]  ;;  %v270_v28 = vld [vmem:[%s650_s1 + $0x78] sm:$0xff]  ;;  %v183_v36 = vmul.f32 %v339_v14, %v166_v15 }
   0x7   :  { %v84_v25 = vadd.f32 %v253_v17, %v51_v16  ;;  %v167_v26 = vld [vmem:[%s651_s2 + $0x10] sm:$0xff]  ;;  %v52_v27 = vadd.f32 %v238_v22, %v19_v21  ;;  %v20_v29 = vld [vmem:[%s650_s1 + $0x80] sm:$0xff]  ;;  %v116_v32 = vadd.f32 %v268_v11, %v83_v20  ;;  %v168_v33 = vld [vmem:[%s651_s2 + $0x18] sm:$0xff] }
   0x8   :  { %v131_v30 = vmul.f32 0.25, %v115_v19  ;;  %v239_v34 = vld [vmem:[%s650_s1 + $0x88] sm:$0xff]  ;;  %v255_v35 = vld [vmem:[%s650_s1 + $0x90] sm:$0xff]  ;;  %v271_v40 = vld [vmem:[%s650_s1 + $0x98] sm:$0xff]  ;;  %v184_v45 = vmul.f32 %v339_v14, %v167_v26  ;;  %v185_v52 = vmul.f32 %v339_v14, %v168_v33 }
   0x9   :  { %v117_v37 = vadd.f32 %v269_v18, %v84_v25  ;;  %v85_v38 = vadd.f32 %v254_v23, %v52_v27  ;;  %v53_v39 = vadd.f32 %v239_v34, %v20_v29  ;;  %v21_v41 = vld [vmem:[%s650_s1 + $0xa0] sm:$0xff]  ;;  %v240_v42 = vld [vmem:[%s650_s1 + $0xa8] sm:$0xff]  ;;  %v132_v44 = vmul.f32 0.25, %v116_v32  ;;  %v256_v48 = vld [vmem:[%s650_s1 + $0xb0] sm:$0xff] }
   0xa   :  { %v148_v43 = vmul.f32 %v362_v24, %v131_v30  ;;  %v169_v46 = vld [vmem:[%s651_s2 + $0x20] sm:$0xff]  ;;  %v54_v47 = vadd.f32 %v240_v42, %v21_v41  ;;  %v272_v49 = vld [vmem:[%s650_s1 + $0xb8] sm:$0xff]  ;;  %v241_v55 = vld [vmem:[%s650_s1 + $0xc8] sm:$0xff] }
   0xb   :  { %v133_v50 = vmul.f32 0.25, %v117_v37  ;;  %v118_v51 = vadd.f32 %v270_v28, %v85_v38  ;;  %v86_v53 = vadd.f32 %v255_v35, %v53_v39  ;;  %v22_v54 = vld [vmem:[%s650_s1 + $0xc0] sm:$0xff]  ;;  %v257_v56 = vld [vmem:[%s650_s1 + $0xd0] sm:$0xff]  ;;  %v149_v58 = vmul.f32 %v362_v24, %v132_v44  ;;  %v170_v60 = vld [vmem:[%s651_s2 + $0x28] sm:$0xff] }
   0xc   :  { %v198_v57 = vadd.f32 %v182_v31, %v148_v43  ;;  %v87_v59 = vadd.f32 %v256_v48, %v54_v47  ;;  %v55_v61 = vadd.f32 %v241_v55, %v22_v54  ;;  %v23_v62 = vld [vmem:[%s650_s1 + $0xe0] sm:$0xff]  ;;  %v186_v2 = vmul.f32 %v339_v14, %v169_v46  ;;  %v273_v3 = vld [vmem:[%s650_s1 + $0xd8] sm:$0xff]  ;;  %v242_v4 = vld [vmem:[%s650_s1 + $0xe8] sm:$0xff] }
   0xd   :  { %v150_v63 = vmul.f32 %v362_v24, %v133_v50  ;;  %v134_v0 = vmul.f32 0.25, %v118_v51  ;;  %v119_v1 = vadd.f32 %v271_v40, %v86_v53  ;;  %v258_v5 = vld [vmem:[%s650_s1 + $0xf0] sm:$0xff]  ;;  %v199_v6 = vadd.f32 %v183_v36, %v149_v58  ;;  %v24_v11 = vld [vmem:[%s650_s1 + $0x100] sm:$0xff]  ;;  %v243_v12 = vld [vmem:[%s650_s1 + $0x108] sm:$0xff] }
   0xe   :  { %215 = vst.msk [vmem:[%s652_s3] sm:$0xff] %vm214_vm0, %v198_v57  ;;  %v120_v7 = vadd.f32 %v272_v49, %v87_v59  ;;  %v88_v8 = vadd.f32 %v257_v56, %v55_v61  ;;  %v171_v9 = vld [vmem:[%s651_s2 + $0x30] sm:$0xff]  ;;  %v56_v10 = vadd.f32 %v242_v4, %v23_v62  ;;  %v187_v17 = vmul.f32 %v339_v14, %v170_v60  ;;  %v274_v18 = vld [vmem:[%s650_s1 + $0xf8] sm:$0xff]  ;;  %v25_v26 = vld [vmem:[%s650_s1 + $0x120] sm:$0xff] }
   0xf   :  { %v200_v13 = vadd.f32 %v184_v45, %v150_v63  ;;  %v151_v15 = vmul.f32 %v362_v24, %v134_v0  ;;  %v135_v16 = vmul.f32 0.25, %v119_v1  ;;  %v172_v19 = vld [vmem:[%s651_s2 + $0x38] sm:$0xff]  ;;  %v259_v20 = vld [vmem:[%s650_s1 + $0x110] sm:$0xff]  ;;  %216 = vst.msk [vmem:[%s652_s3 + $0x8] sm:$0xff] %vm214_vm0, %v199_v6  ;;  %v57_v25 = vadd.f32 %v243_v12, %v24_v11  ;;  %v244_v27 = vld [vmem:[%s650_s1 + $0x128] sm:$0xff] }
  0x10   :  { %v136_v21 = vmul.f32 0.25, %v120_v7  ;;  %v121_v22 = vadd.f32 %v273_v3, %v88_v8  ;;  %v89_v23 = vadd.f32 %v258_v5, %v56_v10  ;;  %v260_v28 = vld [vmem:[%s650_s1 + $0x130] sm:$0xff]  ;;  %v188_v31 = vmul.f32 %v339_v14, %v171_v9  ;;  %v275_v32 = vld [vmem:[%s650_s1 + $0x118] sm:$0xff]  ;;  %v173_v33 = vld [vmem:[%s651_s2 + $0x40] sm:$0xff] }
  0x11   :  { %217 = vst.msk [vmem:[%s652_s3 + $0x10] sm:$0xff] %vm214_vm0, %v200_v13  ;;  %v201_v29 = vadd.f32 %v185_v52, %v151_v15  ;;  %v152_v30 = vmul.f32 %v362_v24, %v135_v16  ;;  %v58_v34 = vadd.f32 %v244_v27, %v25_v26  ;;  %v26_v35 = vld [vmem:[%s650_s1 + $0x140] sm:$0xff]  ;;  %v90_v39 = vadd.f32 %v259_v20, %v57_v25  ;;  %v276_v40 = vld [vmem:[%s650_s1 + $0x138] sm:$0xff]  ;;  %v245_v41 = vld [vmem:[%s650_s1 + $0x148] sm:$0xff] }
  0x12   :  { %v153_v36 = vmul.f32 %v362_v24, %v136_v21  ;;  %v137_v37 = vmul.f32 0.25, %v121_v22  ;;  %v122_v38 = vadd.f32 %v274_v18, %v89_v23  ;;  %v261_v42 = vld [vmem:[%s650_s1 + $0x150] sm:$0xff]  ;;  %v189_v44 = vmul.f32 %v339_v14, %v172_v19  ;;  %v174_v46 = vld [vmem:[%s651_s2 + $0x48] sm:$0xff]  ;;  %v27_v48 = vld [vmem:[%s650_s1 + $0x160] sm:$0xff] }
  0x13   :  { %218 = vst.msk [vmem:[%s652_s3 + $0x18] sm:$0xff] %vm214_vm0, %v201_v29  ;;  %v202_v43 = vadd.f32 %v186_v2, %v152_v30  ;;  %v91_v45 = vadd.f32 %v260_v28, %v58_v34  ;;  %v59_v47 = vadd.f32 %v245_v41, %v26_v35  ;;  %v246_v49 = vld [vmem:[%s650_s1 + $0x168] sm:$0xff]  ;;  %v123_v53 = vadd.f32 %v275_v32, %v90_v39  ;;  %v277_v54 = vld [vmem:[%s650_s1 + $0x158] sm:$0xff]  ;;  %v262_v55 = vld [vmem:[%s650_s1 + $0x170] sm:$0xff] }
  0x14   :  { %v203_v50 = vadd.f32 %v187_v17, %v153_v36  ;;  %v154_v51 = vmul.f32 %v362_v24, %v137_v37  ;;  %v138_v52 = vmul.f32 0.25, %v122_v38  ;;  %v190_v56 = vmul.f32 %v339_v14, %v173_v33  ;;  %v175_v59 = vld [vmem:[%s651_s2 + $0x50] sm:$0xff]  ;;  %v28_v61 = vld [vmem:[%s650_s1 + $0x180] sm:$0xff]  ;;  %v247_v62 = vld [vmem:[%s650_s1 + $0x188] sm:$0xff] }
  0x15   :  { %219 = vst.msk [vmem:[%s652_s3 + $0x20] sm:$0xff] %vm214_vm0, %v202_v43  ;;  %v124_v57 = vadd.f32 %v276_v40, %v91_v45  ;;  %v92_v58 = vadd.f32 %v261_v42, %v59_v47  ;;  %v60_v60 = vadd.f32 %v246_v49, %v27_v48  ;;  %v139_v1 = vmul.f32 0.25, %v123_v53  ;;  %v278_v3 = vld [vmem:[%s650_s1 + $0x178] sm:$0xff]  ;;  %v263_v4 = vld [vmem:[%s650_s1 + $0x190] sm:$0xff]  ;;  %v29_v5 = vld [vmem:[%s650_s1 + $0x1a0] sm:$0xff] }
  0x16   :  { %220 = vst.msk [vmem:[%s652_s3 + $0x28] sm:$0xff] %vm214_vm0, %v203_v50  ;;  %v204_v63 = vadd.f32 %v188_v31, %v154_v51  ;;  %v155_v0 = vmul.f32 %v362_v24, %v138_v52  ;;  %v191_v2 = vmul.f32 %v339_v14, %v174_v46  ;;  %v176_v9 = vld [vmem:[%s651_s2 + $0x58] sm:$0xff]  ;;  %v61_v10 = vadd.f32 %v247_v62, %v28_v61  ;;  %v248_v11 = vld [vmem:[%s650_s1 + $0x1a8] sm:$0xff]  ;;  %v264_v12 = vld [vmem:[%s650_s1 + $0x1b0] sm:$0xff] }
  0x17   :  { %v140_v6 = vmul.f32 0.25, %v124_v57  ;;  %v125_v7 = vadd.f32 %v277_v54, %v92_v58  ;;  %v93_v8 = vadd.f32 %v262_v55, %v60_v60  ;;  %v156_v15 = vmul.f32 %v362_v24, %v139_v1  ;;  %v279_v17 = vld [vmem:[%s650_s1 + $0x198] sm:$0xff]  ;;  %v30_v19 = vld [vmem:[%s650_s1 + $0x1c0] sm:$0xff]  ;;  %v249_v20 = vld [vmem:[%s650_s1 + $0x1c8] sm:$0xff] }
  0x18   :  { %221 = vst.msk [vmem:[%s652_s3 + $0x30] sm:$0xff] %vm214_vm0, %v204_v63  ;;  %v205_v13 = vadd.f32 %v189_v44, %v155_v0  ;;  %v192_v16 = vmul.f32 %v339_v14, %v175_v59  ;;  %v62_v18 = vadd.f32 %v248_v11, %v29_v5  ;;  %v94_v25 = vadd.f32 %v263_v4, %v61_v10  ;;  %v280_v26 = vld [vmem:[%s650_s1 + $0x1b8] sm:$0xff]  ;;  %v265_v27 = vld [vmem:[%s650_s1 + $0x1d0] sm:$0xff]  ;;  %v177_v30 = vld [vmem:[%s651_s2 + $0x60] sm:$0xff] }
  0x19   :  { %v157_v21 = vmul.f32 %v362_v24, %v140_v6  ;;  %v141_v22 = vmul.f32 0.25, %v125_v7  ;;  %v126_v23 = vadd.f32 %v278_v3, %v93_v8  ;;  %v206_v28 = vadd.f32 %v190_v56, %v156_v15  ;;  %v31_v33 = vld [vmem:[%s650_s1 + $0x1e0] sm:$0xff]  ;;  %v250_v34 = vld [vmem:[%s650_s1 + $0x1e8] sm:$0xff]  ;;  %v281_v40 = vld [vmem:[%s650_s1 + $0x1d8] sm:$0xff] }
  0x1a   :  { %222 = vst.msk [vmem:[%s652_s3 + $0x38] sm:$0xff] %vm214_vm0, %v205_v13  ;;  %v193_v29 = vmul.f32 %v339_v14, %v176_v9  ;;  %v95_v31 = vadd.f32 %v264_v12, %v62_v18  ;;  %v63_v32 = vadd.f32 %v249_v20, %v30_v19  ;;  %v127_v38 = vadd.f32 %v279_v17, %v94_v25  ;;  %v178_v39 = vld [vmem:[%s651_s2 + $0x68] sm:$0xff]  ;;  %v266_v41 = vld [vmem:[%s650_s1 + $0x1f0] sm:$0xff]  ;;  %v282_v50 = vld [vmem:[%s650_s1 + $0x1f8] sm:$0xff] }
  0x1b   :  { %v207_v35 = vadd.f32 %v191_v2, %v157_v21  ;;  %v158_v36 = vmul.f32 %v362_v24, %v141_v22  ;;  %v142_v37 = vmul.f32 0.25, %v126_v23  ;;  %223 = vst.msk [vmem:[%s652_s3 + $0x40] sm:$0xff] %vm214_vm0, %v206_v28  ;;  %v64_v44 = vadd.f32 %v250_v34, %v31_v33  ;;  %v179_v49 = vld [vmem:[%s651_s2 + $0x70] sm:$0xff]  ;;  %v180_v57 = vld [vmem:[%s651_s2 + $0x78] sm:$0xff] }
  0x1c   :  { %v128_v42 = vadd.f32 %v280_v26, %v95_v31  ;;  %v96_v43 = vadd.f32 %v265_v27, %v63_v32  ;;  %v143_v47 = vmul.f32 0.25, %v127_v38  ;;  %v194_v48 = vmul.f32 %v339_v14, %v177_v30 }
  0x1d   :  { %224 = vst.msk [vmem:[%s652_s3 + $0x48] sm:$0xff] %vm214_vm0, %v207_v35  ;;  %v208_v45 = vadd.f32 %v192_v16, %v158_v36  ;;  %v159_v46 = vmul.f32 %v362_v24, %v142_v37  ;;  %v195_v52 = vmul.f32 %v339_v14, %v178_v39  ;;  %v97_v54 = vadd.f32 %v266_v41, %v64_v44 }
  0x1e   :  { %v144_v51 = vmul.f32 0.25, %v128_v42  ;;  %v129_v53 = vadd.f32 %v281_v40, %v96_v43  ;;  %v160_v56 = vmul.f32 %v362_v24, %v143_v47  ;;  %v196_v60 = vmul.f32 %v339_v14, %v179_v49 }
  0x1f   :  { %225 = vst.msk [vmem:[%s652_s3 + $0x50] sm:$0xff] %vm214_vm0, %v208_v45  ;;  %v209_v55 = vadd.f32 %v193_v29, %v159_v46  ;;  %v130_v61 = vadd.f32 %v282_v50, %v97_v54  ;;  %v197_v2 = vmul.f32 %v339_v14, %v180_v57 }
  0x20   :  { %v161_v58 = vmul.f32 %v362_v24, %v144_v51  ;;  %v145_v59 = vmul.f32 0.25, %v129_v53  ;;  %v210_v62 = vadd.f32 %v194_v48, %v160_v56 }
  0x21   :  { %226 = vst.msk [vmem:[%s652_s3 + $0x58] sm:$0xff] %vm214_vm0, %v209_v55  ;;  %v146_v1 = vmul.f32 0.25, %v130_v61 }
  0x22   :  { %v211_v63 = vadd.f32 %v195_v52, %v161_v58  ;;  %v162_v0 = vmul.f32 %v362_v24, %v145_v59  ;;  %227 = vst.msk [vmem:[%s652_s3 + $0x60] sm:$0xff] %vm214_vm0, %v210_v62 }
  0x23   :  { %v163_v4 = vmul.f32 %v362_v24, %v146_v1 }
  0x24   :  { %228 = vst.msk [vmem:[%s652_s3 + $0x68] sm:$0xff] %vm214_vm0, %v211_v63  ;;  %v212_v3 = vadd.f32 %v196_v60, %v162_v0 }
  0x25   :  { %v213_v5 = vadd.f32 %v197_v2, %v163_v4 }
  0x26   :  { %229 = vst.msk [vmem:[%s652_s3 + $0x70] sm:$0xff] %vm214_vm0, %v212_v3 }
  0x27   :  { %230 = vst.msk [vmem:[%s652_s3 + $0x78] sm:$0xff] %vm214_vm0, %v213_v5 }

// kernel: discriminator_forward.20
= control target key start
LH: loop header
LB: loop body
LE: loop exit
PB: predicated region body
PF: predicated region fallthrough
CT: control target
= control target key end

     0   :  { %vm75_vm0 = vcmask 257024   ;;  %s250_s0 = inlined_call_operand.vmem [shape: f32[2,4,2,2,4,32], index: 0, kind: input, shape index: {}]   ;;  %s251_s1 = inlined_call_operand.vmem [shape: f32[2,4,4,32], index: 1, kind: output, shape index: {}]  }
   0x1   :  { %v8_v0 = vld [vmem:[%s250_s0] sm:$0xf]  ;;  %v88_v1 = vld [vmem:[%s250_s0 + $0x4] sm:$0xf]  ;;  %v96_v2 = vld [vmem:[%s250_s0 + $0x8] sm:$0xf] }
   0x2   :  { %v25_v3 = vadd.f32 %v88_v1, %v8_v0  ;;  %v104_v4 = vld [vmem:[%s250_s0 + $0xc] sm:$0xf]  ;;  %v9_v5 = vld [vmem:[%s250_s0 + $0x10] sm:$0xf]  ;;  %v89_v6 = vld [vmem:[%s250_s0 + $0x14] sm:$0xf] }
   0x3   :  { %v26_v7 = vadd.f32 %v89_v6, %v9_v5  ;;  %v97_v8 = vld [vmem:[%s250_s0 + $0x18] sm:$0xf]  ;;  %v105_v9 = vld [vmem:[%s250_s0 + $0x1c] sm:$0xf]  ;;  %v10_v10 = vld [vmem:[%s250_s0 + $0x20] sm:$0xf] }
   0x4   :  { %v42_v11 = vadd.f32 %v96_v2, %v25_v3  ;;  %v90_v12 = vld [vmem:[%s250_s0 + $0x24] sm:$0xf]  ;;  %v98_v13 = vld [vmem:[%s250_s0 + $0x28] sm:$0xf]  ;;  %v106_v14 = vld [vmem:[%s250_s0 + $0x2c] sm:$0xf] }
   0x5   :  { %v43_v15 = vadd.f32 %v97_v8, %v26_v7  ;;  %v27_v16 = vadd.f32 %v90_v12, %v10_v10  ;;  %v11_v17 = vld [vmem:[%s250_s0 + $0x30] sm:$0xf]  ;;  %v91_v18 = vld [vmem:[%s250_s0 + $0x34] sm:$0xf]  ;;  %v99_v19 = vld [vmem:[%s250_s0 + $0x38] sm:$0xf] }
   0x6   :  { %v59_v20 = vadd.f32 %v104_v4, %v42_v11  ;;  %v28_v21 = vadd.f32 %v91_v18, %v11_v17  ;;  %v107_v22 = vld [vmem:[%s250_s0 + $0x3c] sm:$0xf]  ;;  %v12_v23 = vld [vmem:[%s250_s0 + $0x40] sm:$0xf]  ;;  %v92_v24 = vld [vmem:[%s250_s0 + $0x44] sm:$0xf] }
   0x7   :  { %v60_v25 = vadd.f32 %v105_v9, %v43_v15  ;;  %v44_v26 = vadd.f32 %v98_v13, %v27_v16  ;;  %v29_v27 = vadd.f32 %v92_v24, %v12_v23  ;;  %v100_v28 = vld [vmem:[%s250_s0 + $0x48] sm:$0xf]  ;;  %v108_v29 = vld [vmem:[%s250_s0 + $0x4c] sm:$0xf]  ;;  %v13_v30 = vld [vmem:[%s250_s0 + $0x50] sm:$0xf] }
   0x8   :  { %v67_v31 = vmul.f32 0.25, %v59_v20  ;;  %v45_v32 = vadd.f32 %v99_v19, %v28_v21  ;;  %v93_v33 = vld [vmem:[%s250_s0 + $0x54] sm:$0xf]  ;;  %v101_v34 = vld [vmem:[%s250_s0 + $0x58] sm:$0xf] }
   0x9   :  { %v68_v35 = vmul.f32 0.25, %v60_v25  ;;  %v61_v36 = vadd.f32 %v106_v14, %v44_v26  ;;  %v46_v37 = vadd.f32 %v100_v28, %v29_v27  ;;  %v30_v38 = vadd.f32 %v93_v33, %v13_v30  ;;  %v14_v39 = vld [vmem:[%s250_s0 + $0x60] sm:$0xf]  ;;  %v109_v41 = vld [vmem:[%s250_s0 + $0x5c] sm:$0xf] }
   0xa   :  { %76 = vst.msk [vmem:[%s251_s1] sm:$0xf] %vm75_vm0, %v67_v31  ;;  %v62_v40 = vadd.f32 %v107_v22, %v45_v32  ;;  %v94_v42 = vld [vmem:[%s250_s0 + $0x64] sm:$0xf]  ;;  %v102_v43 = vld [vmem:[%s250_s0 + $0x68] sm:$0xf] }
   0xb   :  { %77 = vst.msk [vmem:[%s251_s1 + $0x4] sm:$0xf] %vm75_vm0, %v68_v35  ;;  %v69_v44 = vmul.f32 0.25, %v61_v36  ;;  %v63_v45 = vadd.f32 %v108_v29, %v46_v37  ;;  %v47_v46 = vadd.f32 %v101_v34, %v30_v38  ;;  %v31_v47 = vadd.f32 %v94_v42, %v14_v39  ;;  %v15_v48 = vld [vmem:[%s250_s0 + $0x70] sm:$0xf] }
   0xc   :  { %v95_v49 = vld [vmem:[%s250_s0 + $0x74] sm:$0xf]  ;;  %v70_v50 = vmul.f32 0.25, %v62_v40  ;;  %v110_v51 = vld [vmem:[%s250_s0 + $0x6c] sm:$0xf] }
   0xd   :  { %v32_v52 = vadd.f32 %v95_v49, %v15_v48  ;;  %v103_v53 = vld [vmem:[%s250_s0 + $0x78] sm:$0xf]  ;;  %78 = vst.msk [vmem:[%s251_s1 + $0x8] sm:$0xf] %vm75_vm0, %v69_v44  ;;  %v71_v54 = vmul.f32 0.25, %v63_v45  ;;  %v64_v55 = vadd.f32 %v109_v41, %v47_v46  ;;  %v48_v56 = vadd.f32 %v102_v43, %v31_v47 }
   0xe   :  { %v111_v57 = vld [vmem:[%s250_s0 + $0x7c] sm:$0xf]  ;;  %79 = vst.msk [vmem:[%s251_s1 + $0xc] sm:$0xf] %vm75_vm0, %v70_v50 }
   0xf   :  { %v49_v58 = vadd.f32 %v103_v53, %v32_v52  ;;  %80 = vst.msk [vmem:[%s251_s1 + $0x10] sm:$0xf] %vm75_vm0, %v71_v54  ;;  %v72_v59 = vmul.f32 0.25, %v64_v55  ;;  %v65_v60 = vadd.f32 %v110_v51, %v48_v56 }
  0x11   :  { %v66_v61 = vadd.f32 %v111_v57, %v49_v58  ;;  %81 = vst.msk [vmem:[%s251_s1 + $0x14] sm:$0xf] %vm75_vm0, %v72_v59  ;;  %v73_v62 = vmul.f32 0.25, %v65_v60 }
  0x13   :  { %v74_v63 = vmul.f32 0.25, %v66_v61  ;;  %82 = vst.msk [vmem:[%s251_s1 + $0x18] sm:$0xf] %vm75_vm0, %v73_v62 }
  0x15   :  { %83 = vst.msk [vmem:[%s251_s1 + $0x1c] sm:$0xf] %vm75_vm0, %v74_v63 }

// kernel: discriminator_forward.18
= control target key start
LH: loop header
LB: loop body
LE: loop exit
PB: predicated region body
PF: predicated region fallthrough
CT: control target
= control target key end

     0   :  { %vm318_vm0 = vcmask 261120   ;;  %s1066_s1 = inlined_call_operand.vmem [shape: bf16[288,128], index: 1, kind: input, shape index: {}]   ;;  %s1067_s0 = inlined_call_operand.vmem [shape: bf16[128,288], index: 0, kind: input, shape index: {}]   ;;  %s1068_s2 = inlined_call_operand.vmem [shape: f32[1,128], index: 2, kind: input, shape index: {}]   ;;  %s1069_s3 = inlined_call_operand.vmem [shape: f32[128,128], index: 3, kind: output, shape index: {}]  }
   0x1   :  { %v766_v0 = vld [vmem:[%s1066_s1 + $0x78] sm:$0xff]   ;;  %v768_v2 = vld [vmem:[%s1066_s1 + $0x70] sm:$0xff]   ;;  %v770_v4 = vld [vmem:[%s1066_s1 + $0x68] sm:$0xff]  }
   0x2   :  { %v767_v1 = vld [vmem:[%s1066_s1 + $0x38] sm:$0xff]   ;;  %656 = vmatprep.subr.bf16.mxu0 %v766_v0  ;;  %750 = vmatprep.subr.bf16.mxu1 %v766_v0  ;;  %v769_v3 = vld [vmem:[%s1066_s1 + $0x30] sm:$0xff]   ;;  %v771_v5 = vld [vmem:[%s1066_s1 + $0x28] sm:$0xff]  }
   0x3   :  { %657 = vmatpush3.bf16.msra.mxu0 %v767_v1  ;;  %758 = vmatpush3.bf16.msra.mxu1 %v767_v1  ;;  %v772_v6 = vld [vmem:[%s1066_s1 + $0x60] sm:$0xff]   ;;  %v774_v8 = vld [vmem:[%s1066_s1 + $0x58] sm:$0xff]   ;;  %v776_v10 = vld [vmem:[%s1066_s1 + $0x50] sm:$0xff]  }
   0x4   :  { %658 = vmatprep.subr.bf16.mxu0 %v768_v2  ;;  %751 = vmatprep.subr.bf16.mxu1 %v768_v2  ;;  %v773_v7 = vld [vmem:[%s1066_s1 + $0x20] sm:$0xff]   ;;  %v775_v9 = vld [vmem:[%s1066_s1 + $0x18] sm:$0xff]   ;;  %v777_v13 = vld [vmem:[%s1066_s1 + $0x10] sm:$0xff]  }
   0x5   :  { %v784_v11 = vld [vmem:[%s1067_s0 + $0x4] ss:$12 sps:$4 sm:$0xff]   ;;  %v787_v12 = vld [vmem:[%s1067_s0 + $0x94] ss:$12 sps:$4 sm:$0xff]   ;;  %v778_v14 = vld [vmem:[%s1066_s1 + $0x48] sm:$0xff]  }
   0x6   :  { %375 = vmatprep.mubr.bf16.mxu0 %v784_v11  ;;  %423 = vmatprep.mubr.bf16.mxu1 %v787_v12  ;;  %v779_v15 = vld [vmem:[%s1066_s1 + $0x8] sm:$0xff]   ;;  %v780_v16 = vld [vmem:[%s1066_s1 + $0x40] sm:$0xff]   ;;  %v785_v20 = vld [vmem:[%s1067_s0 + $0x90] ss:$12 sps:$4 sm:$0xff]  }
   0x7   :  { %659 = vmatpush3.bf16.msra.mxu0 %v769_v3  ;;  %759 = vmatpush3.bf16.msra.mxu1 %v769_v3  ;;  %v781_v17 = vld [vmem:[%s1066_s1] sm:$0xff]   ;;  %v788_v19 = vld [vmem:[%s1066_s1 + $0x88] sm:$0xff]   ;;  %v799_v28 = vld [vmem:[%s1067_s0 + $0x30] ss:$12 sps:$4 sm:$0xff]  }
   0x8   :  { %660 = vmatprep.subr.bf16.mxu0 %v770_v4  ;;  %752 = vmatprep.subr.bf16.mxu1 %v770_v4  ;;  %v782_v18 = vld [vmem:[%s1067_s0] ss:$12 sps:$4 sm:$0xff]   ;;  %v789_v21 = vld [vmem:[%s1067_s0 + $0x1c] ss:$12 sps:$4 sm:$0xff]   ;;  %v793_v24 = vld [vmem:[%s1067_s0 + $0x18] ss:$12 sps:$4 sm:$0xff]  }
   0x9   :  { %v791_v22 = vld [vmem:[%s1067_s0 + $0xac] ss:$12 sps:$4 sm:$0xff]   ;;  %v795_v23 = vld [vmem:[%s1066_s1 + $0x80] sm:$0xff]   ;;  %v794_v25 = vld [vmem:[%s1067_s0 + $0xa8] ss:$12 sps:$4 sm:$0xff]  }
   0xa   :  { %v796_v26 = vld [vmem:[%s1067_s0 + $0x34] ss:$12 sps:$4 sm:$0xff]   ;;  %v801_v30 = vld [vmem:[%s1067_s0 + $0x4c] ss:$12 sps:$4 sm:$0xff]   ;;  %v805_v33 = vld [vmem:[%s1067_s0 + $0x50] ss:$12 sps:$4 sm:$0xff]  }
   0xb   :  { %661 = vmatpush3.bf16.msra.mxu0 %v771_v5  ;;  %760 = vmatpush3.bf16.msra.mxu1 %v771_v5  ;;  %v798_v27 = vld [vmem:[%s1067_s0 + $0x8] ss:$12 sps:$4 sm:$0xff]   ;;  %v800_v29 = vld [vmem:[%s1067_s0 + $0x20] ss:$12 sps:$4 sm:$0xff]   ;;  %v803_v31 = vld [vmem:[%s1067_s0 + $0x38] ss:$12 sps:$4 sm:$0xff]  }
   0xc   :  { %662 = vmatprep.subr.bf16.mxu0 %v772_v6  ;;  %753 = vmatprep.subr.bf16.mxu1 %v772_v6  ;;  %v804_v32 = vld [vmem:[%s1067_s0 + $0x48] ss:$12 sps:$4 sm:$0xff]   ;;  %v806_v34 = vld [vmem:[%s1067_s0 + $0x64] ss:$12 sps:$4 sm:$0xff]   ;;  %v809_v36 = vld [vmem:[%s1067_s0 + $0x60] ss:$12 sps:$4 sm:$0xff]  }
   0xd   :  { %v808_v35 = vld [vmem:[%s1067_s0 + $0x68] ss:$12 sps:$4 sm:$0xff]   ;;  %v810_v37 = vld [vmem:[%s1067_s0 + $0x80] ss:$12 sps:$4 sm:$0xff]   ;;  %v813_v39 = vld [vmem:[%s1067_s0 + $0x98] ss:$12 sps:$4 sm:$0xff]  }
   0xe   :  { %v811_v38 = vld [vmem:[%s1067_s0 + $0x7c] ss:$12 sps:$4 sm:$0xff]   ;;  %v814_v40 = vld [vmem:[%s1067_s0 + $0x78] ss:$12 sps:$4 sm:$0xff]   ;;  %v989_v60 = vld [vmem:[%s1068_s2] ss:$0 sm:$0xff] }
   0xf   :  { %663 = vmatpush3.bf16.msra.mxu0 %v773_v7  ;;  %761 = vmatpush3.bf16.msra.mxu1 %v773_v7  ;;  %v815_v41 = vld [vmem:[%s1067_s0 + $0xb0] ss:$12 sps:$4 sm:$0xff]  }
  0x10   :  { %664 = vmatprep.subr.bf16.mxu0 %v774_v8  ;;  %754 = vmatprep.subr.bf16.mxu1 %v774_v8 }
  0x13   :  { %665 = vmatpush3.bf16.msra.mxu0 %v775_v9  ;;  %762 = vmatpush3.bf16.msra.mxu1 %v775_v9 }
  0x14   :  { %666 = vmatprep.subr.bf16.mxu0 %v776_v10  ;;  %755 = vmatprep.subr.bf16.mxu1 %v776_v10 }
  0x17   :  { %667 = vmatpush3.bf16.msra.mxu0 %v777_v13  ;;  %763 = vmatpush3.bf16.msra.mxu1 %v777_v13 }
  0x18   :  { %668 = vmatprep.subr.bf16.mxu0 %v778_v14  ;;  %756 = vmatprep.subr.bf16.mxu1 %v778_v14 }
  0x1b   :  { %669 = vmatpush3.bf16.msra.mxu0 %v779_v15  ;;  %764 = vmatpush3.bf16.msra.mxu1 %v779_v15 }
  0x1c   :  { %670 = vmatprep.subr.bf16.mxu0 %v780_v16  ;;  %757 = vmatprep.subr.bf16.mxu1 %v780_v16 }
  0x1f   :  { %671 = vmatpush3.bf16.msra.mxu0 %v781_v17  ;;  %765 = vmatpush3.bf16.msra.mxu1 %v781_v17 }
  0x20   :  { %730 = vmatprep.subr.bf16.mxu1 %v788_v19 }
  0x22   :  { %376 = vmatmul.mubr.bf16.vlgmr.msra.gmra.mxu0 %v782_v18  ;;  %424 = vmatmul.mubr.bf16.vlgmr.msra.gmra.mxu1 %v785_v20 }
  0x23   :  { %731 = vmatpush3.bf16.msra.mxu1 %v788_v19  ;;  %383 = vmatprep.mubr.bf16.mxu0 %v789_v21 }
  0x24   :  { %431 = vmatprep.mubr.bf16.mxu1 %v791_v22  ;;  %732 = vmatprep.subr.bf16.mxu1 %v795_v23 }
  0x27   :  { %733 = vmatpush3.bf16.msra.mxu1 %v795_v23 }
  0x2a   :  { %384 = vmatmul.mubr.bf16.gmra.mxu0 %v793_v24  ;;  %432 = vmatmul.mubr.bf16.gmra.mxu1 %v794_v25 }
  0x2b   :  { %391 = vmatprep.mubr.bf16.mxu0 %v796_v26  ;;  %734 = vmatprep.mubr.msk.bf16.mxu1 %vm318_vm0, %v798_v27 }
  0x32   :  { %392 = vmatmul.mubr.bf16.gmra.mxu0 %v799_v28  ;;  %735 = vmatmul.mubr.msk.bf16.vlgmr.msra.gmra.mxu1 %vm318_vm0, %v800_v29 }
  0x33   :  { %399 = vmatprep.mubr.bf16.mxu0 %v801_v30  ;;  %738 = vmatprep.mubr.msk.bf16.mxu1 %vm318_vm0, %v803_v31 }
  0x3a   :  { %400 = vmatmul.mubr.bf16.gmra.mxu0 %v804_v32  ;;  %739 = vmatmul.mubr.msk.bf16.gmra.mxu1 %vm318_vm0, %v805_v33 }
  0x3b   :  { %407 = vmatprep.mubr.bf16.mxu0 %v806_v34  ;;  %742 = vmatprep.mubr.msk.bf16.mxu1 %vm318_vm0, %v808_v35 }
  0x42   :  { %408 = vmatmul.mubr.bf16.gmra.mxu0 %v809_v36  ;;  %743 = vmatmul.mubr.msk.bf16.gmra.mxu1 %vm318_vm0, %v810_v37 }
  0x43   :  { %415 = vmatprep.mubr.bf16.mxu0 %v811_v38  ;;  %746 = vmatprep.mubr.msk.bf16.mxu1 %vm318_vm0, %v813_v39 }
  0x4a   :  { %416 = vmatmul.mubr.bf16.gmra.mxu0 %v814_v40  ;;  %747 = vmatmul.mubr.msk.bf16.gmra.mxu1 %vm318_vm0, %v815_v41 }
  0xe2   :  { %v672_v42 = vpop.f32.mrf.mxu0  ;;  %v970_v43 = vpop.f32.mrf.mxu1 }
  0xe4   :  { %v673_v44 = vpop.f32.mrf.mxu0  ;;  %v972_v45 = vpop.f32.mrf.mxu1 }
  0xe5   :  { %v674_v57 = vadd.f32 %v673_v44, %v672_v42 }
  0xe6   :  { %v675_v46 = vpop.f32.mrf.mxu0  ;;  %v974_v47 = vpop.f32.mrf.mxu1 }
  0xe7   :  { %v378_v2 = vadd.f32 %v674_v57, %v989_v60 }
  0xe8   :  { %v676_v48 = vpop.f32.mrf.mxu0  ;;  %v976_v49 = vpop.f32.mrf.mxu1 }
  0xe9   :  { %v677_v3 = vadd.f32 %v676_v48, %v675_v46 }
  0xea   :  { %v678_v50 = vpop.f32.mrf.mxu0  ;;  %v978_v51 = vpop.f32.mrf.mxu1 }
  0xeb   :  { %v381_v16 = vadd.f32 %v677_v3, %v989_v60 }
  0xec   :  { %v679_v52 = vpop.f32.mrf.mxu0  ;;  %v980_v53 = vpop.f32.mrf.mxu1 }
  0xed   :  { %v680_v54 = vadd.f32 %v679_v52, %v678_v50  ;;  %v716_v57 = vadd.f32 %v980_v53, %v978_v51  ;;  %v710_v51 = vadd.f32 %v972_v45, %v970_v43 }
  0xee   :  { %v681_v55 = vpop.f32.mrf.mxu0  ;;  %v982_v56 = vpop.f32.mrf.mxu1 }
  0xef   :  { %v386_v62 = vadd.f32 %v680_v54, %v989_v60 }
  0xf0   :  { %v682_v58 = vpop.f32.mrf.mxu0  ;;  %v984_v59 = vpop.f32.mrf.mxu1 }
  0xf1   :  { %v683_v61 = vadd.f32 %v682_v58, %v681_v55  ;;  %v719_v53 = vadd.f32 %v984_v59, %v982_v56  ;;  %v713_v56 = vadd.f32 %v976_v49, %v974_v47 }
  0xf2   :  { %v684_v63 = vpop.f32.mrf.mxu0  ;;  %v736_v0 = vpop.f32.mrf.mxu1 }
  0xf3   :  { %v483_v1 = vadd.f32 %v736_v0, %v386_v62  ;;  %v389_v8 = vadd.f32 %v683_v61, %v989_v60 }
  0xf4   :  { %v685_v4 = vpop.f32.mrf.mxu0  ;;  %v474_v5 = vpop.f32.mrf.mxu1 }
  0xf5   :  { %vm539_vm1 = vcmp.ge.f32.partialorder %v483_v1, 0.0  ;;  %v555_v6 = vmul.f32 0.2, %v483_v1  ;;  %v475_v7 = vadd.f32 %v474_v5, %v378_v2  ;;  %v686_v9 = vadd.f32 %v685_v4, %v684_v63 }
  0xf6   :  { %v687_v10 = vpop.f32.mrf.mxu0  ;;  %v737_v11 = vpop.f32.mrf.mxu1 }
  0xf7   :  { %v571_v12 = vsel %vm539_vm1, %v483_v1, %v555_v6  ;;  %vm537_vm2 = vcmp.ge.f32.partialorder %v475_v7, 0.0  ;;  %v553_v13 = vmul.f32 0.2, %v475_v7  ;;  %v486_v14 = vadd.f32 %v737_v11, %v389_v8 }
  0xf8   :  { %587 = vst [vmem:[%s1069_s3 + $0x10] sm:$0xff] %v571_v12  ;;  %v688_v15 = vpop.f32.mrf.mxu0  ;;  %v477_v17 = vpop.f32.mrf.mxu1  ;;  %v394_v25 = vadd.f32 %v686_v9, %v989_v60  ;;  %v434_v9 = vadd.f32 %v716_v57, %v989_v60 }
  0xf9   :  { %v569_v18 = vsel %vm537_vm2, %v475_v7, %v553_v13  ;;  %vm540_vm3 = vcmp.ge.f32.partialorder %v486_v14, 0.0  ;;  %v556_v19 = vmul.f32 0.2, %v486_v14  ;;  %v478_v20 = vadd.f32 %v477_v17, %v381_v16 }
  0xfa   :  { %585 = vst [vmem:[%s1069_s3] sm:$0xff] %v569_v18  ;;  %v690_v21 = vpop.f32.mrf.mxu0  ;;  %v740_v22 = vpop.f32.mrf.mxu1  ;;  %v689_v24 = vadd.f32 %v688_v15, %v687_v10  ;;  %v426_v13 = vadd.f32 %v710_v51, %v989_v60  ;;  %v437_v15 = vadd.f32 %v719_v53, %v989_v60 }
  0xfb   :  { %v572_v23 = vsel %vm540_vm3, %v486_v14, %v556_v19  ;;  %vm538_vm4 = vcmp.ge.f32.partialorder %v478_v20, 0.0  ;;  %v554_v26 = vmul.f32 0.2, %v478_v20 }
  0xfc   :  { %588 = vst [vmem:[%s1069_s3 + $0x18] sm:$0xff] %v572_v23  ;;  %v691_v27 = vpop.f32.mrf.mxu0  ;;  %v490_v28 = vpop.f32.mrf.mxu1  ;;  %v397_v36 = vadd.f32 %v689_v24, %v989_v60 }
  0xfd   :  { %v692_v29 = vadd.f32 %v691_v27, %v690_v21  ;;  %v491_v30 = vadd.f32 %v490_v28, %v394_v25  ;;  %v570_v31 = vsel %vm538_vm4, %v478_v20, %v554_v26  ;;  %v429_v27 = vadd.f32 %v713_v56, %v989_v60 }
  0xfe   :  { %v693_v32 = vpop.f32.mrf.mxu0  ;;  %v741_v33 = vpop.f32.mrf.mxu1  ;;  %586 = vst [vmem:[%s1069_s3 + $0x8] sm:$0xff] %v570_v31 }
  0xff   :  { %v402_v34 = vadd.f32 %v692_v29, %v989_v60  ;;  %vm541_vm5 = vcmp.ge.f32.partialorder %v491_v30, 0.0  ;;  %v557_v35 = vmul.f32 0.2, %v491_v30 }
 0x100   :  { %v694_v37 = vpop.f32.mrf.mxu0  ;;  %v493_v38 = vpop.f32.mrf.mxu1 }
 0x101   :  { %v499_v39 = vadd.f32 %v740_v22, %v402_v34  ;;  %v573_v40 = vsel %vm541_vm5, %v491_v30, %v557_v35  ;;  %v695_v41 = vadd.f32 %v694_v37, %v693_v32  ;;  %v494_v42 = vadd.f32 %v493_v38, %v397_v36 }
 0x102   :  { %589 = vst [vmem:[%s1069_s3 + $0x20] sm:$0xff] %v573_v40  ;;  %v696_v44 = vpop.f32.mrf.mxu0  ;;  %v1013_v46 = vpop.f32.mrf.mxu1 }
 0x103   :  { %vm543_vm6 = vcmp.ge.f32.partialorder %v499_v39, 0.0  ;;  %v559_v48 = vmul.f32 0.2, %v499_v39  ;;  %v405_v50 = vadd.f32 %v695_v41, %v989_v60  ;;  %vm542_vm7 = vcmp.ge.f32.partialorder %v494_v42, 0.0 }
 0x104   :  { %v558_v52 = vmul.f32 0.2, %v494_v42  ;;  %v697_v54 = vpop.f32.mrf.mxu0  ;;  %v506_v55 = vpop.f32.mrf.mxu1 }
 0x105   :  { %v575_v58 = vsel %vm543_vm6, %v499_v39, %v559_v48  ;;  %v502_v61 = vadd.f32 %v741_v33, %v405_v50  ;;  %v698_v62 = vadd.f32 %v697_v54, %v696_v44 }
 0x106   :  { %591 = vst [vmem:[%s1069_s3 + $0x30] sm:$0xff] %v575_v58  ;;  %v574_v63 = vsel %vm542_vm7, %v494_v42, %v558_v52  ;;  %v699_v0 = vpop.f32.mrf.mxu0  ;;  %v745_v1 = vpop.f32.mrf.mxu1 }
 0x107   :  { %vm544_vm8 = vcmp.ge.f32.partialorder %v502_v61, 0.0  ;;  %v560_v2 = vmul.f32 0.2, %v502_v61  ;;  %590 = vst [vmem:[%s1069_s3 + $0x28] sm:$0xff] %v574_v63  ;;  %v410_v3 = vadd.f32 %v698_v62, %v989_v60 }
 0x108   :  { %v700_v4 = vpop.f32.mrf.mxu0  ;;  %v509_v5 = vpop.f32.mrf.mxu1 }
 0x109   :  { %v576_v6 = vsel %vm544_vm8, %v502_v61, %v560_v2  ;;  %v507_v7 = vadd.f32 %v506_v55, %v410_v3  ;;  %v701_v8 = vadd.f32 %v700_v4, %v699_v0 }
 0x10a   :  { %592 = vst [vmem:[%s1069_s3 + $0x38] sm:$0xff] %v576_v6  ;;  %v702_v10 = vpop.f32.mrf.mxu0  ;;  %v748_v11 = vpop.f32.mrf.mxu1 }
 0x10b   :  { %vm545_vm9 = vcmp.ge.f32.partialorder %v507_v7, 0.0  ;;  %v561_v12 = vmul.f32 0.2, %v507_v7  ;;  %v413_v43 = vadd.f32 %v701_v8, %v989_v60  ;;  %v531_v45 = vadd.f32 %v748_v11, %v434_v9 }
 0x10c   :  { %v703_v59 = vpop.f32.mrf.mxu0  ;;  %v522_v14 = vpop.f32.mrf.mxu1 }
 0x10d   :  { %v577_v16 = vsel %vm545_vm9, %v507_v7, %v561_v12  ;;  %v510_v17 = vadd.f32 %v509_v5, %v413_v43  ;;  %vm551_vm10 = vcmp.ge.f32.partialorder %v531_v45, 0.0  ;;  %v567_v18 = vmul.f32 0.2, %v531_v45 }
 0x10e   :  { %593 = vst [vmem:[%s1069_s3 + $0x40] sm:$0xff] %v577_v16  ;;  %v704_v19 = vadd.f32 %v703_v59, %v702_v10  ;;  %v523_v20 = vadd.f32 %v522_v14, %v426_v13  ;;  %v705_v21 = vpop.f32.mrf.mxu0  ;;  %v749_v22 = vpop.f32.mrf.mxu1 }
 0x10f   :  { %vm546_vm11 = vcmp.ge.f32.partialorder %v510_v17, 0.0  ;;  %v562_v47 = vmul.f32 0.2, %v510_v17  ;;  %v583_v49 = vsel %vm551_vm10, %v531_v45, %v567_v18  ;;  %v534_v23 = vadd.f32 %v749_v22, %v437_v15 }
 0x110   :  { %599 = vst [vmem:[%s1069_s3 + $0x70] sm:$0xff] %v583_v49  ;;  %v418_v24 = vadd.f32 %v704_v19, %v989_v60  ;;  %vm549_vm12 = vcmp.ge.f32.partialorder %v523_v20, 0.0  ;;  %v565_v25 = vmul.f32 0.2, %v523_v20  ;;  %v706_v26 = vpop.f32.mrf.mxu0  ;;  %v525_v28 = vpop.f32.mrf.mxu1 }
 0x111   :  { %v578_v29 = vsel %vm546_vm11, %v510_v17, %v562_v47  ;;  %vm552_vm13 = vcmp.ge.f32.partialorder %v534_v23, 0.0  ;;  %v568_v30 = vmul.f32 0.2, %v534_v23  ;;  %v707_v31 = vadd.f32 %v706_v26, %v705_v21 }
 0x112   :  { %594 = vst [vmem:[%s1069_s3 + $0x48] sm:$0xff] %v578_v29  ;;  %v515_v32 = vadd.f32 %v1013_v46, %v418_v24  ;;  %v581_v33 = vsel %vm549_vm12, %v523_v20, %v565_v25  ;;  %v526_v34 = vadd.f32 %v525_v28, %v429_v27 }
 0x113   :  { %597 = vst [vmem:[%s1069_s3 + $0x60] sm:$0xff] %v581_v33  ;;  %v584_v35 = vsel %vm552_vm13, %v534_v23, %v568_v30  ;;  %v421_v36 = vadd.f32 %v707_v31, %v989_v60 }
 0x114   :  { %vm547_vm14 = vcmp.ge.f32.partialorder %v515_v32, 0.0  ;;  %v563_v37 = vmul.f32 0.2, %v515_v32  ;;  %600 = vst [vmem:[%s1069_s3 + $0x78] sm:$0xff] %v584_v35  ;;  %vm550_vm15 = vcmp.ge.f32.partialorder %v526_v34, 0.0 }
 0x115   :  { %v566_v38 = vmul.f32 0.2, %v526_v34  ;;  %v518_v39 = vadd.f32 %v745_v1, %v421_v36 }
 0x116   :  { %v579_v40 = vsel %vm547_vm14, %v515_v32, %v563_v37 }
 0x117   :  { %v582_v41 = vsel %vm550_vm15, %v526_v34, %v566_v38  ;;  %595 = vst [vmem:[%s1069_s3 + $0x50] sm:$0xff] %v579_v40  ;;  %vm548_vm0 = vcmp.ge.f32.partialorder %v518_v39, 0.0  ;;  %v564_v42 = vmul.f32 0.2, %v518_v39 }
 0x118   :  { %598 = vst [vmem:[%s1069_s3 + $0x68] sm:$0xff] %v582_v41 }
 0x119   :  { %v580_v60 = vsel %vm548_vm0, %v518_v39, %v564_v42 }
 0x11a   :  { %596 = vst [vmem:[%s1069_s3 + $0x58] sm:$0xff] %v580_v60 }

// kernel: discriminator_forward.21
= control target key start
LH: loop header
LB: loop body
LE: loop exit
PB: predicated region body
PF: predicated region fallthrough
CT: control target
= control target key end

     0   :  { %vm17_vm0 = vcmask 257024   ;;  %s220_s0 = inlined_call_operand.vmem [shape: f32[2,4,4,32], index: 0, kind: input, shape index: {}]   ;;  %s221_s1 = inlined_call_operand.hbm [shape: f32[1,1], index: 1, kind: output, shape index: {}]  }
   0x1   :  { %v9_v0 = vld [vmem:[%s220_s0] sm:$0xf]  ;;  %v10_v1 = vld [vmem:[%s220_s0 + $0x4] sm:$0xf]  ;;  %v11_v2 = vld [vmem:[%s220_s0 + $0x8] sm:$0xf] }
   0x2   :  { %v12_v3 = vld [vmem:[%s220_s0 + $0xc] sm:$0xf]  ;;  %v13_v4 = vld [vmem:[%s220_s0 + $0x10] sm:$0xf]  ;;  %v14_v5 = vld [vmem:[%s220_s0 + $0x14] sm:$0xf] }
   0x3   :  { %v15_v6 = vld [vmem:[%s220_s0 + $0x18] sm:$0xf]  ;;  %v16_v7 = vld [vmem:[%s220_s0 + $0x1c] sm:$0xf]  ;;  %v18_v8 = vsel %vm17_vm0, %v9_v0, 0.0  ;;  %v19_v9 = vsel %vm17_vm0, %v13_v4, 0.0 }
   0x4   :  { %v21_v10 = vsel %vm17_vm0, %v10_v1, 0.0  ;;  %v22_v11 = vsel %vm17_vm0, %v14_v5, 0.0 }
   0x5   :  { %6 = vsyncpa [#allocation3], 0  ;;  %v20_v12 = vadd.f32 %v19_v9, %v18_v8  ;;  %v23_v13 = vadd.f32 %v22_v11, %v21_v10  ;;  %v24_v14 = vsel %vm17_vm0, %v11_v2, 0.0  ;;  %v25_v15 = vsel %vm17_vm0, %v15_v6, 0.0  ;;  %s160_s0 = smov [#allocation2]  }
   0x6   :  { %v26_v16 = vadd.f32 %v25_v15, %v24_v14  ;;  %v27_v17 = vsel %vm17_vm0, %v12_v3, 0.0  ;;  %v28_v18 = vsel %vm17_vm0, %v16_v7, 0.0  ;;  %s119_s22 = sshll.u32 %s160_s0, 4  ;;  %vm111_vm9 = vcmask 0   ;;  %s120_s22 = int_to_ptr.vmem [resolvable:$true] %s119_s22 }
   0x7   :  { %v29_v19 = vadd.f32 %v28_v18, %v27_v17  ;;  %v31_v20 = vmul.f32 0.5, %v20_v12  ;;  %v32_v21 = vmul.f32 0.5, %v23_v13  ;;  %s138_s25 = scalar_lea.vmem %s120_s22, 16  ;;  %s142_s26 = scalar_lea.vmem %s120_s22, 32 }
   0x8   :  { %v33_v22 = vmul.f32 0.5, %v26_v16  ;;  %p139_p0 = scmp.ne.s32.totalorder %s120_s22, %s138_s25  ;;  %p143_p1 = scmp.lt.s32.totalorder %s120_s22, %s120_s22 }
   0x9   :  { %v34_v23 = vmul.f32 0.5, %v29_v19  ;;  %v35_v24 = vsub.f32 %v9_v0, %v31_v20  ;;  %v36_v25 = vsub.f32 %v10_v1, %v32_v21  ;;  %v39_v26 = vsub.f32 %v13_v4, %v31_v20  ;;  %p144_p2 = scmp.lt.s32.totalorder %s142_s26, %s138_s25 }
   0xa   :  { %v37_v27 = vsub.f32 %v11_v2, %v33_v22  ;;  %v40_v28 = vsub.f32 %v14_v5, %v32_v21  ;;  %v41_v29 = vsub.f32 %v15_v6, %v33_v22 }
   0xb   :  { %v38_v30 = vsub.f32 %v12_v3, %v34_v23  ;;  %v42_v31 = vsub.f32 %v16_v7, %v34_v23  ;;  %v43_v32 = vmul.f32 %v35_v24, %v35_v24  ;;  %v44_v33 = vmul.f32 %v36_v25, %v36_v25  ;;  %p145_p3 = por %p144_p2, %p143_p1 }
   0xc   :  { %v45_v34 = vmul.f32 %v37_v27, %v37_v27  ;;  %v47_v35 = vmul.f32 %v39_v26, %v39_v26  ;;  %v48_v36 = vmul.f32 %v40_v28, %v40_v28  ;;  %v49_v37 = vmul.f32 %v41_v29, %v41_v29 }
   0xd   :  { %v46_v38 = vmul.f32 %v38_v30, %v38_v30  ;;  %v50_v39 = vmul.f32 %v42_v31, %v42_v31  ;;  %v51_v40 = vsel %vm17_vm0, %v43_v32, 0.0  ;;  %v54_v41 = vsel %vm17_vm0, %v44_v33, 0.0  ;;  %p146_p4 = pnand %p145_p3, %p139_p0 }
   0xe   :  { %v52_v42 = vsel %vm17_vm0, %v47_v35, 0.0  ;;  %v55_v43 = vsel %vm17_vm0, %v48_v36, 0.0  ;;  %v57_v44 = vsel %vm17_vm0, %v45_v34, 0.0  ;;  %v58_v45 = vsel %vm17_vm0, %v49_v37, 0.0 }
   0xf   :  { %v53_v46 = vadd.f32 %v52_v42, %v51_v40  ;;  %v56_v47 = vadd.f32 %v55_v43, %v54_v41  ;;  %v59_v48 = vadd.f32 %v58_v45, %v57_v44  ;;  %v60_v49 = vsel %vm17_vm0, %v46_v38, 0.0 }
  0x10   :  { %v61_v50 = vsel %vm17_vm0, %v50_v39, 0.0 }
  0x11   :  { %v62_v51 = vadd.f32 %v61_v50, %v60_v49  ;;  %130 = vrsqrt.f32 %v53_v46  ;;  %vm65_vm1 = vcmp.eq.f32.partialorder %v53_v46, inf  ;;  %vm67_vm2 = vcmp.eq.f32.partialorder %v53_v46, 0.0 }
  0x12   :  { %132 = vrsqrt.f32 %v56_v47  ;;  %v68_v53 = vand.u32 2147483648, %v53_v46  ;;  %vm72_vm3 = vcmp.eq.f32.partialorder %v56_v47, inf  ;;  %vm74_vm4 = vcmp.eq.f32.partialorder %v56_v47, 0.0 }
  0x13   :  { %134 = vrsqrt.f32 %v59_v48  ;;  %v75_v56 = vand.u32 2147483648, %v56_v47  ;;  %vm79_vm5 = vcmp.eq.f32.partialorder %v59_v48, inf  ;;  %vm81_vm6 = vcmp.eq.f32.partialorder %v59_v48, 0.0 }
  0x14   :  { %136 = vrsqrt.f32 %v62_v51  ;;  %v82_v59 = vand.u32 2147483648, %v59_v48  ;;  %vm86_vm7 = vcmp.eq.f32.partialorder %v62_v51, inf  ;;  %v89_v63 = vand.u32 2147483648, %v62_v51 }
  0x15   :  { %vm88_vm8 = vcmp.eq.f32.partialorder %v62_v51, 0.0 }
  0x1e   :  { %v131_v52 = vpop.eup %130 }
  0x1f   :  { %v133_v54 = vpop.eup %132  ;;  %v64_v55 = vmul.f32 %v131_v52, %v53_v46 }
  0x20   :  { %v135_v57 = vpop.eup %134  ;;  %v71_v58 = vmul.f32 %v133_v54, %v56_v47 }
  0x21   :  { %v137_v60 = vpop.eup %136  ;;  %v66_v61 = vsel %vm65_vm1, %v53_v46, %v64_v55  ;;  %v78_v62 = vmul.f32 %v135_v57, %v59_v48 }
  0x22   :  { %v69_v0 = vsel %vm67_vm2, %v68_v53, %v66_v61  ;;  %v73_v1 = vsel %vm72_vm3, %v56_v47, %v71_v58  ;;  %v85_v2 = vmul.f32 %v137_v60, %v62_v51 }
  0x23   :  { %v76_v3 = vsel %vm74_vm4, %v75_v56, %v73_v1  ;;  %v80_v4 = vsel %vm79_vm5, %v59_v48, %v78_v62  ;;  %v91_v5 = vsel %vm17_vm0, %v69_v0, 0.0 }
  0x24   :  { %v83_v6 = vsel %vm81_vm6, %v82_v59, %v80_v4  ;;  %v87_v7 = vsel %vm86_vm7, %v62_v51, %v85_v2  ;;  %v92_v8 = vsel %vm17_vm0, %v76_v3, 0.0 }
  0x25   :  { %v90_v9 = vsel %vm88_vm8, %v89_v63, %v87_v7  ;;  %v93_v10 = vadd.f32 %v92_v8, %v91_v5  ;;  %v94_v11 = vsel %vm17_vm0, %v83_v6, 0.0 }
  0x26   :  { %v96_v12 = vsel %vm17_vm0, %v90_v9, 0.0 }
  0x27   :  { %v95_v13 = vadd.f32 %v94_v11, %v93_v10 }
  0x29   :  { %v97_v14 = vadd.f32 %v96_v12, %v95_v13 }
  0x2b   :  { %98 = vadd.xlane.f32.xlu0 %v97_v14 }
  0xb4   :  { %v99_v15 = vpop.xlane.xlu0 %98 }
  0xb5   :  { %v100_v16 = vrot.slane %v99_v15, 4 }
  0xb7   :  { %v101_v17 = vadd.f32 %v100_v16, %v99_v15 }
  0xb9   :  { %v102_v18 = vrot.slane %v101_v17, 2 }
  0xbb   :  { %v103_v19 = vadd.f32 %v102_v18, %v101_v17 }
  0xbd   :  { %v104_v20 = vrot.slane %v103_v19, 1 }
  0xbf   :  { %v105_v21 = vadd.f32 %v104_v20, %v103_v19 }
  0xc1   :  { %127 = vpush %v105_v21 }
  0xf2   :  { %s128_s23 = spop %127 }
  0xf3   :  { %s109_s24 = smul.f32 0.001953125, %s128_s23 }
  0xf5   :  { %v110_v22 = vstv %s109_s24 }
  0xf6   :  { %112 = vst.msk [vmem:[#allocation2] sm:$0x1] %vm111_vm9, %v110_v22 }
  0xf7   :  { %149 = shalt.err (!%p146_p4)
}
  0xf8   :  { %122 = dma.vmem_to_hbm [thread:$0]  %s120_s22, 16, %s221_s1, [#allocation3]  }
  0xf9   :  { %158 = dma.done.wait [#allocation3], 16  }
  0xfa   :  { %159 = vsyncadd [#allocation3], 4294967280 }
  0xfb   :  { %126 = vsyncpa [#allocation3], 1 }

// kernel: discriminator_forward.22
= control target key start
LH: loop header
LB: loop body
LE: loop exit
PB: predicated region body
PF: predicated region fallthrough
CT: control target
= control target key end

     0   :  { %vm218_vm0 = vcmask 1043456   ;;  %vm219_vm1 = vcmask 1044480   ;;  %v442_v7 = vmov 65535   ;;  %vm211_vm2 = vcmask 334848   ;;  %s553_s1 = inlined_call_operand.vmem [shape: bf16[297,128], index: 1, kind: input, shape index: {}]   ;;  %s554_s0 = inlined_call_operand.vmem [shape: bf16[32,297], index: 0, kind: input, shape index: {}]   ;;  %s555_s2 = inlined_call_operand.vmem [shape: f32[1,128], index: 2, kind: input, shape index: {}]   ;;  %s556_s3 = inlined_call_operand.vmem [shape: f32[32,128], index: 3, kind: output, shape index: {}]  }
   0x1   :  { %v415_v0 = vld [vmem:[%s553_s1 + $0x78] sm:$0xff]   ;;  %v417_v2 = vld [vmem:[%s553_s1 + $0x70] sm:$0xff]   ;;  %v419_v4 = vld [vmem:[%s553_s1 + $0x68] sm:$0xff]   ;;  %v220_v8 = vsel %vm218_vm0, 4294967295, %v442_v7 }
   0x2   :  { %v416_v1 = vld [vmem:[%s553_s1 + $0x38] sm:$0xff]   ;;  %371 = vmatprep.subr.bf16.mxu0 %v415_v0  ;;  %v418_v3 = vld [vmem:[%s553_s1 + $0x30] sm:$0xff]   ;;  %v420_v5 = vld [vmem:[%s553_s1 + $0x28] sm:$0xff]   ;;  %v221_v11 = vsel %vm219_vm1, %v220_v8, 0 }
   0x3   :  { %372 = vmatpush3.bf16.msra.mxu0 %v416_v1  ;;  %v421_v6 = vld [vmem:[%s553_s1 + $0x60] sm:$0xff]   ;;  %v423_v10 = vld [vmem:[%s553_s1 + $0x58] sm:$0xff]   ;;  %v428_v12 = vld [vmem:[%s553_s1 + $0x90] sm:$0x1f]  }
   0x4   :  { %373 = vmatprep.subr.bf16.mxu0 %v417_v2  ;;  %v422_v9 = vld [vmem:[%s553_s1 + $0x20] sm:$0xff]   ;;  %v424_v13 = vld [vmem:[%s553_s1 + $0x18] sm:$0xff]   ;;  %v425_v14 = vld [vmem:[%s553_s1 + $0x50] sm:$0xff]   ;;  %v223_v15 = vand.u32 %v428_v12, %v221_v11 }
   0x5   :  { %v431_v16 = vld [vmem:[%s553_s1 + $0x88] sm:$0xff]   ;;  %v426_v17 = vld [vmem:[%s553_s1 + $0x10] sm:$0xff]   ;;  %v436_v20 = vld [vmem:[%s553_s1 + $0x80] sm:$0xff]  }
   0x6   :  { %404 = vmatprep.subr.bf16.mxu1 %v223_v15  ;;  %v427_v18 = vld [vmem:[%s553_s1 + $0x48] sm:$0xff]   ;;  %v435_v19 = vld [vmem:[%s554_s0 + $0x4] ss:$12 sps:$4 sm:$0xff]   ;;  %v343_v33 = vld [vmem:[%s555_s2] ss:$0 sm:$0xff] }
   0x7   :  { %374 = vmatpush3.bf16.msra.mxu0 %v418_v3  ;;  %405 = vmatpush3.bf16.msra.mxu1 %v223_v15  ;;  %v437_v21 = vld [vmem:[%s554_s0 + $0x8] ss:$12 sps:$4 sm:$0xff]   ;;  %v430_v23 = vld [vmem:[%s553_s1 + $0x40] sm:$0xff]  }
   0x8   :  { %375 = vmatprep.subr.bf16.mxu0 %v419_v4  ;;  %406 = vmatprep.subr.bf16.mxu1 %v431_v16  ;;  %v429_v22 = vld [vmem:[%s553_s1 + $0x8] sm:$0xff]   ;;  %v432_v25 = vld [vmem:[%s553_s1] sm:$0xff]  }
   0x9   :  { %257 = vmatprep.mubr.bf16.mxu0 %v435_v19  ;;  %410 = vmatprep.mubr.msk.bf16.mxu1 %vm211_vm2, %v437_v21  ;;  %v438_v24 = vld [vmem:[%s554_s0 + $0x20] ss:$12 sps:$4 sm:$0xff]   ;;  %v439_v27 = vld [vmem:[%s554_s0 + $0x1c] ss:$12 sps:$4 sm:$0xff]   ;;  %v441_v28 = vld [vmem:[%s554_s0 + $0x18] ss:$12 sps:$4 sm:$0xff]  }
   0xa   :  { %v433_v26 = vld [vmem:[%s554_s0] ss:$12 sps:$4 sm:$0xff]  }
   0xb   :  { %376 = vmatpush3.bf16.msra.mxu0 %v420_v5  ;;  %407 = vmatpush3.bf16.msra.mxu1 %v431_v16 }
   0xc   :  { %377 = vmatprep.subr.bf16.mxu0 %v421_v6  ;;  %408 = vmatprep.subr.bf16.mxu1 %v436_v20 }
   0xf   :  { %378 = vmatpush3.bf16.msra.mxu0 %v422_v9  ;;  %409 = vmatpush3.bf16.msra.mxu1 %v436_v20 }
  0x10   :  { %379 = vmatprep.subr.bf16.mxu0 %v423_v10 }
  0x12   :  { %411 = vmatmul.mubr.msk.bf16.vlgmr.msra.gmra.mxu1 %vm211_vm2, %v438_v24 }
  0x13   :  { %380 = vmatpush3.bf16.msra.mxu0 %v424_v13 }
  0x14   :  { %381 = vmatprep.subr.bf16.mxu0 %v425_v14 }
  0x17   :  { %382 = vmatpush3.bf16.msra.mxu0 %v426_v17 }
  0x18   :  { %383 = vmatprep.subr.bf16.mxu0 %v427_v18 }
  0x1b   :  { %384 = vmatpush3.bf16.msra.mxu0 %v429_v22 }
  0x1c   :  { %385 = vmatprep.subr.bf16.mxu0 %v430_v23 }
  0x1f   :  { %386 = vmatpush3.bf16.msra.mxu0 %v432_v25 }
  0x22   :  { %258 = vmatmul.mubr.bf16.vlgmr.msra.gmra.mxu0 %v433_v26 }
  0x23   :  { %265 = vmatprep.mubr.bf16.mxu0 %v439_v27 }
  0x2a   :  { %266 = vmatmul.mubr.bf16.gmra.mxu0 %v441_v28 }
  0xd2   :  { %v412_v29 = vpop.f32.mrf.mxu1 }
  0xd4   :  { %v308_v31 = vpop.f32.mrf.mxu1 }
  0xd6   :  { %v413_v36 = vpop.f32.mrf.mxu1 }
  0xd8   :  { %v311_v42 = vpop.f32.mrf.mxu1 }
  0xe2   :  { %v387_v30 = vpop.f32.mrf.mxu0 }
  0xe4   :  { %v388_v32 = vpop.f32.mrf.mxu0 }
  0xe5   :  { %v389_v34 = vadd.f32 %v388_v32, %v387_v30 }
  0xe6   :  { %v390_v35 = vpop.f32.mrf.mxu0 }
  0xe7   :  { %v260_v37 = vadd.f32 %v389_v34, %v343_v33 }
  0xe8   :  { %v391_v38 = vpop.f32.mrf.mxu0 }
  0xe9   :  { %v392_v39 = vadd.f32 %v391_v38, %v390_v35  ;;  %v309_v40 = vadd.f32 %v308_v31, %v260_v37 }
  0xea   :  { %v393_v41 = vpop.f32.mrf.mxu0 }
  0xeb   :  { %vm323_vm3 = vcmp.ge.f32.partialorder %v309_v40, 0.0  ;;  %v327_v43 = vmul.f32 0.2, %v309_v40  ;;  %v263_v44 = vadd.f32 %v392_v39, %v343_v33 }
  0xec   :  { %v394_v45 = vpop.f32.mrf.mxu0 }
  0xed   :  { %v331_v46 = vsel %vm323_vm3, %v309_v40, %v327_v43  ;;  %v395_v47 = vadd.f32 %v394_v45, %v393_v41  ;;  %v312_v48 = vadd.f32 %v311_v42, %v263_v44 }
  0xee   :  { %335 = vst [vmem:[%s556_s3] sm:$0xff] %v331_v46  ;;  %v396_v49 = vpop.f32.mrf.mxu0 }
  0xef   :  { %v268_v50 = vadd.f32 %v395_v47, %v343_v33  ;;  %vm324_vm4 = vcmp.ge.f32.partialorder %v312_v48, 0.0  ;;  %v328_v51 = vmul.f32 0.2, %v312_v48 }
  0xf0   :  { %v397_v52 = vpop.f32.mrf.mxu0 }
  0xf1   :  { %v317_v53 = vadd.f32 %v412_v29, %v268_v50  ;;  %v332_v54 = vsel %vm324_vm4, %v312_v48, %v328_v51  ;;  %v398_v55 = vadd.f32 %v397_v52, %v396_v49 }
  0xf2   :  { %336 = vst [vmem:[%s556_s3 + $0x8] sm:$0xff] %v332_v54 }
  0xf3   :  { %vm325_vm5 = vcmp.ge.f32.partialorder %v317_v53, 0.0  ;;  %v329_v56 = vmul.f32 0.2, %v317_v53  ;;  %v271_v57 = vadd.f32 %v398_v55, %v343_v33 }
  0xf5   :  { %v333_v58 = vsel %vm325_vm5, %v317_v53, %v329_v56  ;;  %v320_v59 = vadd.f32 %v413_v36, %v271_v57 }
  0xf6   :  { %337 = vst [vmem:[%s556_s3 + $0x10] sm:$0xff] %v333_v58 }
  0xf7   :  { %vm326_vm6 = vcmp.ge.f32.partialorder %v320_v59, 0.0  ;;  %v330_v60 = vmul.f32 0.2, %v320_v59 }
  0xf9   :  { %v334_v61 = vsel %vm326_vm6, %v320_v59, %v330_v60 }
  0xfa   :  { %338 = vst [vmem:[%s556_s3 + $0x18] sm:$0xff] %v334_v61 }

// kernel: discriminator_forward.23
= control target key start
LH: loop header
LB: loop body
LE: loop exit
PB: predicated region body
PF: predicated region fallthrough
CT: control target
= control target key end

     0   :  { %v673_v22 = vmov 1966171168   ;;  %v105_v24 = vlaneseq  ;;  %v674_v41 = vmov 0.0   ;;  %vm675_vm0 = vmmov 0   ;;  %s838_s1 = inlined_call_operand.vmem [shape: bf16[512,128], index: 1, kind: input, shape index: {}]   ;;  %s839_s0 = inlined_call_operand.vmem [shape: bf16[2,512], index: 0, kind: input, shape index: {}]   ;;  %s840_s3 = inlined_call_operand.vmem [shape: bf16[128,128], index: 3, kind: input, shape index: {}]   ;;  %s841_s2 = inlined_call_operand.vmem [shape: f32[1,128], index: 2, kind: input, shape index: {}]   ;;  %s842_s4 = inlined_call_operand.vmem [shape: f32[1,128], index: 4, kind: input, shape index: {}]   ;;  %s843_s5 = inlined_call_operand.vmem [shape: f32[2,128], index: 5, kind: output, shape index: {}]  }
   0x1   :  { %v633_v0 = vld [vmem:[%s838_s1 + $0x78] sm:$0xff]   ;;  %v637_v4 = vld [vmem:[%s838_s1 + $0x70] sm:$0xff]   ;;  %v641_v8 = vld [vmem:[%s838_s1 + $0x68] sm:$0xff]   ;;  %v103_v23 = vunpack.c.l.s4 %v673_v22 }
   0x2   :  { %v634_v1 = vld [vmem:[%s838_s1 + $0xf8] sm:$0xff]   ;;  %557 = vmatprep.subr.bf16.mxu0 %v633_v0  ;;  %v638_v5 = vld [vmem:[%s838_s1 + $0xf0] sm:$0xff]   ;;  %v642_v9 = vld [vmem:[%s838_s1 + $0xe8] sm:$0xff]   ;;  %v106_v30 = vshrl.u32 %v105_v24, 7 }
   0x3   :  { %v635_v2 = vld [vmem:[%s838_s1 + $0x38] sm:$0xff]   ;;  %579 = vmatprep.subr.bf16.mxu1 %v634_v1  ;;  %v639_v6 = vld [vmem:[%s838_s1 + $0x30] sm:$0xff]   ;;  %v643_v10 = vld [vmem:[%s838_s1 + $0x28] sm:$0xff]   ;;  %v104_v29 = vunpack.c.0.s8 %v103_v23 }
   0x4   :  { %v636_v3 = vld [vmem:[%s838_s1 + $0xb8] sm:$0xff]   ;;  %558 = vmatpush3.bf16.msra.mxu0 %v635_v2  ;;  %v640_v7 = vld [vmem:[%s838_s1 + $0xb0] sm:$0xff]   ;;  %v644_v11 = vld [vmem:[%s838_s1 + $0xa8] sm:$0xff]  }
   0x5   :  { %580 = vmatpush3.bf16.msra.mxu1 %v636_v3  ;;  %559 = vmatprep.subr.bf16.mxu0 %v637_v4  ;;  %v645_v12 = vld [vmem:[%s838_s1 + $0x60] sm:$0xff]   ;;  %v649_v16 = vld [vmem:[%s838_s1 + $0x58] sm:$0xff]   ;;  %v653_v20 = vld [vmem:[%s838_s1 + $0x50] sm:$0xff]   ;;  %v107_v35 = vsub.s32 %v104_v29, %v106_v30 }
   0x6   :  { %581 = vmatprep.subr.bf16.mxu1 %v638_v5  ;;  %v646_v13 = vld [vmem:[%s838_s1 + $0xe0] sm:$0xff]   ;;  %v650_v17 = vld [vmem:[%s838_s1 + $0xd8] sm:$0xff]   ;;  %v654_v21 = vld [vmem:[%s838_s1 + $0xd0] sm:$0xff]  }
   0x7   :  { %v647_v14 = vld [vmem:[%s838_s1 + $0x20] sm:$0xff]   ;;  %v651_v18 = vld [vmem:[%s838_s1 + $0x18] sm:$0xff]   ;;  %v655_v25 = vld [vmem:[%s838_s1 + $0x10] sm:$0xff]  }
   0x8   :  { %560 = vmatpush3.bf16.msra.mxu0 %v639_v6  ;;  %v648_v15 = vld [vmem:[%s838_s1 + $0xa0] sm:$0xff]   ;;  %v652_v19 = vld [vmem:[%s838_s1 + $0x98] sm:$0xff]   ;;  %v656_v26 = vld [vmem:[%s838_s1 + $0x90] sm:$0xff]  }
   0x9   :  { %582 = vmatpush3.bf16.msra.mxu1 %v640_v7  ;;  %561 = vmatprep.subr.bf16.mxu0 %v641_v8  ;;  %v657_v27 = vld [vmem:[%s838_s1 + $0x48] sm:$0xff]   ;;  %v661_v33 = vld [vmem:[%s838_s1 + $0x40] sm:$0xff]   ;;  %v665_v43 = vld [vmem:[%s840_s3 + $0x38] sm:$0xff]  }
   0xa   :  { %583 = vmatprep.subr.bf16.mxu1 %v642_v9  ;;  %v658_v28 = vld [vmem:[%s838_s1 + $0xc8] sm:$0xff]   ;;  %v662_v34 = vld [vmem:[%s838_s1 + $0xc0] sm:$0xff]   ;;  %v666_v46 = vld [vmem:[%s840_s3 + $0x30] sm:$0xff]  }
   0xb   :  { %v659_v31 = vld [vmem:[%s838_s1 + $0x8] sm:$0xff]   ;;  %v663_v36 = vld [vmem:[%s838_s1] sm:$0xff]   ;;  %v669_v49 = vld [vmem:[%s840_s3 + $0x18] sm:$0xff]  }
   0xc   :  { %562 = vmatpush3.bf16.msra.mxu0 %v643_v10  ;;  %v660_v32 = vld [vmem:[%s838_s1 + $0x88] sm:$0xff]   ;;  %v664_v37 = vld [vmem:[%s838_s1 + $0x80] sm:$0xff]   ;;  %v670_v50 = vld [vmem:[%s840_s3 + $0x10] sm:$0xff]  }
   0xd   :  { %584 = vmatpush3.bf16.msra.mxu1 %v644_v11  ;;  %563 = vmatprep.subr.bf16.mxu0 %v645_v12  ;;  %v515_v38 = vld.sshfl [vmem:[%s839_s0] sm:$0x33 pattern:$0x75316420]  ;;  %v667_v47 = vld [vmem:[%s840_s3 + $0x28] sm:$0xff]  }
   0xe   :  { %585 = vmatprep.subr.bf16.mxu1 %v646_v13  ;;  %v101_v39 = vcombine.high %v515_v38, %v515_v38  ;;  %v108_v40 = vrot.slane %v515_v38, %v107_v35  ;;  %v668_v48 = vld [vmem:[%s840_s3 + $0x20] sm:$0xff]   ;;  %v671_v51 = vld [vmem:[%s840_s3 + $0x8] sm:$0xff]  }
   0xf   :  { %v672_v52 = vld [vmem:[%s840_s3] sm:$0xff]  }
  0x10   :  { %564 = vmatpush3.bf16.msra.mxu0 %v647_v14  ;;  %v115_v42 = vrot.slane %v101_v39, %v107_v35  ;;  %v116_v44 = vcombine.high %v108_v40, %v108_v40  ;;  %v514_v55 = vld [vmem:[%s841_s2] ss:$0 sm:$0xff] }
  0x11   :  { %586 = vmatpush3.bf16.msra.mxu1 %v648_v15  ;;  %565 = vmatprep.subr.bf16.mxu0 %v649_v16  ;;  %v548_v5 = vld [vmem:[%s842_s4] ss:$0 sm:$0xff] }
  0x12   :  { %587 = vmatprep.subr.bf16.mxu1 %v650_v17  ;;  %346 = vmatprep.mubr.bf16.mxu0 %v115_v42  ;;  %v117_v45 = vcombine.high %v115_v42, %v115_v42 }
  0x14   :  { %566 = vmatpush3.bf16.msra.mxu0 %v651_v18  ;;  %386 = vmatprep.mubr.bf16.mxu1 %v117_v45 }
  0x15   :  { %588 = vmatpush3.bf16.msra.mxu1 %v652_v19  ;;  %567 = vmatprep.subr.bf16.mxu0 %v653_v20 }
  0x16   :  { %589 = vmatprep.subr.bf16.mxu1 %v654_v21 }
  0x18   :  { %568 = vmatpush3.bf16.msra.mxu0 %v655_v25 }
  0x19   :  { %590 = vmatpush3.bf16.msra.mxu1 %v656_v26  ;;  %569 = vmatprep.subr.bf16.mxu0 %v657_v27 }
  0x1a   :  { %591 = vmatprep.subr.bf16.mxu1 %v658_v28 }
  0x1c   :  { %570 = vmatpush3.bf16.msra.mxu0 %v659_v31 }
  0x1d   :  { %592 = vmatpush3.bf16.msra.mxu1 %v660_v32  ;;  %571 = vmatprep.subr.bf16.mxu0 %v661_v33 }
  0x1e   :  { %593 = vmatprep.subr.bf16.mxu1 %v662_v34 }
  0x20   :  { %572 = vmatpush3.bf16.msra.mxu0 %v663_v36 }
  0x21   :  { %594 = vmatpush3.bf16.msra.mxu1 %v664_v37  ;;  %610 = vmatprep.subr.bf16.mxu0 %v674_v41 }
  0x23   :  { %347 = vmatmul.mubr.bf16.vlgmr.msra.gmra.mxu0 %v108_v40 }
  0x24   :  { %611 = vmatpush3.bf16.msra.mxu0 %v665_v43  ;;  %387 = vmatmul.mubr.bf16.vlgmr.msra.gmra.mxu1 %v116_v44 }
  0x25   :  { %612 = vmatprep.subr.bf16.mxu0 %v674_v41  ;;  %626 = vmatprep.mubr.msk.bf16.mxu0 %vm675_vm0, %v674_v41 }
  0x28   :  { %613 = vmatpush3.bf16.msra.mxu0 %v666_v46 }
  0x29   :  { %614 = vmatprep.subr.bf16.mxu0 %v674_v41 }
  0x2c   :  { %615 = vmatpush3.bf16.msra.mxu0 %v667_v47 }
  0x2d   :  { %616 = vmatprep.subr.bf16.mxu0 %v674_v41 }
  0x30   :  { %617 = vmatpush3.bf16.msra.mxu0 %v668_v48 }
  0x31   :  { %618 = vmatprep.subr.bf16.mxu0 %v674_v41 }
  0x34   :  { %619 = vmatpush3.bf16.msra.mxu0 %v669_v49 }
  0x35   :  { %620 = vmatprep.subr.bf16.mxu0 %v674_v41 }
  0x38   :  { %621 = vmatpush3.bf16.msra.mxu0 %v670_v50 }
  0x39   :  { %622 = vmatprep.subr.bf16.mxu0 %v674_v41 }
  0x3c   :  { %623 = vmatpush3.bf16.msra.mxu0 %v671_v51 }
  0x3d   :  { %624 = vmatprep.subr.bf16.mxu0 %v674_v41 }
  0x40   :  { %625 = vmatpush3.bf16.msra.mxu0 %v672_v52 }
  0xe3   :  { %v573_v53 = vpop.f32.mrf.mxu0 }
  0xe4   :  { %v595_v54 = vpop.f32.mrf.mxu1 }
  0xe5   :  { %v574_v56 = vpop.f32.mrf.mxu0 }
  0xe6   :  { %v575_v57 = vadd.f32 %v574_v56, %v573_v53  ;;  %v596_v58 = vpop.f32.mrf.mxu1 }
  0xe7   :  { %v576_v59 = vpop.f32.mrf.mxu0  ;;  %v597_v61 = vadd.f32 %v596_v58, %v595_v54 }
  0xe8   :  { %v349_v60 = vadd.f32 %v575_v57, %v514_v55  ;;  %v598_v62 = vpop.f32.mrf.mxu1 }
  0xe9   :  { %v577_v63 = vpop.f32.mrf.mxu0 }
  0xea   :  { %v389_v0 = vadd.f32 %v597_v61, %v349_v60  ;;  %v599_v1 = vpop.f32.mrf.mxu1 }
  0xec   :  { %vm394_vm1 = vcmp.ge.f32.partialorder %v389_v0, 0.0  ;;  %v395_v2 = vmul.f32 0.2, %v389_v0 }
  0xee   :  { %v396_v3 = vsel %vm394_vm1, %v389_v0, %v395_v2 }
  0xef   :  { %v397_v4 = vpack.c.bf16 %v396_v3, %v396_v3 }
  0xf1   :  { %627 = vmatmul.mubr.bf16.vlgmr.msra.gmra.mxu0 %v397_v4 }
 0x1b1   :  { %v503_v6 = vpop.f32.mrf.mxu0 }
 0x1b2   :  { %v504_v7 = vadd.f32 %v548_v5, %v503_v6 }
 0x1b3   :  { %v628_v8 = vpop.f32.mrf.mxu0 }
 0x1b4   :  { %509 = vst [vmem:[%s843_s5] sm:$0x3] %v504_v7 }
 0x1b5   :  { %v506_v9 = vpop.f32.mrf.mxu0 }
 0x1b7   :  { %v629_v10 = vpop.f32.mrf.mxu0 }

</bundles_post_ra>
